<compile_context>
chip_gen: v5e
topology: v5e:2x2
jax: 0.10.0
libtpu: 0.0.40
codegen_flags: <defaults>
</compile_context>

<pallas_src>
import functools

import jax
import jax.numpy as jnp
from jax import lax
from jax.experimental import pallas as pl
from jax.experimental.pallas import tpu as pltpu

EPS = 1e-5                     # nn.GroupNorm default eps
_SQRT1_2 = 0.7071067811865476  # 1/sqrt(2)


def _gelu(x, approx):
    if approx:
        # tanh-approx GELU runs mostly on the EUP (separate VLIW slot) -- useful when
        # the VALU saturates, but differs slightly from PyTorch's exact GELU.
        return jax.nn.gelu(x, approximate=True)
    return 0.5 * x * (1.0 + lax.erf(x * jnp.float32(_SQRT1_2)))


def _reflect_pad_into(pad_ref, p, Hh, Wh):
    """Reflect-pad (pad=1, PyTorch 'reflect') p:(Hh,Wh,C) into pad_ref:(Hh+2,Wh+2,C)."""
    pad_ref[1:Hh + 1, 1:Wh + 1, :] = p                        # center
    pad_ref[0:1, 1:Wh + 1, :] = p[1:2]                        # top    <- row 1
    pad_ref[Hh + 1:Hh + 2, 1:Wh + 1, :] = p[Hh - 2:Hh - 1]    # bottom <- row Hh-2
    # full-height left/right columns (also fills the corners correctly)
    pad_ref[:, 0:1, :] = pad_ref[:, 2:3, :]                   # col -1 <- col 1
    pad_ref[:, Wh + 1:Wh + 2, :] = pad_ref[:, Wh - 1:Wh, :]   # col Wh <- col Wh-2


def _conv3x3_from_pad(pad_ref, w, Hh, Wh, Cout):
    """3x3 'valid' conv over the padded scratch as 9 accumulating MXU matmuls.

    pad_ref: (Hh+2, Wh+2, C) VMEM scratch in the matmul dtype; w: (9, C, Cout) value.
    Returns f32 (Hh*Wh, Cout).
    """
    C = pad_ref.shape[2]
    HW = Hh * Wh
    acc = jnp.zeros((HW, Cout), jnp.float32)
    for t in range(9):                       # static unroll over the 9 taps
        dy, dx = divmod(t, 3)
        slab = pad_ref[dy:dy + Hh, dx:dx + Wh, :].reshape(HW, C)
        acc = acc + jnp.dot(slab, w[t], preferred_element_type=jnp.float32)
    return acc


def _gn_gelu(y, gamma, beta, groups, approx_gelu):
    """GroupNorm (per grid-sample, two-pass, f32 stats) + GELU on a (HW, C) f32 value."""
    HW, C = y.shape
    cpg = C // groups
    denom = jnp.float32(HW * cpg)

    if cpg > 1:
        # (C, C) 0/1 mask: M[i, j] = 1 iff channels i and j share a group.
        # stats @ M both sums within a group and broadcasts back per channel
        # (tiny matmul; avoids lane-dim reshapes of (1, C) vectors).
        gi = lax.broadcasted_iota(jnp.int32, (C, C), 0) // cpg
        gj = lax.broadcasted_iota(jnp.int32, (C, C), 1) // cpg
        gmask = (gi == gj).astype(jnp.float32)

    ch_sum = jnp.sum(y, axis=0, keepdims=True)                   # (1, C)
    if cpg == 1:
        mean = ch_sum / denom
    else:
        mean = jnp.dot(ch_sum, gmask, preferred_element_type=jnp.float32) / denom

    yc = y - mean
    ch_sq = jnp.sum(yc * yc, axis=0, keepdims=True)              # (1, C)
    if cpg == 1:
        var = ch_sq / denom
    else:
        var = jnp.dot(ch_sq, gmask, preferred_element_type=jnp.float32) / denom

    z = yc * lax.rsqrt(var + jnp.float32(EPS)) * gamma + beta
    return _gelu(z, approx_gelu)


def _encoder_block_kernel(x_ref, w1_ref, b1_ref, g1_ref, be1_ref,
                          w2_ref, b2_ref, g2_ref, be2_ref, o_ref,
                          pad1_ref, pad2_ref, *, pool, groups, approx_gelu):
    Cin = pad1_ref.shape[2]
    Cout = o_ref.shape[2]
    Hh, Wh = pad1_ref.shape[0] - 2, pad1_ref.shape[1] - 2
    HW = Hh * Wh
    cdt = pad1_ref.dtype                       # MXU input dtype (bf16 by default)

    # ---- MaxPool2d(2, 2), in the input dtype, no strided reads ----
    xv = x_ref[...][0]                         # pool: (2*Hh, Wh, 2*Cin), else (Hh, Wh, Cin)
    if pool:
        xw = jnp.maximum(xv[:, :, :Cin], xv[:, :, Cin:])   # W-pool: max of lane halves
        xh = xw.reshape(Hh, 2, Wh, Cin)                    # leading-dim split: free
        p = jnp.maximum(xh[:, 0], xh[:, 1])                # H-pool -> (Hh, Wh, Cin)
    else:
        p = xv

    # ---- conv1: reflect pad + 9 accumulating matmuls, then GroupNorm + GELU ----
    _reflect_pad_into(pad1_ref, p.astype(cdt), Hh, Wh)
    y1 = _conv3x3_from_pad(pad1_ref, w1_ref[...], Hh, Wh, Cout) + b1_ref[...]
    y1 = _gn_gelu(y1, g1_ref[...], be1_ref[...], groups, approx_gelu)

    # ---- conv2: same pipeline on the conv1 activation ----
    _reflect_pad_into(pad2_ref, y1.reshape(Hh, Wh, Cout).astype(cdt), Hh, Wh)
    y2 = _conv3x3_from_pad(pad2_ref, w2_ref[...], Hh, Wh, Cout) + b2_ref[...]
    y2 = _gn_gelu(y2, g2_ref[...], be2_ref[...], groups, approx_gelu)

    o_ref[...] = y2.reshape(1, HW, Cout).astype(o_ref.dtype)


def _pick_vmem_limit_bytes():
    """Per-generation scoped-VMEM limit; None (compiler default) off-TPU."""
    try:
        cap = int(pltpu.get_tpu_info().vmem_capacity_bytes)
    except Exception:
        return None
    # ~7/8 of physical, capped (v5e/v6e ~112 MiB, v7x ~56 MiB).
    return max(32 * 1024 * 1024, min((cap * 7) // 8, 120 * 1024 * 1024))


def encoder_block_forward_nhwc(x_nhwc, params, polling=True, groups=32,
                               matmul_dtype=jnp.bfloat16, approx_gelu=False):
    """Fused _EncoderBlock forward, NHWC in / NHWC out (no layout transposes).

    x_nhwc: (N, H, W, Cin) -> (N, Hh, Wh, Cout) float32.
    matmul_dtype=bf16 keeps f32 accumulation / GroupNorm stats; pass jnp.float32 for
    closer numerical parity with the f32 PyTorch module.
    """
    N, H, W, Cin = x_nhwc.shape
    if polling:
        assert H % 2 == 0 and W % 2 == 0, "MaxPool2d(2,2) requires even H, W"
        Hh, Wh = H // 2, W // 2
        # Free metadata regroup so the kernel can do the W-pool as a max of lane
        # halves and the H-pool as a leading-dim reshape (no strided Ref reads).
        x_k = x_nhwc.reshape(N, H, Wh, 2 * Cin)
    else:
        Hh, Wh = H, W
        x_k = x_nhwc
    assert Hh >= 2 and Wh >= 2, "reflect padding needs (pooled) H, W >= 2"
    HW = Hh * Wh

    w1 = jnp.asarray(params['w1_9'], matmul_dtype)              # (9, Cin, Cout)
    Cout = w1.shape[2]
    w2 = jnp.asarray(params['w2_9'], matmul_dtype)              # (9, Cout, Cout)
    assert Cout % groups == 0, "GroupNorm requires Cout % groups == 0"
    b1 = jnp.asarray(params['b1'], jnp.float32).reshape(1, Cout)
    g1 = jnp.asarray(params['g1'], jnp.float32).reshape(1, Cout)
    be1 = jnp.asarray(params['beta1'], jnp.float32).reshape(1, Cout)
    b2 = jnp.asarray(params['b2'], jnp.float32).reshape(1, Cout)
    g2 = jnp.asarray(params['g2'], jnp.float32).reshape(1, Cout)
    be2 = jnp.asarray(params['beta2'], jnp.float32).reshape(1, Cout)

    kernel = functools.partial(_encoder_block_kernel, pool=polling, groups=groups,
                               approx_gelu=approx_gelu)

    vec_spec = pl.BlockSpec((1, Cout), lambda n: (0, 0))
    out = pl.pallas_call(
        kernel,
        out_shape=jax.ShapeDtypeStruct((N, HW, Cout), jnp.float32),
        grid=(N,),
        in_specs=[
            pl.BlockSpec((1,) + x_k.shape[1:], lambda n: (n, 0, 0, 0)),   # x (one sample)
            pl.BlockSpec(w1.shape, lambda n: (0, 0, 0)),                  # w1 taps
            vec_spec, vec_spec, vec_spec,                                 # b1, gamma1, beta1
            pl.BlockSpec(w2.shape, lambda n: (0, 0, 0)),                  # w2 taps
            vec_spec, vec_spec, vec_spec,                                 # b2, gamma2, beta2
        ],
        out_specs=pl.BlockSpec((1, HW, Cout), lambda n: (n, 0, 0)),
        scratch_shapes=[
            pltpu.VMEM((Hh + 2, Wh + 2, Cin), matmul_dtype),    # reflect-padded pool out
            pltpu.VMEM((Hh + 2, Wh + 2, Cout), matmul_dtype),   # reflect-padded conv1 act
        ],
        compiler_params=pltpu.CompilerParams(
            dimension_semantics=("parallel",),        # megacore: samples across cores
            vmem_limit_bytes=_pick_vmem_limit_bytes(),
        ),
    )(x_k, w1, b1, g1, be1, w2, b2, g2, be2)

    return out.reshape(N, Hh, Wh, Cout)


def encoder_block_forward(x_nchw, params, **kwargs):
    """PyTorch-layout (NCHW) wrapper.  Prefer `encoder_block_forward_nhwc`: these two
    transposes are an extra HBM round trip on an otherwise memory-bound block."""
    y = encoder_block_forward_nhwc(jnp.transpose(x_nchw, (0, 2, 3, 1)), params, **kwargs)
    return jnp.transpose(y, (0, 3, 1, 2))


# ----------------------------------------------------------------------------
# Pure-JAX reference (correctness check for the Pallas kernel)
# ----------------------------------------------------------------------------
def _ref_forward(x_nchw, p, groups=32):
    x = jnp.transpose(x_nchw, (0, 2, 3, 1))
    N, H, W, C = x.shape
    x = jnp.max(x.reshape(N, H // 2, 2, W // 2, 2, C), axis=(2, 4))

    def block(x, w_hwio, b, gamma, beta):
        xp = jnp.pad(x, ((0, 0), (1, 1), (1, 1), (0, 0)), mode='reflect')
        y = lax.conv_general_dilated(
            xp, w_hwio, (1, 1), 'VALID',
            dimension_numbers=('NHWC', 'HWIO', 'NHWC'),
            precision=lax.Precision.HIGHEST) + b
        Nn, Hh, Ww, Cc = y.shape
        cpg = Cc // groups
        yg = y.reshape(Nn, Hh, Ww, groups, cpg)
        mu = yg.mean(axis=(1, 2, 4), keepdims=True)
        var = ((yg - mu) ** 2).mean(axis=(1, 2, 4), keepdims=True)
        yh = ((yg - mu) / jnp.sqrt(var + EPS)).reshape(Nn, Hh, Ww, Cc)
        yh = yh * gamma + beta
        return 0.5 * yh * (1.0 + lax.erf(yh / jnp.sqrt(2.0)))

    x = block(x, p['w1_hwio'], p['b1'], p['g1'], p['beta1'])
    x = block(x, p['w2_hwio'], p['b2'], p['g2'], p['beta2'])
    return jnp.transpose(x, (0, 3, 1, 2))


if __name__ == "__main__":
    # Small shapes consistent with the module: GroupNorm(32, Cout) => Cout = 32.
    N, Cin, H, W = 2, 4, 16, 16
    Cout, G = 32, 32

    key = jax.random.PRNGKey(0)
    ks = jax.random.split(key, 9)
    x = jax.random.normal(ks[0], (N, Cin, H, W), jnp.float32)

    # Deterministic synthetic parameters (PyTorch-like scales).
    w1 = jax.random.normal(ks[1], (3, 3, Cin, Cout), jnp.float32) / jnp.sqrt(9.0 * Cin)
    b1 = 0.02 * jax.random.normal(ks[2], (Cout,), jnp.float32)
    g1 = 1.0 + 0.1 * jax.random.normal(ks[3], (Cout,), jnp.float32)
    be1 = 0.1 * jax.random.normal(ks[4], (Cout,), jnp.float32)
    w2 = jax.random.normal(ks[5], (3, 3, Cout, Cout), jnp.float32) / jnp.sqrt(9.0 * Cout)
    b2 = 0.02 * jax.random.normal(ks[6], (Cout,), jnp.float32)
    g2 = 1.0 + 0.1 * jax.random.normal(ks[7], (Cout,), jnp.float32)
    be2 = 0.1 * jax.random.normal(ks[8], (Cout,), jnp.float32)

    params = dict(
        w1_9=w1.reshape(9, Cin, Cout), b1=b1, g1=g1, beta1=be1,
        w2_9=w2.reshape(9, Cout, Cout), b2=b2, g2=g2, beta2=be2,
        w1_hwio=w1, w2_hwio=w2,
    )

    ref = jax.block_until_ready(_ref_forward(x, params, groups=G))

    # f32 MXU path: tight parity with the PyTorch-equivalent reference.
    out32 = jax.block_until_ready(
        encoder_block_forward(x, params, polling=True, groups=G,
                              matmul_dtype=jnp.float32))
    assert out32.shape == (N, Cout, H // 2, W // 2), out32.shape
    err32 = float(jnp.max(jnp.abs(out32 - ref)))
    assert err32 < 1e-2, f"f32 path max abs err {err32}"

    # Default bf16 MXU path (f32 accumulation / GroupNorm stats): looser tolerance.
    out16 = jax.block_until_ready(
        encoder_block_forward(x, params, polling=True, groups=G))
    err16 = float(jnp.max(jnp.abs(out16 - ref)))
    assert err16 < 1e-1, f"bf16 path max abs err {err16}"

    print("KERNEL_OK")
</pallas_src>

<mosaic_0001>
module attributes {stable_mosaic.version = 11 : i64} {
  func.func @_encoder_block_kernel(%arg0: i32, %arg1: memref<1x16x8x8xf32, #tpu.memory_space<vmem>>, %arg2: memref<9x4x32xf32, #tpu.memory_space<vmem>>, %arg3: memref<1x32xf32, #tpu.memory_space<vmem>>, %arg4: memref<1x32xf32, #tpu.memory_space<vmem>>, %arg5: memref<1x32xf32, #tpu.memory_space<vmem>>, %arg6: memref<9x32x32xf32, #tpu.memory_space<vmem>>, %arg7: memref<1x32xf32, #tpu.memory_space<vmem>>, %arg8: memref<1x32xf32, #tpu.memory_space<vmem>>, %arg9: memref<1x32xf32, #tpu.memory_space<vmem>>, %arg10: memref<1x64x32xf32, #tpu.memory_space<vmem>>, %arg11: memref<10x10x4xf32, #tpu.memory_space<vmem>>, %arg12: memref<10x10x32xf32, #tpu.memory_space<vmem>>) attributes {dimension_semantics = [#tpu.dimension_semantics<parallel>], iteration_bounds = array<i64: 2>, scalar_prefetch = 0 : i64, scratch_operands = 2 : i64, tpu.core_type = #tpu.core_type<tc>, window_params = [{transform_indices = @transform_0, window_bounds = array<i64: 1, 16, 8, 8>}, {pipeline_mode = #tpu.pipeline_mode<synchronous>, transform_indices = @transform_1, window_bounds = array<i64: 9, 4, 32>}, {pipeline_mode = #tpu.pipeline_mode<synchronous>, transform_indices = @transform_2, window_bounds = array<i64: 1, 32>}, {pipeline_mode = #tpu.pipeline_mode<synchronous>, transform_indices = @transform_3, window_bounds = array<i64: 1, 32>}, {pipeline_mode = #tpu.pipeline_mode<synchronous>, transform_indices = @transform_4, window_bounds = array<i64: 1, 32>}, {pipeline_mode = #tpu.pipeline_mode<synchronous>, transform_indices = @transform_5, window_bounds = array<i64: 9, 32, 32>}, {pipeline_mode = #tpu.pipeline_mode<synchronous>, transform_indices = @transform_6, window_bounds = array<i64: 1, 32>}, {pipeline_mode = #tpu.pipeline_mode<synchronous>, transform_indices = @transform_7, window_bounds = array<i64: 1, 32>}, {pipeline_mode = #tpu.pipeline_mode<synchronous>, transform_indices = @transform_8, window_bounds = array<i64: 1, 32>}, {transform_indices = @transform_9, window_bounds = array<i64: 1, 64, 32>}]} {
    %c0 = arith.constant 0 : index
    %c0_0 = arith.constant 0 : index
    %c0_1 = arith.constant 0 : index
    %c0_2 = arith.constant 0 : index
    %0 = vector.load %arg1[%c0, %c0_0, %c0_1, %c0_2] : memref<1x16x8x8xf32, #tpu.memory_space<vmem>>, vector<1x16x8x8xf32>
    %1 = vector.shape_cast %0 : vector<1x16x8x8xf32> to vector<16x8x8xf32>
    %2 = vector.extract_strided_slice %1 {offsets = [0, 0, 0], sizes = [16, 8, 4], strides = [1, 1, 1]} : vector<16x8x8xf32> to vector<16x8x4xf32>
    %3 = vector.extract_strided_slice %1 {offsets = [0, 0, 4], sizes = [16, 8, 4], strides = [1, 1, 1]} : vector<16x8x8xf32> to vector<16x8x4xf32>
    %4 = arith.maximumf %2, %3 : vector<16x8x4xf32>
    %5 = vector.shape_cast %4 : vector<16x8x4xf32> to vector<8x2x8x4xf32>
    %6 = vector.extract_strided_slice %5 {offsets = [0, 0, 0, 0], sizes = [8, 1, 8, 4], strides = [1, 1, 1, 1]} : vector<8x2x8x4xf32> to vector<8x1x8x4xf32>
    %7 = vector.shape_cast %6 : vector<8x1x8x4xf32> to vector<8x8x4xf32>
    %8 = vector.extract_strided_slice %5 {offsets = [0, 1, 0, 0], sizes = [8, 1, 8, 4], strides = [1, 1, 1, 1]} : vector<8x2x8x4xf32> to vector<8x1x8x4xf32>
    %9 = vector.shape_cast %8 : vector<8x1x8x4xf32> to vector<8x8x4xf32>
    %10 = arith.maximumf %7, %9 : vector<8x8x4xf32>
    %c1 = arith.constant 1 : index
    %c1_3 = arith.constant 1 : index
    %c0_4 = arith.constant 0 : index
    %11 = vector.load %arg11[%c1, %c1_3, %c0_4] : memref<10x10x4xf32, #tpu.memory_space<vmem>>, vector<8x8x4xf32>
    tpu.vector_store %arg11[%c1, %c1_3, %c0_4], %10 {strides = array<i32>} : memref<10x10x4xf32, #tpu.memory_space<vmem>>, vector<8x8x4xf32>,
    %12 = vector.extract_strided_slice %10 {offsets = [1, 0, 0], sizes = [1, 8, 4], strides = [1, 1, 1]} : vector<8x8x4xf32> to vector<1x8x4xf32>
    %c0_5 = arith.constant 0 : index
    %c1_6 = arith.constant 1 : index
    %c0_7 = arith.constant 0 : index
    %13 = vector.load %arg11[%c0_5, %c1_6, %c0_7] : memref<10x10x4xf32, #tpu.memory_space<vmem>>, vector<1x8x4xf32>
    tpu.vector_store %arg11[%c0_5, %c1_6, %c0_7], %12 {strides = array<i32>} : memref<10x10x4xf32, #tpu.memory_space<vmem>>, vector<1x8x4xf32>,
    %14 = vector.extract_strided_slice %10 {offsets = [6, 0, 0], sizes = [1, 8, 4], strides = [1, 1, 1]} : vector<8x8x4xf32> to vector<1x8x4xf32>
    %c9 = arith.constant 9 : index
    %c1_8 = arith.constant 1 : index
    %c0_9 = arith.constant 0 : index
    %15 = vector.load %arg11[%c9, %c1_8, %c0_9] : memref<10x10x4xf32, #tpu.memory_space<vmem>>, vector<1x8x4xf32>
    tpu.vector_store %arg11[%c9, %c1_8, %c0_9], %14 {strides = array<i32>} : memref<10x10x4xf32, #tpu.memory_space<vmem>>, vector<1x8x4xf32>,
    %c0_10 = arith.constant 0 : index
    %c2 = arith.constant 2 : index
    %c0_11 = arith.constant 0 : index
    %16 = vector.load %arg11[%c0_10, %c2, %c0_11] : memref<10x10x4xf32, #tpu.memory_space<vmem>>, vector<10x1x4xf32>
    %c0_12 = arith.constant 0 : index
    %c0_13 = arith.constant 0 : index
    %c0_14 = arith.constant 0 : index
    %17 = vector.load %arg11[%c0_12, %c0_13, %c0_14] : memref<10x10x4xf32, #tpu.memory_space<vmem>>, vector<10x1x4xf32>
    tpu.vector_store %arg11[%c0_12, %c0_13, %c0_14], %16 {strides = array<i32>} : memref<10x10x4xf32, #tpu.memory_space<vmem>>, vector<10x1x4xf32>,
    %c0_15 = arith.constant 0 : index
    %c7 = arith.constant 7 : index
    %c0_16 = arith.constant 0 : index
    %18 = vector.load %arg11[%c0_15, %c7, %c0_16] : memref<10x10x4xf32, #tpu.memory_space<vmem>>, vector<10x1x4xf32>
    %c0_17 = arith.constant 0 : index
    %c9_18 = arith.constant 9 : index
    %c0_19 = arith.constant 0 : index
    %19 = vector.load %arg11[%c0_17, %c9_18, %c0_19] : memref<10x10x4xf32, #tpu.memory_space<vmem>>, vector<10x1x4xf32>
    tpu.vector_store %arg11[%c0_17, %c9_18, %c0_19], %18 {strides = array<i32>} : memref<10x10x4xf32, #tpu.memory_space<vmem>>, vector<10x1x4xf32>,
    %c0_20 = arith.constant 0 : index
    %c0_21 = arith.constant 0 : index
    %c0_22 = arith.constant 0 : index
    %20 = vector.load %arg2[%c0_20, %c0_21, %c0_22] : memref<9x4x32xf32, #tpu.memory_space<vmem>>, vector<9x4x32xf32>
    %cst = arith.constant 0.000000e+00 : f32
    %21 = vector.broadcast %cst : f32 to vector<64x32xf32>
    %c0_23 = arith.constant 0 : index
    %c0_24 = arith.constant 0 : index
    %c0_25 = arith.constant 0 : index
    %22 = vector.load %arg11[%c0_23, %c0_24, %c0_25] : memref<10x10x4xf32, #tpu.memory_space<vmem>>, vector<8x8x4xf32>
    %23 = vector.shape_cast %22 : vector<8x8x4xf32> to vector<64x4xf32>
    %24 = vector.extract_strided_slice %20 {offsets = [0, 0, 0], sizes = [1, 4, 32], strides = [1, 1, 1]} : vector<9x4x32xf32> to vector<1x4x32xf32>
    %25 = vector.shape_cast %24 : vector<1x4x32xf32> to vector<4x32xf32>
    %cst_26 = arith.constant dense<0.000000e+00> : vector<64x32xf32>
    %26 = tpu.matmul %23, %25, %cst_26 {dimension_numbers = #tpu.dot_dimension_numbers<[1], [0], [0], [1], [0, 0, 1, 1], [], []>} : vector<64x4xf32>, vector<4x32xf32>, vector<64x32xf32> -> vector<64x32xf32>
    %27 = arith.addf %21, %26 : vector<64x32xf32>
    %c0_27 = arith.constant 0 : index
    %c1_28 = arith.constant 1 : index
    %c0_29 = arith.constant 0 : index
    %28 = vector.load %arg11[%c0_27, %c1_28, %c0_29] : memref<10x10x4xf32, #tpu.memory_space<vmem>>, vector<8x8x4xf32>
    %29 = vector.shape_cast %28 : vector<8x8x4xf32> to vector<64x4xf32>
    %30 = vector.extract_strided_slice %20 {offsets = [1, 0, 0], sizes = [1, 4, 32], strides = [1, 1, 1]} : vector<9x4x32xf32> to vector<1x4x32xf32>
    %31 = vector.shape_cast %30 : vector<1x4x32xf32> to vector<4x32xf32>
    %cst_30 = arith.constant dense<0.000000e+00> : vector<64x32xf32>
    %32 = tpu.matmul %29, %31, %cst_30 {dimension_numbers = #tpu.dot_dimension_numbers<[1], [0], [0], [1], [0, 0, 1, 1], [], []>} : vector<64x4xf32>, vector<4x32xf32>, vector<64x32xf32> -> vector<64x32xf32>
    %33 = arith.addf %27, %32 : vector<64x32xf32>
    %c0_31 = arith.constant 0 : index
    %c2_32 = arith.constant 2 : index
    %c0_33 = arith.constant 0 : index
    %34 = vector.load %arg11[%c0_31, %c2_32, %c0_33] : memref<10x10x4xf32, #tpu.memory_space<vmem>>, vector<8x8x4xf32>
    %35 = vector.shape_cast %34 : vector<8x8x4xf32> to vector<64x4xf32>
    %36 = vector.extract_strided_slice %20 {offsets = [2, 0, 0], sizes = [1, 4, 32], strides = [1, 1, 1]} : vector<9x4x32xf32> to vector<1x4x32xf32>
    %37 = vector.shape_cast %36 : vector<1x4x32xf32> to vector<4x32xf32>
    %cst_34 = arith.constant dense<0.000000e+00> : vector<64x32xf32>
    %38 = tpu.matmul %35, %37, %cst_34 {dimension_numbers = #tpu.dot_dimension_numbers<[1], [0], [0], [1], [0, 0, 1, 1], [], []>} : vector<64x4xf32>, vector<4x32xf32>, vector<64x32xf32> -> vector<64x32xf32>
    %39 = arith.addf %33, %38 : vector<64x32xf32>
    %c1_35 = arith.constant 1 : index
    %c0_36 = arith.constant 0 : index
    %c0_37 = arith.constant 0 : index
    %40 = vector.load %arg11[%c1_35, %c0_36, %c0_37] : memref<10x10x4xf32, #tpu.memory_space<vmem>>, vector<8x8x4xf32>
    %41 = vector.shape_cast %40 : vector<8x8x4xf32> to vector<64x4xf32>
    %42 = vector.extract_strided_slice %20 {offsets = [3, 0, 0], sizes = [1, 4, 32], strides = [1, 1, 1]} : vector<9x4x32xf32> to vector<1x4x32xf32>
    %43 = vector.shape_cast %42 : vector<1x4x32xf32> to vector<4x32xf32>
    %cst_38 = arith.constant dense<0.000000e+00> : vector<64x32xf32>
    %44 = tpu.matmul %41, %43, %cst_38 {dimension_numbers = #tpu.dot_dimension_numbers<[1], [0], [0], [1], [0, 0, 1, 1], [], []>} : vector<64x4xf32>, vector<4x32xf32>, vector<64x32xf32> -> vector<64x32xf32>
    %45 = arith.addf %39, %44 : vector<64x32xf32>
    %c1_39 = arith.constant 1 : index
    %c1_40 = arith.constant 1 : index
    %c0_41 = arith.constant 0 : index
    %46 = vector.load %arg11[%c1_39, %c1_40, %c0_41] : memref<10x10x4xf32, #tpu.memory_space<vmem>>, vector<8x8x4xf32>
    %47 = vector.shape_cast %46 : vector<8x8x4xf32> to vector<64x4xf32>
    %48 = vector.extract_strided_slice %20 {offsets = [4, 0, 0], sizes = [1, 4, 32], strides = [1, 1, 1]} : vector<9x4x32xf32> to vector<1x4x32xf32>
    %49 = vector.shape_cast %48 : vector<1x4x32xf32> to vector<4x32xf32>
    %cst_42 = arith.constant dense<0.000000e+00> : vector<64x32xf32>
    %50 = tpu.matmul %47, %49, %cst_42 {dimension_numbers = #tpu.dot_dimension_numbers<[1], [0], [0], [1], [0, 0, 1, 1], [], []>} : vector<64x4xf32>, vector<4x32xf32>, vector<64x32xf32> -> vector<64x32xf32>
    %51 = arith.addf %45, %50 : vector<64x32xf32>
    %c1_43 = arith.constant 1 : index
    %c2_44 = arith.constant 2 : index
    %c0_45 = arith.constant 0 : index
    %52 = vector.load %arg11[%c1_43, %c2_44, %c0_45] : memref<10x10x4xf32, #tpu.memory_space<vmem>>, vector<8x8x4xf32>
    %53 = vector.shape_cast %52 : vector<8x8x4xf32> to vector<64x4xf32>
    %54 = vector.extract_strided_slice %20 {offsets = [5, 0, 0], sizes = [1, 4, 32], strides = [1, 1, 1]} : vector<9x4x32xf32> to vector<1x4x32xf32>
    %55 = vector.shape_cast %54 : vector<1x4x32xf32> to vector<4x32xf32>
    %cst_46 = arith.constant dense<0.000000e+00> : vector<64x32xf32>
    %56 = tpu.matmul %53, %55, %cst_46 {dimension_numbers = #tpu.dot_dimension_numbers<[1], [0], [0], [1], [0, 0, 1, 1], [], []>} : vector<64x4xf32>, vector<4x32xf32>, vector<64x32xf32> -> vector<64x32xf32>
    %57 = arith.addf %51, %56 : vector<64x32xf32>
    %c2_47 = arith.constant 2 : index
    %c0_48 = arith.constant 0 : index
    %c0_49 = arith.constant 0 : index
    %58 = vector.load %arg11[%c2_47, %c0_48, %c0_49] : memref<10x10x4xf32, #tpu.memory_space<vmem>>, vector<8x8x4xf32>
    %59 = vector.shape_cast %58 : vector<8x8x4xf32> to vector<64x4xf32>
    %60 = vector.extract_strided_slice %20 {offsets = [6, 0, 0], sizes = [1, 4, 32], strides = [1, 1, 1]} : vector<9x4x32xf32> to vector<1x4x32xf32>
    %61 = vector.shape_cast %60 : vector<1x4x32xf32> to vector<4x32xf32>
    %cst_50 = arith.constant dense<0.000000e+00> : vector<64x32xf32>
    %62 = tpu.matmul %59, %61, %cst_50 {dimension_numbers = #tpu.dot_dimension_numbers<[1], [0], [0], [1], [0, 0, 1, 1], [], []>} : vector<64x4xf32>, vector<4x32xf32>, vector<64x32xf32> -> vector<64x32xf32>
    %63 = arith.addf %57, %62 : vector<64x32xf32>
    %c2_51 = arith.constant 2 : index
    %c1_52 = arith.constant 1 : index
    %c0_53 = arith.constant 0 : index
    %64 = vector.load %arg11[%c2_51, %c1_52, %c0_53] : memref<10x10x4xf32, #tpu.memory_space<vmem>>, vector<8x8x4xf32>
    %65 = vector.shape_cast %64 : vector<8x8x4xf32> to vector<64x4xf32>
    %66 = vector.extract_strided_slice %20 {offsets = [7, 0, 0], sizes = [1, 4, 32], strides = [1, 1, 1]} : vector<9x4x32xf32> to vector<1x4x32xf32>
    %67 = vector.shape_cast %66 : vector<1x4x32xf32> to vector<4x32xf32>
    %cst_54 = arith.constant dense<0.000000e+00> : vector<64x32xf32>
    %68 = tpu.matmul %65, %67, %cst_54 {dimension_numbers = #tpu.dot_dimension_numbers<[1], [0], [0], [1], [0, 0, 1, 1], [], []>} : vector<64x4xf32>, vector<4x32xf32>, vector<64x32xf32> -> vector<64x32xf32>
    %69 = arith.addf %63, %68 : vector<64x32xf32>
    %c2_55 = arith.constant 2 : index
    %c2_56 = arith.constant 2 : index
    %c0_57 = arith.constant 0 : index
    %70 = vector.load %arg11[%c2_55, %c2_56, %c0_57] : memref<10x10x4xf32, #tpu.memory_space<vmem>>, vector<8x8x4xf32>
    %71 = vector.shape_cast %70 : vector<8x8x4xf32> to vector<64x4xf32>
    %72 = vector.extract_strided_slice %20 {offsets = [8, 0, 0], sizes = [1, 4, 32], strides = [1, 1, 1]} : vector<9x4x32xf32> to vector<1x4x32xf32>
    %73 = vector.shape_cast %72 : vector<1x4x32xf32> to vector<4x32xf32>
    %cst_58 = arith.constant dense<0.000000e+00> : vector<64x32xf32>
    %74 = tpu.matmul %71, %73, %cst_58 {dimension_numbers = #tpu.dot_dimension_numbers<[1], [0], [0], [1], [0, 0, 1, 1], [], []>} : vector<64x4xf32>, vector<4x32xf32>, vector<64x32xf32> -> vector<64x32xf32>
    %75 = arith.addf %69, %74 : vector<64x32xf32>
    %c0_59 = arith.constant 0 : index
    %c0_60 = arith.constant 0 : index
    %76 = vector.load %arg3[%c0_59, %c0_60] : memref<1x32xf32, #tpu.memory_space<vmem>>, vector<1x32xf32>
    %77 = vector.broadcast %76 : vector<1x32xf32> to vector<64x32xf32>
    %78 = arith.addf %75, %77 : vector<64x32xf32>
    %c0_61 = arith.constant 0 : index
    %c0_62 = arith.constant 0 : index
    %79 = vector.load %arg4[%c0_61, %c0_62] : memref<1x32xf32, #tpu.memory_space<vmem>>, vector<1x32xf32>
    %c0_63 = arith.constant 0 : index
    %c0_64 = arith.constant 0 : index
    %80 = vector.load %arg5[%c0_63, %c0_64] : memref<1x32xf32, #tpu.memory_space<vmem>>, vector<1x32xf32>
    %cst_65 = arith.constant dense<0.000000e+00> : vector<32xf32>
    %81 = vector.multi_reduction <add>, %78, %cst_65 [0] : vector<64x32xf32> to vector<32xf32>
    %82 = vector.shape_cast %81 : vector<32xf32> to vector<1x32xf32>
    %cst_66 = arith.constant 6.400000e+01 : f32
    %83 = vector.broadcast %cst_66 : f32 to vector<1x32xf32>
    %84 = arith.divf %82, %83 : vector<1x32xf32>
    %85 = vector.broadcast %84 : vector<1x32xf32> to vector<64x32xf32>
    %86 = arith.subf %78, %85 : vector<64x32xf32>
    %87 = arith.mulf %86, %86 : vector<64x32xf32>
    %cst_67 = arith.constant dense<0.000000e+00> : vector<32xf32>
    %88 = vector.multi_reduction <add>, %87, %cst_67 [0] : vector<64x32xf32> to vector<32xf32>
    %89 = vector.shape_cast %88 : vector<32xf32> to vector<1x32xf32>
    %cst_68 = arith.constant 6.400000e+01 : f32
    %90 = vector.broadcast %cst_68 : f32 to vector<1x32xf32>
    %91 = arith.divf %89, %90 : vector<1x32xf32>
    %cst_69 = arith.constant 9.99999974E-6 : f32
    %92 = vector.broadcast %cst_69 : f32 to vector<1x32xf32>
    %93 = arith.addf %91, %92 : vector<1x32xf32>
    %94 = math.rsqrt %93 : vector<1x32xf32>
    %95 = vector.broadcast %94 : vector<1x32xf32> to vector<64x32xf32>
    %96 = arith.mulf %86, %95 : vector<64x32xf32>
    %97 = vector.broadcast %79 : vector<1x32xf32> to vector<64x32xf32>
    %98 = arith.mulf %96, %97 : vector<64x32xf32>
    %99 = vector.broadcast %80 : vector<1x32xf32> to vector<64x32xf32>
    %100 = arith.addf %98, %99 : vector<64x32xf32>
    %cst_70 = arith.constant 5.000000e-01 : f32
    %101 = vector.broadcast %cst_70 : f32 to vector<64x32xf32>
    %102 = arith.mulf %101, %100 : vector<64x32xf32>
    %cst_71 = arith.constant 0.707106769 : f32
    %103 = vector.broadcast %cst_71 : f32 to vector<64x32xf32>
    %104 = arith.mulf %100, %103 : vector<64x32xf32>
    %105 = math.erf %104 : vector<64x32xf32>
    %cst_72 = arith.constant 1.000000e+00 : f32
    %106 = vector.broadcast %cst_72 : f32 to vector<64x32xf32>
    %107 = arith.addf %106, %105 : vector<64x32xf32>
    %108 = arith.mulf %102, %107 : vector<64x32xf32>
    %109 = vector.shape_cast %108 : vector<64x32xf32> to vector<8x8x32xf32>
    %c1_73 = arith.constant 1 : index
    %c1_74 = arith.constant 1 : index
    %c0_75 = arith.constant 0 : index
    %110 = vector.load %arg12[%c1_73, %c1_74, %c0_75] : memref<10x10x32xf32, #tpu.memory_space<vmem>>, vector<8x8x32xf32>
    tpu.vector_store %arg12[%c1_73, %c1_74, %c0_75], %109 {strides = array<i32>} : memref<10x10x32xf32, #tpu.memory_space<vmem>>, vector<8x8x32xf32>,
    %111 = vector.extract_strided_slice %109 {offsets = [1, 0, 0], sizes = [1, 8, 32], strides = [1, 1, 1]} : vector<8x8x32xf32> to vector<1x8x32xf32>
    %c0_76 = arith.constant 0 : index
    %c1_77 = arith.constant 1 : index
    %c0_78 = arith.constant 0 : index
    %112 = vector.load %arg12[%c0_76, %c1_77, %c0_78] : memref<10x10x32xf32, #tpu.memory_space<vmem>>, vector<1x8x32xf32>
    tpu.vector_store %arg12[%c0_76, %c1_77, %c0_78], %111 {strides = array<i32>} : memref<10x10x32xf32, #tpu.memory_space<vmem>>, vector<1x8x32xf32>,
    %113 = vector.extract_strided_slice %109 {offsets = [6, 0, 0], sizes = [1, 8, 32], strides = [1, 1, 1]} : vector<8x8x32xf32> to vector<1x8x32xf32>
    %c9_79 = arith.constant 9 : index
    %c1_80 = arith.constant 1 : index
    %c0_81 = arith.constant 0 : index
    %114 = vector.load %arg12[%c9_79, %c1_80, %c0_81] : memref<10x10x32xf32, #tpu.memory_space<vmem>>, vector<1x8x32xf32>
    tpu.vector_store %arg12[%c9_79, %c1_80, %c0_81], %113 {strides = array<i32>} : memref<10x10x32xf32, #tpu.memory_space<vmem>>, vector<1x8x32xf32>,
    %c0_82 = arith.constant 0 : index
    %c2_83 = arith.constant 2 : index
    %c0_84 = arith.constant 0 : index
    %115 = vector.load %arg12[%c0_82, %c2_83, %c0_84] : memref<10x10x32xf32, #tpu.memory_space<vmem>>, vector<10x1x32xf32>
    %c0_85 = arith.constant 0 : index
    %c0_86 = arith.constant 0 : index
    %c0_87 = arith.constant 0 : index
    %116 = vector.load %arg12[%c0_85, %c0_86, %c0_87] : memref<10x10x32xf32, #tpu.memory_space<vmem>>, vector<10x1x32xf32>
    tpu.vector_store %arg12[%c0_85, %c0_86, %c0_87], %115 {strides = array<i32>} : memref<10x10x32xf32, #tpu.memory_space<vmem>>, vector<10x1x32xf32>,
    %c0_88 = arith.constant 0 : index
    %c7_89 = arith.constant 7 : index
    %c0_90 = arith.constant 0 : index
    %117 = vector.load %arg12[%c0_88, %c7_89, %c0_90] : memref<10x10x32xf32, #tpu.memory_space<vmem>>, vector<10x1x32xf32>
    %c0_91 = arith.constant 0 : index
    %c9_92 = arith.constant 9 : index
    %c0_93 = arith.constant 0 : index
    %118 = vector.load %arg12[%c0_91, %c9_92, %c0_93] : memref<10x10x32xf32, #tpu.memory_space<vmem>>, vector<10x1x32xf32>
    tpu.vector_store %arg12[%c0_91, %c9_92, %c0_93], %117 {strides = array<i32>} : memref<10x10x32xf32, #tpu.memory_space<vmem>>, vector<10x1x32xf32>,
    %c0_94 = arith.constant 0 : index
    %c0_95 = arith.constant 0 : index
    %c0_96 = arith.constant 0 : index
    %119 = vector.load %arg6[%c0_94, %c0_95, %c0_96] : memref<9x32x32xf32, #tpu.memory_space<vmem>>, vector<9x32x32xf32>
    %cst_97 = arith.constant 0.000000e+00 : f32
    %120 = vector.broadcast %cst_97 : f32 to vector<64x32xf32>
    %c0_98 = arith.constant 0 : index
    %c0_99 = arith.constant 0 : index
    %c0_100 = arith.constant 0 : index
    %121 = vector.load %arg12[%c0_98, %c0_99, %c0_100] : memref<10x10x32xf32, #tpu.memory_space<vmem>>, vector<8x8x32xf32>
    %122 = vector.shape_cast %121 : vector<8x8x32xf32> to vector<64x32xf32>
    %123 = vector.extract_strided_slice %119 {offsets = [0, 0, 0], sizes = [1, 32, 32], strides = [1, 1, 1]} : vector<9x32x32xf32> to vector<1x32x32xf32>
    %124 = vector.shape_cast %123 : vector<1x32x32xf32> to vector<32x32xf32>
    %cst_101 = arith.constant dense<0.000000e+00> : vector<64x32xf32>
    %125 = tpu.matmul %122, %124, %cst_101 {dimension_numbers = #tpu.dot_dimension_numbers<[1], [0], [0], [1], [0, 0, 1, 1], [], []>} : vector<64x32xf32>, vector<32x32xf32>, vector<64x32xf32> -> vector<64x32xf32>
    %126 = arith.addf %120, %125 : vector<64x32xf32>
    %c0_102 = arith.constant 0 : index
    %c1_103 = arith.constant 1 : index
    %c0_104 = arith.constant 0 : index
    %127 = vector.load %arg12[%c0_102, %c1_103, %c0_104] : memref<10x10x32xf32, #tpu.memory_space<vmem>>, vector<8x8x32xf32>
    %128 = vector.shape_cast %127 : vector<8x8x32xf32> to vector<64x32xf32>
    %129 = vector.extract_strided_slice %119 {offsets = [1, 0, 0], sizes = [1, 32, 32], strides = [1, 1, 1]} : vector<9x32x32xf32> to vector<1x32x32xf32>
    %130 = vector.shape_cast %129 : vector<1x32x32xf32> to vector<32x32xf32>
    %cst_105 = arith.constant dense<0.000000e+00> : vector<64x32xf32>
    %131 = tpu.matmul %128, %130, %cst_105 {dimension_numbers = #tpu.dot_dimension_numbers<[1], [0], [0], [1], [0, 0, 1, 1], [], []>} : vector<64x32xf32>, vector<32x32xf32>, vector<64x32xf32> -> vector<64x32xf32>
    %132 = arith.addf %126, %131 : vector<64x32xf32>
    %c0_106 = arith.constant 0 : index
    %c2_107 = arith.constant 2 : index
    %c0_108 = arith.constant 0 : index
    %133 = vector.load %arg12[%c0_106, %c2_107, %c0_108] : memref<10x10x32xf32, #tpu.memory_space<vmem>>, vector<8x8x32xf32>
    %134 = vector.shape_cast %133 : vector<8x8x32xf32> to vector<64x32xf32>
    %135 = vector.extract_strided_slice %119 {offsets = [2, 0, 0], sizes = [1, 32, 32], strides = [1, 1, 1]} : vector<9x32x32xf32> to vector<1x32x32xf32>
    %136 = vector.shape_cast %135 : vector<1x32x32xf32> to vector<32x32xf32>
    %cst_109 = arith.constant dense<0.000000e+00> : vector<64x32xf32>
    %137 = tpu.matmul %134, %136, %cst_109 {dimension_numbers = #tpu.dot_dimension_numbers<[1], [0], [0], [1], [0, 0, 1, 1], [], []>} : vector<64x32xf32>, vector<32x32xf32>, vector<64x32xf32> -> vector<64x32xf32>
    %138 = arith.addf %132, %137 : vector<64x32xf32>
    %c1_110 = arith.constant 1 : index
    %c0_111 = arith.constant 0 : index
    %c0_112 = arith.constant 0 : index
    %139 = vector.load %arg12[%c1_110, %c0_111, %c0_112] : memref<10x10x32xf32, #tpu.memory_space<vmem>>, vector<8x8x32xf32>
    %140 = vector.shape_cast %139 : vector<8x8x32xf32> to vector<64x32xf32>
    %141 = vector.extract_strided_slice %119 {offsets = [3, 0, 0], sizes = [1, 32, 32], strides = [1, 1, 1]} : vector<9x32x32xf32> to vector<1x32x32xf32>
    %142 = vector.shape_cast %141 : vector<1x32x32xf32> to vector<32x32xf32>
    %cst_113 = arith.constant dense<0.000000e+00> : vector<64x32xf32>
    %143 = tpu.matmul %140, %142, %cst_113 {dimension_numbers = #tpu.dot_dimension_numbers<[1], [0], [0], [1], [0, 0, 1, 1], [], []>} : vector<64x32xf32>, vector<32x32xf32>, vector<64x32xf32> -> vector<64x32xf32>
    %144 = arith.addf %138, %143 : vector<64x32xf32>
    %c1_114 = arith.constant 1 : index
    %c1_115 = arith.constant 1 : index
    %c0_116 = arith.constant 0 : index
    %145 = vector.load %arg12[%c1_114, %c1_115, %c0_116] : memref<10x10x32xf32, #tpu.memory_space<vmem>>, vector<8x8x32xf32>
    %146 = vector.shape_cast %145 : vector<8x8x32xf32> to vector<64x32xf32>
    %147 = vector.extract_strided_slice %119 {offsets = [4, 0, 0], sizes = [1, 32, 32], strides = [1, 1, 1]} : vector<9x32x32xf32> to vector<1x32x32xf32>
    %148 = vector.shape_cast %147 : vector<1x32x32xf32> to vector<32x32xf32>
    %cst_117 = arith.constant dense<0.000000e+00> : vector<64x32xf32>
    %149 = tpu.matmul %146, %148, %cst_117 {dimension_numbers = #tpu.dot_dimension_numbers<[1], [0], [0], [1], [0, 0, 1, 1], [], []>} : vector<64x32xf32>, vector<32x32xf32>, vector<64x32xf32> -> vector<64x32xf32>
    %150 = arith.addf %144, %149 : vector<64x32xf32>
    %c1_118 = arith.constant 1 : index
    %c2_119 = arith.constant 2 : index
    %c0_120 = arith.constant 0 : index
    %151 = vector.load %arg12[%c1_118, %c2_119, %c0_120] : memref<10x10x32xf32, #tpu.memory_space<vmem>>, vector<8x8x32xf32>
    %152 = vector.shape_cast %151 : vector<8x8x32xf32> to vector<64x32xf32>
    %153 = vector.extract_strided_slice %119 {offsets = [5, 0, 0], sizes = [1, 32, 32], strides = [1, 1, 1]} : vector<9x32x32xf32> to vector<1x32x32xf32>
    %154 = vector.shape_cast %153 : vector<1x32x32xf32> to vector<32x32xf32>
    %cst_121 = arith.constant dense<0.000000e+00> : vector<64x32xf32>
    %155 = tpu.matmul %152, %154, %cst_121 {dimension_numbers = #tpu.dot_dimension_numbers<[1], [0], [0], [1], [0, 0, 1, 1], [], []>} : vector<64x32xf32>, vector<32x32xf32>, vector<64x32xf32> -> vector<64x32xf32>
    %156 = arith.addf %150, %155 : vector<64x32xf32>
    %c2_122 = arith.constant 2 : index
    %c0_123 = arith.constant 0 : index
    %c0_124 = arith.constant 0 : index
    %157 = vector.load %arg12[%c2_122, %c0_123, %c0_124] : memref<10x10x32xf32, #tpu.memory_space<vmem>>, vector<8x8x32xf32>
    %158 = vector.shape_cast %157 : vector<8x8x32xf32> to vector<64x32xf32>
    %159 = vector.extract_strided_slice %119 {offsets = [6, 0, 0], sizes = [1, 32, 32], strides = [1, 1, 1]} : vector<9x32x32xf32> to vector<1x32x32xf32>
    %160 = vector.shape_cast %159 : vector<1x32x32xf32> to vector<32x32xf32>
    %cst_125 = arith.constant dense<0.000000e+00> : vector<64x32xf32>
    %161 = tpu.matmul %158, %160, %cst_125 {dimension_numbers = #tpu.dot_dimension_numbers<[1], [0], [0], [1], [0, 0, 1, 1], [], []>} : vector<64x32xf32>, vector<32x32xf32>, vector<64x32xf32> -> vector<64x32xf32>
    %162 = arith.addf %156, %161 : vector<64x32xf32>
    %c2_126 = arith.constant 2 : index
    %c1_127 = arith.constant 1 : index
    %c0_128 = arith.constant 0 : index
    %163 = vector.load %arg12[%c2_126, %c1_127, %c0_128] : memref<10x10x32xf32, #tpu.memory_space<vmem>>, vector<8x8x32xf32>
    %164 = vector.shape_cast %163 : vector<8x8x32xf32> to vector<64x32xf32>
    %165 = vector.extract_strided_slice %119 {offsets = [7, 0, 0], sizes = [1, 32, 32], strides = [1, 1, 1]} : vector<9x32x32xf32> to vector<1x32x32xf32>
    %166 = vector.shape_cast %165 : vector<1x32x32xf32> to vector<32x32xf32>
    %cst_129 = arith.constant dense<0.000000e+00> : vector<64x32xf32>
    %167 = tpu.matmul %164, %166, %cst_129 {dimension_numbers = #tpu.dot_dimension_numbers<[1], [0], [0], [1], [0, 0, 1, 1], [], []>} : vector<64x32xf32>, vector<32x32xf32>, vector<64x32xf32> -> vector<64x32xf32>
    %168 = arith.addf %162, %167 : vector<64x32xf32>
    %c2_130 = arith.constant 2 : index
    %c2_131 = arith.constant 2 : index
    %c0_132 = arith.constant 0 : index
    %169 = vector.load %arg12[%c2_130, %c2_131, %c0_132] : memref<10x10x32xf32, #tpu.memory_space<vmem>>, vector<8x8x32xf32>
    %170 = vector.shape_cast %169 : vector<8x8x32xf32> to vector<64x32xf32>
    %171 = vector.extract_strided_slice %119 {offsets = [8, 0, 0], sizes = [1, 32, 32], strides = [1, 1, 1]} : vector<9x32x32xf32> to vector<1x32x32xf32>
    %172 = vector.shape_cast %171 : vector<1x32x32xf32> to vector<32x32xf32>
    %cst_133 = arith.constant dense<0.000000e+00> : vector<64x32xf32>
    %173 = tpu.matmul %170, %172, %cst_133 {dimension_numbers = #tpu.dot_dimension_numbers<[1], [0], [0], [1], [0, 0, 1, 1], [], []>} : vector<64x32xf32>, vector<32x32xf32>, vector<64x32xf32> -> vector<64x32xf32>
    %174 = arith.addf %168, %173 : vector<64x32xf32>
    %c0_134 = arith.constant 0 : index
    %c0_135 = arith.constant 0 : index
    %175 = vector.load %arg7[%c0_134, %c0_135] : memref<1x32xf32, #tpu.memory_space<vmem>>, vector<1x32xf32>
    %176 = vector.broadcast %175 : vector<1x32xf32> to vector<64x32xf32>
    %177 = arith.addf %174, %176 : vector<64x32xf32>
    %c0_136 = arith.constant 0 : index
    %c0_137 = arith.constant 0 : index
    %178 = vector.load %arg8[%c0_136, %c0_137] : memref<1x32xf32, #tpu.memory_space<vmem>>, vector<1x32xf32>
    %c0_138 = arith.constant 0 : index
    %c0_139 = arith.constant 0 : index
    %179 = vector.load %arg9[%c0_138, %c0_139] : memref<1x32xf32, #tpu.memory_space<vmem>>, vector<1x32xf32>
    %cst_140 = arith.constant dense<0.000000e+00> : vector<32xf32>
    %180 = vector.multi_reduction <add>, %177, %cst_140 [0] : vector<64x32xf32> to vector<32xf32>
    %181 = vector.shape_cast %180 : vector<32xf32> to vector<1x32xf32>
    %cst_141 = arith.constant 6.400000e+01 : f32
    %182 = vector.broadcast %cst_141 : f32 to vector<1x32xf32>
    %183 = arith.divf %181, %182 : vector<1x32xf32>
    %184 = vector.broadcast %183 : vector<1x32xf32> to vector<64x32xf32>
    %185 = arith.subf %177, %184 : vector<64x32xf32>
    %186 = arith.mulf %185, %185 : vector<64x32xf32>
    %cst_142 = arith.constant dense<0.000000e+00> : vector<32xf32>
    %187 = vector.multi_reduction <add>, %186, %cst_142 [0] : vector<64x32xf32> to vector<32xf32>
    %188 = vector.shape_cast %187 : vector<32xf32> to vector<1x32xf32>
    %cst_143 = arith.constant 6.400000e+01 : f32
    %189 = vector.broadcast %cst_143 : f32 to vector<1x32xf32>
    %190 = arith.divf %188, %189 : vector<1x32xf32>
    %cst_144 = arith.constant 9.99999974E-6 : f32
    %191 = vector.broadcast %cst_144 : f32 to vector<1x32xf32>
    %192 = arith.addf %190, %191 : vector<1x32xf32>
    %193 = math.rsqrt %192 : vector<1x32xf32>
    %194 = vector.broadcast %193 : vector<1x32xf32> to vector<64x32xf32>
    %195 = arith.mulf %185, %194 : vector<64x32xf32>
    %196 = vector.broadcast %178 : vector<1x32xf32> to vector<64x32xf32>
    %197 = arith.mulf %195, %196 : vector<64x32xf32>
    %198 = vector.broadcast %179 : vector<1x32xf32> to vector<64x32xf32>
    %199 = arith.addf %197, %198 : vector<64x32xf32>
    %cst_145 = arith.constant 5.000000e-01 : f32
    %200 = vector.broadcast %cst_145 : f32 to vector<64x32xf32>
    %201 = arith.mulf %200, %199 : vector<64x32xf32>
    %cst_146 = arith.constant 0.707106769 : f32
    %202 = vector.broadcast %cst_146 : f32 to vector<64x32xf32>
    %203 = arith.mulf %199, %202 : vector<64x32xf32>
    %204 = math.erf %203 : vector<64x32xf32>
    %cst_147 = arith.constant 1.000000e+00 : f32
    %205 = vector.broadcast %cst_147 : f32 to vector<64x32xf32>
    %206 = arith.addf %205, %204 : vector<64x32xf32>
    %207 = arith.mulf %201, %206 : vector<64x32xf32>
    %208 = vector.shape_cast %207 : vector<64x32xf32> to vector<1x64x32xf32>
    %c0_148 = arith.constant 0 : index
    %c0_149 = arith.constant 0 : index
    %c0_150 = arith.constant 0 : index
    %209 = vector.load %arg10[%c0_148, %c0_149, %c0_150] : memref<1x64x32xf32, #tpu.memory_space<vmem>>, vector<1x64x32xf32>
    tpu.vector_store %arg10[%c0_148, %c0_149, %c0_150], %208 {strides = array<i32>} : memref<1x64x32xf32, #tpu.memory_space<vmem>>, vector<1x64x32xf32>,
    return
  }
  func.func @transform_0(%arg0: i32) -> (i32, i32, i32, i32) {
    %c0_i32 = arith.constant 0 : i32
    %c0_i32_0 = arith.constant 0 : i32
    %c0_i32_1 = arith.constant 0 : i32
    %c0_i32_2 = arith.constant 0 : i32
    return %arg0, %c0_i32, %c0_i32_0, %c0_i32_1 : i32, i32, i32, i32
  }
  func.func @transform_1(%arg0: i32) -> (i32, i32, i32) {
    %c0_i32 = arith.constant 0 : i32
    %c0_i32_0 = arith.constant 0 : i32
    %c0_i32_1 = arith.constant 0 : i32
    %c0_i32_2 = arith.constant 0 : i32
    return %c0_i32, %c0_i32_0, %c0_i32_1 : i32, i32, i32
  }
  func.func @transform_2(%arg0: i32) -> (i32, i32) {
    %c0_i32 = arith.constant 0 : i32
    %c0_i32_0 = arith.constant 0 : i32
    %c0_i32_1 = arith.constant 0 : i32
    return %c0_i32, %c0_i32_0 : i32, i32
  }
  func.func @transform_3(%arg0: i32) -> (i32, i32) {
    %c0_i32 = arith.constant 0 : i32
    %c0_i32_0 = arith.constant 0 : i32
    %c0_i32_1 = arith.constant 0 : i32
    return %c0_i32, %c0_i32_0 : i32, i32
  }
  func.func @transform_4(%arg0: i32) -> (i32, i32) {
    %c0_i32 = arith.constant 0 : i32
    %c0_i32_0 = arith.constant 0 : i32
    %c0_i32_1 = arith.constant 0 : i32
    return %c0_i32, %c0_i32_0 : i32, i32
  }
  func.func @transform_5(%arg0: i32) -> (i32, i32, i32) {
    %c0_i32 = arith.constant 0 : i32
    %c0_i32_0 = arith.constant 0 : i32
    %c0_i32_1 = arith.constant 0 : i32
    %c0_i32_2 = arith.constant 0 : i32
    return %c0_i32, %c0_i32_0, %c0_i32_1 : i32, i32, i32
  }
  func.func @transform_6(%arg0: i32) -> (i32, i32) {
    %c0_i32 = arith.constant 0 : i32
    %c0_i32_0 = arith.constant 0 : i32
    %c0_i32_1 = arith.constant 0 : i32
    return %c0_i32, %c0_i32_0 : i32, i32
  }
  func.func @transform_7(%arg0: i32) -> (i32, i32) {
    %c0_i32 = arith.constant 0 : i32
    %c0_i32_0 = arith.constant 0 : i32
    %c0_i32_1 = arith.constant 0 : i32
    return %c0_i32, %c0_i32_0 : i32, i32
  }
  func.func @transform_8(%arg0: i32) -> (i32, i32) {
    %c0_i32 = arith.constant 0 : i32
    %c0_i32_0 = arith.constant 0 : i32
    %c0_i32_1 = arith.constant 0 : i32
    return %c0_i32, %c0_i32_0 : i32, i32
  }
  func.func @transform_9(%arg0: i32) -> (i32, i32, i32) {
    %c0_i32 = arith.constant 0 : i32
    %c0_i32_0 = arith.constant 0 : i32
    %c0_i32_1 = arith.constant 0 : i32
    return %arg0, %c0_i32, %c0_i32_0 : i32, i32, i32
  }
}

</mosaic_0001>

<bundles_post_ra>
// kernel: tpu_custom_call.1
= control target key start
LH: loop header
LB: loop body
LE: loop exit
PB: predicated region body
PF: predicated region fallthrough
CT: control target
= control target key end

     0   :  { %s3348_s30 = smov 0   ;;  %s4829_s0 = inlined_call_operand.vmem [shape: f32[2,16,8,8], index: 0, kind: input, shape index: {}]   ;;  %s4830_s1 = inlined_call_operand.vmem [shape: f32[9,4,32], index: 1, kind: input, shape index: {}]   ;;  %s4831_s2 = inlined_call_operand.vmem [shape: f32[1,32], index: 2, kind: input, shape index: {}]   ;;  %s4832_s3 = inlined_call_operand.vmem [shape: f32[1,32], index: 3, kind: input, shape index: {}]   ;;  %s4833_s4 = inlined_call_operand.vmem [shape: f32[1,32], index: 4, kind: input, shape index: {}]   ;;  %s4834_s5 = inlined_call_operand.vmem [shape: f32[9,32,32], index: 5, kind: input, shape index: {}]   ;;  %s4835_s6 = inlined_call_operand.vmem [shape: f32[1,32], index: 6, kind: input, shape index: {}]   ;;  %s4836_s7 = inlined_call_operand.vmem [shape: f32[1,32], index: 7, kind: input, shape index: {}]   ;;  %s4837_s8 = inlined_call_operand.vmem [shape: f32[1,32], index: 8, kind: input, shape index: {}]   ;;  %s4838_s9 = inlined_call_operand.vmem [shape: f32[2,64,32], index: 9, kind: output, shape index: {}]  }
   0x1 LB: > { %s3050_s10 = sadd.s32 4294967295, %s3294_s30   ;;  %p3054_p0 = scmp.ge.s32.totalorder %s3294_s30, 1  ;;  %s3294_s30 = sphi %s3348_s30, %s19_s30  }
   0x2   : > { %p287_p1 = scmp.lt.s32.totalorder %s3294_s30, 3 }
   0x4   : > { %p288_p2 = pnand %p3054_p0, %p287_p1 }
   0x6   : > { %291 = sbr.rel (%p288_p2) target bundleno = 1124 (0x464), region = 56 }
   0xb   : > { %p323_p3 = scmp.lt.s32.totalorder %s3050_s10, 1  ;;  %s3296_s15 = smov 124   ;;  %vm438_vm0 = vcmask 31744   ;;  %v492_v20 = vld [vmem:[%s4830_s1 + $0x4] sm:$0xf]  ;;  %vm540_vm1 = vcmask 1043456  }
   0xc   : > { %v491_v21 = vld [vmem:[%s4830_s1] sm:$0xf]  ;;  %3059 = vmatpush.msk.msra.mxu0 %vm540_vm1, %v492_v20  ;;  %3232 = vmatpush.msk.msra.mxu2 %vm540_vm1, %v492_v20  ;;  %vm460_vm2 = vcmask 24576   ;;  %v493_v27 = vld [vmem:[%s4830_s1 + $0x8] sm:$0xf]  ;;  %vm1256_vm3 = vcmask 261120  }
   0xd   : > { %s4882_s10 = smov (!%p323_p3, %s3050_s10), 1  ;;  %3068 = vmatpush.msk.msra.mxu1 %vm540_vm1, %v491_v21  ;;  %3233 = vmatpush.msk.msra.mxu3 %vm540_vm1, %v491_v21  ;;  %v494_v30 = vld [vmem:[%s4830_s1 + $0xc] sm:$0xf]  ;;  %v495_v32 = vld [vmem:[%s4830_s1 + $0x10] sm:$0xf] }
   0xe   : > { %s3230_s11 = sshll.u32 %s4882_s10, 7  ;;  %3077 = vmatpush.msk.msrb.mxu2 %vm540_vm1, %v493_v27  ;;  %3095 = vmatpush.msk.msrb.mxu0 %vm540_vm1, %v495_v32  ;;  %v497_v56 = vld [vmem:[%s4830_s1 + $0x18] sm:$0xf]  ;;  %s3231_s23 = sshll.u32 %s4882_s10, 6 }
   0xf   : > { %s3362_s14 = scalar_lea.vmem %s4829_s0, %s3230_s11  ;;  %3086 = vmatpush.msk.msrb.mxu3 %vm540_vm1, %v494_v30  ;;  %s4786_s10 = scalar_lea.vmem %s4838_s9, %s3231_s23 }
  0x10   : > { %v3365_v0 = vld [vmem:[%s3362_s14 + $0x40] sm:$0xff]  ;;  %v3368_v1 = vld [vmem:[%s3362_s14 + $0x30] sm:$0xff]  ;;  %v3377_v3 = vld [vmem:[%s3362_s14 + $0x48] sm:$0xff] }
  0x11   : > { %381 = vrot.lane.b32.xlu1 %v3365_v0, %s3296_s15  ;;  %377 = vrot.lane.b32.xlu0 %v3368_v1, %s3296_s15  ;;  %v335_v2 = vld [vmem:[%s3362_s14 + $0x10] sm:$0xff]  ;;  %v3380_v4 = vld [vmem:[%s3362_s14 + $0x38] sm:$0xff] }
  0x12   : > { %369 = vrot.lane.b32.xlu2 %v335_v2, %s3296_s15  ;;  %v336_v5 = vld [vmem:[%s3362_s14 + $0x18] sm:$0xff]  ;;  %v3392_v7 = vld [vmem:[%s3362_s14 + $0x50] sm:$0xff]  ;;  %v3395_v8 = vld [vmem:[%s3362_s14] sm:$0xff] }
  0x13   : > { %v3389_v6 = vld [vmem:[%s3362_s14 + $0x58] sm:$0xff]  ;;  %v3404_v9 = vld [vmem:[%s3362_s14 + $0x60] sm:$0xff]  ;;  %v3407_v10 = vld [vmem:[%s3362_s14 + $0x8] sm:$0xff] }
  0x14   : > { %v3410_v11 = vld [vmem:[%s3362_s14 + $0x68] sm:$0xff]  ;;  %v3422_v13 = vld [vmem:[%s3362_s14 + $0x20] sm:$0xff]  ;;  %v3429_v14 = vld [vmem:[%s3362_s14 + $0x78] sm:$0xff] }
  0x15   : > { %v3419_v12 = vld [vmem:[%s3362_s14 + $0x28] sm:$0xff]  ;;  %v3434_v15 = vld [vmem:[%s3362_s14 + $0x70] sm:$0xff] }
  0x19   : > { %383 = vrot.lane.b32.xlu1 %v3377_v3, %s3296_s15  ;;  %379 = vrot.lane.b32.xlu0 %v3380_v4, %s3296_s15 }
  0x1a   : > { %371 = vrot.lane.b32.xlu2 %v336_v5, %s3296_s15 }
  0x21   : > { %387 = vrot.lane.b32.xlu1 %v3389_v6, %s3296_s15  ;;  %385 = vrot.lane.b32.xlu0 %v3392_v7, %s3296_s15 }
  0x22   : > { %365 = vrot.lane.b32.xlu2 %v3395_v8, %s3296_s15 }
  0x29   : > { %389 = vrot.lane.b32.xlu1 %v3404_v9, %s3296_s15  ;;  %367 = vrot.lane.b32.xlu0 %v3407_v10, %s3296_s15 }
  0x2a   : > { %391 = vrot.lane.b32.xlu2 %v3410_v11, %s3296_s15 }
  0x31   : > { %375 = vrot.lane.b32.xlu1 %v3419_v12, %s3296_s15  ;;  %373 = vrot.lane.b32.xlu0 %v3422_v13, %s3296_s15 }
  0x32   : > { %393 = vrot.lane.b32.xlu2 %v3434_v15, %s3296_s15 }
  0x39   : > { %395 = vrot.lane.b32.xlu0 %v3429_v14, %s3296_s15 }
  0x6c   : > { %v370_v16 = vpop.permute.xlu2 %369 }
  0x6d   : > { %v415_v17 = vmax.f32 %v335_v2, %v370_v16 }
  0x74   : > { %v372_v18 = vpop.permute.xlu2 %371 }
  0x75   : > { %v416_v19 = vmax.f32 %v336_v5, %v372_v18 }
  0x77   : > { %v430_v22 = vmax.f32 %v415_v17, %v416_v19 }
  0x79   : > { %440 = vst.msk [vmem:[#allocation2 + $0x21] sm:$0xff] %vm438_vm0, %v430_v22 }
  0x7a   : > { %447 = vst.msk [vmem:[#allocation2 + $0x1] sm:$0xff] %vm438_vm0, %v430_v22 }
  0x7c   : > { %v366_v40 = vpop.permute.xlu2 %365 }
  0x7d   : > { %v413_v54 = vmax.f32 %v3395_v8, %v366_v40 }
  0x80   : > { %v452_v23 = vld [vmem:[#allocation2 + $0x22] sm:$0x1]  ;;  %v473_v24 = vld [vmem:[#allocation2 + $0x27] sm:$0x1] }
  0x81   : > { %v508_v25 = vld [vmem:[#allocation2 + $0x1] sm:$0xff]  ;;  %463 = vst.msk [vmem:[#allocation2 + $0x20] sm:$0x1] %vm460_vm2, %v452_v23 }
  0x82   : > { %v450_v26 = vld [vmem:[#allocation2 + $0x2] sm:$0x1]  ;;  %3060 = vmatmul.msk.f32.vlgmr.msra.gmra.mxu0 %vm438_vm0, %v508_v25  ;;  %v471_v31 = vld [vmem:[#allocation2 + $0x7] sm:$0x1]  ;;  %483 = vst.msk [vmem:[#allocation2 + $0x29] sm:$0x1] %vm460_vm2, %v473_v24 }
  0x83   : > { %v382_v28 = vpop.permute.xlu1 %381  ;;  %v378_v29 = vpop.permute.xlu0 %377  ;;  %461 = vst.msk [vmem:[#allocation2] sm:$0x1] %vm460_vm2, %v450_v26  ;;  %v3538_v23 = vld [vmem:[#allocation2 + $0x21] sm:$0xff] }
  0x84   : > { %481 = vst.msk [vmem:[#allocation2 + $0x9] sm:$0x1] %vm460_vm2, %v471_v31  ;;  %v421_v33 = vmax.f32 %v3365_v0, %v382_v28  ;;  %v419_v37 = vmax.f32 %v3368_v1, %v378_v29  ;;  %v392_v48 = vpop.permute.xlu2 %391 }
  0x85   : > { %v426_v55 = vmax.f32 %v3410_v11, %v392_v48 }
  0x88   : > { %v502_v29 = vld [vmem:[#allocation2 + $0x20] sm:$0xff] }
  0x8a   : > { %v500_v34 = vld [vmem:[#allocation2] sm:$0xff] }
  0x8b   : > { %v384_v35 = vpop.permute.xlu1 %383  ;;  %v380_v36 = vpop.permute.xlu0 %379  ;;  %3069 = vmatmul.msk.f32.vlgmr.msra.gmra.mxu1 %vm438_vm0, %v500_v34  ;;  %v653_v30 = vld [vmem:[#allocation2 + $0x2] sm:$0xff] }
  0x8c   : > { %v422_v38 = vmax.f32 %v3377_v3, %v384_v35  ;;  %v420_v39 = vmax.f32 %v3380_v4, %v380_v36  ;;  %v498_v3 = vld [vmem:[%s4830_s1 + $0x1c] sm:$0xf]  ;;  %v496_v4 = vld [vmem:[%s4830_s1 + $0x14] sm:$0xf] }
  0x8d   : > { %3104 = vmatpush.msk.msrb.mxu1 %vm540_vm1, %v496_v4 }
  0x8e   : > { %v433_v41 = vmax.f32 %v421_v33, %v422_v38  ;;  %v432_v42 = vmax.f32 %v419_v37, %v420_v39  ;;  %v394_v33 = vpop.permute.xlu2 %393  ;;  %v655_v39 = vld [vmem:[#allocation2 + $0x22] sm:$0xff] }
  0x8f   : > { %v427_v35 = vmax.f32 %v3434_v15, %v394_v33 }
  0x90   : > { %443 = vst.msk [vmem:[#allocation2 + $0x51] sm:$0xff] %vm438_vm0, %v433_v41 }
  0x91   : > { %442 = vst.msk [vmem:[#allocation2 + $0x41] sm:$0xff] %vm438_vm0, %v432_v42 }
  0x93   : > { %v388_v43 = vpop.permute.xlu1 %387  ;;  %v386_v44 = vpop.permute.xlu0 %385 }
  0x94   : > { %v424_v45 = vmax.f32 %v3389_v6, %v388_v43  ;;  %v423_v46 = vmax.f32 %v3392_v7, %v386_v44 }
  0x96   : > { %v434_v47 = vmax.f32 %v423_v46, %v424_v45 }
  0x97   : > { %v455_v49 = vld [vmem:[#allocation2 + $0x52] sm:$0x1]  ;;  %v476_v53 = vld [vmem:[#allocation2 + $0x57] sm:$0x1] }
  0x98   : > { %444 = vst.msk [vmem:[#allocation2 + $0x61] sm:$0xff] %vm438_vm0, %v434_v47  ;;  %v3477_v50 = vld [vmem:[#allocation2 + $0x41] sm:$0xff]  ;;  %v3494_v63 = vld [vmem:[#allocation2 + $0x51] sm:$0xff] }
  0x99   : > { %v454_v51 = vld [vmem:[#allocation2 + $0x42] sm:$0x1]  ;;  %v475_v52 = vld [vmem:[#allocation2 + $0x47] sm:$0x1]  ;;  %3064 = vmatmul.msk.f32.vlgmr.msra.gmra.mxu2 %vm438_vm0, %v3477_v50  ;;  %466 = vst.msk [vmem:[#allocation2 + $0x50] sm:$0x1] %vm460_vm2, %v455_v49 }
  0x9a   : > { %465 = vst.msk [vmem:[#allocation2 + $0x40] sm:$0x1] %vm460_vm2, %v454_v51  ;;  %3113 = vmatpush.msk.msra.mxu2 %vm540_vm1, %v497_v56 }
  0x9b   : > { %v390_v57 = vpop.permute.xlu1 %389  ;;  %v368_v58 = vpop.permute.xlu0 %367  ;;  %485 = vst.msk [vmem:[#allocation2 + $0x49] sm:$0x1] %vm460_vm2, %v475_v52 }
  0x9c   : > { %v425_v59 = vmax.f32 %v3404_v9, %v390_v57  ;;  %v414_v60 = vmax.f32 %v3407_v10, %v368_v58  ;;  %486 = vst.msk [vmem:[#allocation2 + $0x59] sm:$0x1] %vm460_vm2, %v476_v53 }
  0x9e   : > { %v429_v61 = vmax.f32 %v413_v54, %v414_v60  ;;  %v435_v62 = vmax.f32 %v425_v59, %v426_v55 }
  0x9f   : > { %v456_v1 = vld [vmem:[#allocation2 + $0x62] sm:$0x1]  ;;  %v477_v2 = vld [vmem:[#allocation2 + $0x67] sm:$0x1] }
  0xa0   : > { %439 = vst.msk [vmem:[#allocation2 + $0x11] sm:$0xff] %vm438_vm0, %v429_v61  ;;  %v3516_v9 = vld [vmem:[#allocation2 + $0x61] sm:$0xff]  ;;  %v3519_v17 = vld [vmem:[#allocation2 + $0x50] sm:$0xff] }
  0xa1   : > { %v3496_v0 = vld [vmem:[#allocation2 + $0x40] sm:$0xff]  ;;  %445 = vst.msk [vmem:[#allocation2 + $0x71] sm:$0xff] %vm438_vm0, %v435_v62  ;;  %3065 = vmatmul.msk.f32.gmra.mxu2 %vm438_vm0, %v3494_v63 }
  0xa2   : > { %3073 = vmatmul.msk.f32.vlgmr.msra.gmra.mxu3 %vm438_vm0, %v3496_v0  ;;  %449 = vst.msk [vmem:[#allocation2 + $0x91] sm:$0xff] %vm438_vm0, %v435_v62  ;;  %v657_v41 = vld [vmem:[#allocation2 + $0x42] sm:$0xff] }
  0xa3   : > { %v376_v5 = vpop.permute.xlu1 %375  ;;  %v374_v6 = vpop.permute.xlu0 %373  ;;  %467 = vst.msk [vmem:[#allocation2 + $0x60] sm:$0x1] %vm460_vm2, %v456_v1  ;;  %3122 = vmatpush.msk.msra.mxu3 %vm540_vm1, %v498_v3  ;;  %v658_v42 = vld [vmem:[#allocation2 + $0x52] sm:$0xff] }
  0xa4   : > { %v418_v7 = vmax.f32 %v3419_v12, %v376_v5  ;;  %v417_v8 = vmax.f32 %v3422_v13, %v374_v6  ;;  %487 = vst.msk [vmem:[#allocation2 + $0x69] sm:$0x1] %vm460_vm2, %v477_v2  ;;  %v499_v13 = vld [vmem:[%s4830_s1 + $0x20] sm:$0xf] }
  0xa5   : > { %3131 = vmatpush.msk.msra.mxu0 %vm540_vm1, %v499_v13 }
  0xa6   : > { %v431_v10 = vmax.f32 %v417_v8, %v418_v7 }
  0xa7   : > { %v509_v11 = vld [vmem:[#allocation2 + $0x11] sm:$0xff] }
  0xa8   : > { %v451_v16 = vld [vmem:[#allocation2 + $0x12] sm:$0x1]  ;;  %3061 = vmatmul.msk.f32.gmra.mxu0 %vm438_vm0, %v509_v11  ;;  %441 = vst.msk [vmem:[#allocation2 + $0x31] sm:$0xff] %vm438_vm0, %v431_v10  ;;  %v472_v19 = vld [vmem:[#allocation2 + $0x17] sm:$0x1] }
  0xa9   : > { %v457_v18 = vld [vmem:[#allocation2 + $0x72] sm:$0x1]  ;;  %3066 = vmatmul.msk.f32.gmra.mxu2 %vm438_vm0, %v3516_v9  ;;  %462 = vst.msk [vmem:[#allocation2 + $0x10] sm:$0x1] %vm460_vm2, %v451_v16  ;;  %v478_v12 = vld [vmem:[#allocation2 + $0x77] sm:$0x1] }
  0xaa   : > { %3074 = vmatmul.msk.f32.gmra.mxu3 %vm438_vm0, %v3519_v17  ;;  %468 = vst.msk [vmem:[#allocation2 + $0x70] sm:$0x1] %vm460_vm2, %v457_v18  ;;  %v459_v20 = vld [vmem:[#allocation2 + $0x92] sm:$0x1]  ;;  %v480_v21 = vld [vmem:[#allocation2 + $0x97] sm:$0x1] }
  0xab   : > { %482 = vst.msk [vmem:[#allocation2 + $0x19] sm:$0x1] %vm460_vm2, %v472_v19  ;;  %v3535_v22 = vld [vmem:[#allocation2 + $0x71] sm:$0xff]  ;;  %v3546_v27 = vld [vmem:[#allocation2 + $0x60] sm:$0xff]  ;;  %v396_v32 = vpop.permute.xlu0 %395 }
  0xac   : > { %488 = vst.msk [vmem:[#allocation2 + $0x79] sm:$0x1] %vm460_vm2, %v478_v12  ;;  %v428_v34 = vmax.f32 %v3429_v14, %v396_v32  ;;  %v659_v43 = vld [vmem:[#allocation2 + $0x62] sm:$0xff]  ;;  %v1081_v61 = vld [vmem:[#allocation2 + $0x91] sm:$0xff] }
  0xad   : > { %470 = vst.msk [vmem:[#allocation2 + $0x90] sm:$0x1] %vm460_vm2, %v459_v20 }
  0xae   : > { %490 = vst.msk [vmem:[#allocation2 + $0x99] sm:$0x1] %vm460_vm2, %v480_v21  ;;  %v436_v36 = vmax.f32 %v427_v35, %v428_v34 }
  0xaf   : > { %v453_v24 = vld [vmem:[#allocation2 + $0x32] sm:$0x1]  ;;  %v474_v25 = vld [vmem:[#allocation2 + $0x37] sm:$0x1] }
  0xb0   : > { %3062 = vmatmul.msk.f32.gmra.mxu0 %vm438_vm0, %v3538_v23  ;;  %v501_v26 = vld [vmem:[#allocation2 + $0x10] sm:$0xff]  ;;  %464 = vst.msk [vmem:[#allocation2 + $0x30] sm:$0x1] %vm460_vm2, %v453_v24 }
  0xb1   : > { %3067 = vmatmul.msk.f32.gmra.mxu2 %vm438_vm0, %v3535_v22  ;;  %3070 = vmatmul.msk.f32.gmra.mxu1 %vm438_vm0, %v501_v26  ;;  %484 = vst.msk [vmem:[#allocation2 + $0x39] sm:$0x1] %vm460_vm2, %v474_v25  ;;  %v3551_v28 = vld [vmem:[#allocation2 + $0x31] sm:$0xff] }
  0xb2   : > { %3075 = vmatmul.msk.f32.gmra.mxu3 %vm438_vm0, %v3546_v27  ;;  %v3556_v31 = vld [vmem:[#allocation2 + $0x70] sm:$0xff]  ;;  %446 = vst.msk [vmem:[#allocation2 + $0x81] sm:$0xff] %vm438_vm0, %v436_v36 }
  0xb3   : > { %v654_v38 = vld [vmem:[#allocation2 + $0x12] sm:$0xff] }
  0xb4   : > { %v660_v44 = vld [vmem:[#allocation2 + $0x72] sm:$0xff] }
  0xb5   : > { %v997_v56 = vld [vmem:[#allocation2 + $0x90] sm:$0xff] }
  0xb6   : > { %v1165_v60 = vld [vmem:[#allocation2 + $0x92] sm:$0xff] }
  0xb7   : > { %v503_v37 = vld [vmem:[#allocation2 + $0x30] sm:$0xff] }
  0xb8   : > { %3063 = vmatmul.msk.f32.gmra.mxu0 %vm438_vm0, %v3551_v28  ;;  %v656_v40 = vld [vmem:[#allocation2 + $0x32] sm:$0xff] }
  0xb9   : > { %3071 = vmatmul.msk.f32.gmra.mxu1 %vm438_vm0, %v502_v29  ;;  %3078 = vmatmul.msk.f32.vlgmr.msrb.gmra.mxu2 %vm438_vm0, %v653_v30  ;;  %v458_v14 = vld [vmem:[#allocation2 + $0x82] sm:$0x1]  ;;  %v479_v15 = vld [vmem:[#allocation2 + $0x87] sm:$0x1] }
  0xba   : > { %3076 = vmatmul.msk.f32.gmra.mxu3 %vm438_vm0, %v3556_v31  ;;  %469 = vst.msk [vmem:[#allocation2 + $0x80] sm:$0x1] %vm460_vm2, %v458_v14  ;;  %v828_v45 = vld [vmem:[#allocation2 + $0x81] sm:$0xff] }
  0xbb   : > { %489 = vst.msk [vmem:[#allocation2 + $0x89] sm:$0x1] %vm460_vm2, %v479_v15 }
  0xc0   : > { %3096 = vmatmul.msk.f32.vlgmr.msrb.gmra.mxu0 %vm438_vm0, %v509_v11 }
  0xc1   : > { %3072 = vmatmul.msk.f32.gmra.mxu1 %vm438_vm0, %v503_v37  ;;  %3079 = vmatmul.msk.f32.gmra.mxu2 %vm438_vm0, %v654_v38  ;;  %v744_v46 = vld [vmem:[#allocation2 + $0x80] sm:$0xff] }
  0xc2   : > { %3087 = vmatmul.msk.f32.vlgmr.msrb.gmra.mxu3 %vm438_vm0, %v501_v26  ;;  %v912_v47 = vld [vmem:[#allocation2 + $0x82] sm:$0xff] }
  0xc8   : > { %3097 = vmatmul.msk.f32.gmra.mxu0 %vm438_vm0, %v3538_v23 }
  0xc9   : > { %3080 = vmatmul.msk.f32.gmra.mxu2 %vm438_vm0, %v655_v39  ;;  %3105 = vmatmul.msk.f32.vlgmr.msrb.gmra.mxu1 %vm438_vm0, %v654_v38 }
  0xca   : > { %3088 = vmatmul.msk.f32.gmra.mxu3 %vm438_vm0, %v502_v29 }
  0xd0   : > { %3098 = vmatmul.msk.f32.gmra.mxu0 %vm438_vm0, %v3551_v28 }
  0xd1   : > { %3081 = vmatmul.msk.f32.gmra.mxu2 %vm438_vm0, %v656_v40  ;;  %3106 = vmatmul.msk.f32.gmra.mxu1 %vm438_vm0, %v655_v39 }
  0xd2   : > { %3089 = vmatmul.msk.f32.gmra.mxu3 %vm438_vm0, %v503_v37 }
  0xd8   : > { %3099 = vmatmul.msk.f32.gmra.mxu0 %vm438_vm0, %v3477_v50 }
  0xd9   : > { %3082 = vmatmul.msk.f32.gmra.mxu2 %vm438_vm0, %v657_v41  ;;  %3107 = vmatmul.msk.f32.gmra.mxu1 %vm438_vm0, %v656_v40 }
  0xda   : > { %3090 = vmatmul.msk.f32.gmra.mxu3 %vm438_vm0, %v3496_v0 }
  0xe0   : > { %3100 = vmatmul.msk.f32.gmra.mxu0 %vm438_vm0, %v3494_v63 }
  0xe1   : > { %3083 = vmatmul.msk.f32.gmra.mxu2 %vm438_vm0, %v658_v42  ;;  %3108 = vmatmul.msk.f32.gmra.mxu1 %vm438_vm0, %v657_v41 }
  0xe2   : > { %3091 = vmatmul.msk.f32.gmra.mxu3 %vm438_vm0, %v3519_v17 }
  0xe8   : > { %3101 = vmatmul.msk.f32.gmra.mxu0 %vm438_vm0, %v3516_v9 }
  0xe9   : > { %3084 = vmatmul.msk.f32.gmra.mxu2 %vm438_vm0, %v659_v43  ;;  %3109 = vmatmul.msk.f32.gmra.mxu1 %vm438_vm0, %v658_v42 }
  0xea   : > { %3092 = vmatmul.msk.f32.gmra.mxu3 %vm438_vm0, %v3546_v27 }
  0xf0   : > { %3102 = vmatmul.msk.f32.gmra.mxu0 %vm438_vm0, %v3535_v22 }
  0xf1   : > { %3085 = vmatmul.msk.f32.gmra.mxu2 %vm438_vm0, %v660_v44  ;;  %3110 = vmatmul.msk.f32.gmra.mxu1 %vm438_vm0, %v659_v43 }
  0xf2   : > { %3093 = vmatmul.msk.f32.gmra.mxu3 %vm438_vm0, %v3556_v31 }
  0xf8   : > { %3103 = vmatmul.msk.f32.gmra.mxu0 %vm438_vm0, %v828_v45 }
  0xf9   : > { %3111 = vmatmul.msk.f32.gmra.mxu1 %vm438_vm0, %v660_v44  ;;  %3114 = vmatmul.msk.f32.vlgmr.msra.gmra.mxu2 %vm438_vm0, %v502_v29 }
  0xfa   : > { %3094 = vmatmul.msk.f32.gmra.mxu3 %vm438_vm0, %v744_v46 }
  0xff   : > { %v3630_v49 = vpop.f32.mrf.mxu0 }
 0x100   : > { %3132 = vmatmul.msk.f32.vlgmr.msra.gmra.mxu0 %vm438_vm0, %v655_v39 }
 0x101   : > { %3112 = vmatmul.msk.f32.gmra.mxu1 %vm438_vm0, %v912_v47  ;;  %3115 = vmatmul.msk.f32.gmra.mxu2 %vm438_vm0, %v503_v37 }
 0x102   : > { %3123 = vmatmul.msk.f32.vlgmr.msra.gmra.mxu3 %vm438_vm0, %v3538_v23 }
 0x108   : > { %3133 = vmatmul.msk.f32.gmra.mxu0 %vm438_vm0, %v656_v40  ;;  %v629_v4 = vpop.f32.mrf.mxu1 }
 0x109   : > { %3116 = vmatmul.msk.f32.gmra.mxu2 %vm438_vm0, %v3496_v0 }
 0x10a   : > { %3124 = vmatmul.msk.f32.gmra.mxu3 %vm438_vm0, %v3551_v28 }
 0x110   : > { %3134 = vmatmul.msk.f32.gmra.mxu0 %vm438_vm0, %v657_v41 }
 0x111   : > { %3117 = vmatmul.msk.f32.gmra.mxu2 %vm438_vm0, %v3519_v17 }
 0x112   : > { %3125 = vmatmul.msk.f32.gmra.mxu3 %vm438_vm0, %v3477_v50 }
 0x118   : > { %3135 = vmatmul.msk.f32.gmra.mxu0 %vm438_vm0, %v658_v42 }
 0x119   : > { %3118 = vmatmul.msk.f32.gmra.mxu2 %vm438_vm0, %v3546_v27 }
 0x11a   : > { %3126 = vmatmul.msk.f32.gmra.mxu3 %vm438_vm0, %v3494_v63 }
 0x11c   : > { %v3628_v48 = vpop.f32.mrf.mxu2 }
 0x120   : > { %3136 = vmatmul.msk.f32.gmra.mxu0 %vm438_vm0, %v659_v43 }
 0x121   : > { %3119 = vmatmul.msk.f32.gmra.mxu2 %vm438_vm0, %v3556_v31 }
 0x122   : > { %3127 = vmatmul.msk.f32.gmra.mxu3 %vm438_vm0, %v3516_v9 }
 0x124   : > { %v3637_v50 = vpop.f32.mrf.mxu2 }
 0x125   : > { %v3639_v51 = vpop.f32.mrf.mxu3  ;;  %v564_v52 = vpop.f32.mrf.mxu0 }
 0x128   : > { %3137 = vmatmul.msk.f32.gmra.mxu0 %vm438_vm0, %v660_v44  ;;  %v630_v44 = vadd.f32 %v629_v4, %v3630_v49 }
 0x129   : > { %3120 = vmatmul.msk.f32.gmra.mxu2 %vm438_vm0, %v744_v46 }
 0x12a   : > { %3128 = vmatmul.msk.f32.gmra.mxu3 %vm438_vm0, %v3535_v22 }
 0x12c   : > { %v3645_v53 = vpop.f32.mrf.mxu2 }
 0x12d   : > { %v3647_v54 = vpop.f32.mrf.mxu3  ;;  %v567_v55 = vpop.f32.mrf.mxu0 }
 0x12e   : > { %v632_v8 = vpop.f32.mrf.mxu1 }
 0x12f   : > { %v633_v42 = vadd.f32 %v632_v8, %v564_v52  ;;  %v645_v52 = vadd.f32 %v3647_v54, %v3637_v50 }
 0x130   : > { %3138 = vmatmul.msk.f32.gmra.mxu0 %vm438_vm0, %v912_v47 }
 0x131   : > { %3121 = vmatmul.msk.f32.gmra.mxu2 %vm438_vm0, %v997_v56 }
 0x132   : > { %3129 = vmatmul.msk.f32.gmra.mxu3 %vm438_vm0, %v828_v45 }
 0x134   : > { %v3652_v57 = vpop.f32.mrf.mxu2 }
 0x135   : > { %v3654_v58 = vpop.f32.mrf.mxu3  ;;  %v570_v59 = vpop.f32.mrf.mxu0 }
 0x136   : > { %v635_v19 = vpop.f32.mrf.mxu1 }
 0x137   : > { %v636_v45 = vadd.f32 %v635_v19, %v567_v55 }
 0x138   : > { %3139 = vmatmul.msk.f32.gmra.mxu0 %vm438_vm0, %v1165_v60 }
 0x13a   : > { %3130 = vmatmul.msk.f32.gmra.mxu3 %vm438_vm0, %v1081_v61 }
 0x13c   : > { %v705_v62 = vpop.f32.mrf.mxu2 }
 0x13d   : > { %v3658_v63 = vpop.f32.mrf.mxu3  ;;  %v873_v0 = vpop.f32.mrf.mxu0  ;;  %v729_v56 = vadd.f32 %v705_v62, %v630_v44 }
 0x13e   : > { %v638_v21 = vpop.f32.mrf.mxu1 }
 0x13f   : > { %v639_v61 = vadd.f32 %v638_v21, %v570_v59 }
 0x144   : > { %v708_v1 = vpop.f32.mrf.mxu2 }
 0x145   : > { %v789_v2 = vpop.f32.mrf.mxu3  ;;  %v876_v3 = vpop.f32.mrf.mxu0  ;;  %v730_v46 = vadd.f32 %v708_v1, %v633_v42 }
 0x146   : > { %v957_v25 = vpop.f32.mrf.mxu1 }
 0x14c   : > { %v711_v5 = vpop.f32.mrf.mxu2 }
 0x14d   : > { %v792_v6 = vpop.f32.mrf.mxu3  ;;  %v879_v7 = vpop.f32.mrf.mxu0 }
 0x14e   : > { %v960_v29 = vpop.f32.mrf.mxu1 }
 0x154   : > { %v714_v9 = vpop.f32.mrf.mxu2 }
 0x155   : > { %v795_v10 = vpop.f32.mrf.mxu3  ;;  %v882_v11 = vpop.f32.mrf.mxu0 }
 0x156   : > { %v963_v36 = vpop.f32.mrf.mxu1 }
 0x15c   : > { %v717_v16 = vpop.f32.mrf.mxu2 }
 0x15d   : > { %v798_v17 = vpop.f32.mrf.mxu3  ;;  %v885_v18 = vpop.f32.mrf.mxu0 }
 0x15e   : > { %v966_v14 = vpop.f32.mrf.mxu1 }
 0x164   : > { %v720_v12 = vpop.f32.mrf.mxu2 }
 0x165   : > { %v801_v13 = vpop.f32.mrf.mxu3  ;;  %v888_v20 = vpop.f32.mrf.mxu0  ;;  %v734_v4 = vadd.f32 %v720_v12, %v645_v52 }
 0x166   : > { %v969_v43 = vpop.f32.mrf.mxu1 }
 0x16c   : > { %v723_v22 = vpop.f32.mrf.mxu2 }
 0x16d   : > { %v804_v23 = vpop.f32.mrf.mxu3  ;;  %v3660_v24 = vpop.f32.mrf.mxu0 }
 0x16e   : > { %4839 = vst [vmem:[#allocation4_spill] sm:$0xff] %v3660_v24  ;;  %v972_v59 = vpop.f32.mrf.mxu1 }
 0x174   : > { %v3662_v26 = vpop.f32.mrf.mxu2 }
 0x175   : > { %4840 = vst [vmem:[#allocation5_spill] sm:$0xff] %v3662_v26  ;;  %v807_v27 = vpop.f32.mrf.mxu3  ;;  %v3664_v28 = vpop.f32.mrf.mxu0  ;;  %v732_v26 = vadd.f32 %v714_v9, %v639_v61 }
 0x176   : > { %4841 = vst [vmem:[#allocation6_spill] sm:$0xff] %v3664_v28  ;;  %v731_v28 = vadd.f32 %v711_v5, %v636_v45  ;;  %v818_v5 = vadd.f32 %v804_v23, %v734_v4 }
 0x177   : > { %v816_v55 = vadd.f32 %v798_v17, %v732_v26 }
 0x178   : > { %v815_v24 = vadd.f32 %v795_v10, %v731_v28 }
 0x179   : > { %v900_v9 = vadd.f32 %v882_v11, %v816_v55 }
 0x17a   : > { %v899_v62 = vadd.f32 %v879_v7, %v815_v24 }
 0x17c   : > { %v1042_v30 = vpop.f32.mrf.mxu2  ;;  %v983_v21 = vadd.f32 %v963_v36, %v899_v62  ;;  %v3297_v62 = vmov 64.0  }
 0x17d   : > { %v3666_v31 = vpop.f32.mrf.mxu3  ;;  %v3668_v32 = vpop.f32.mrf.mxu0  ;;  %3250 = vrcp.f32 %v3297_v62 }
 0x17e   : > { %4842 = vst [vmem:[#allocation7_spill] sm:$0xff] %v3666_v31  ;;  %v814_v31 = vadd.f32 %v792_v6, %v730_v46 }
 0x17f   : > { %4843 = vst [vmem:[#allocation8_spill] sm:$0xff] %v3668_v32  ;;  %v813_v32 = vadd.f32 %v789_v2, %v729_v56  ;;  %v4852_v56 = vld [vmem:[#allocation6_spill] sm:$0xff] }
 0x181   : > { %v897_v1 = vadd.f32 %v873_v0, %v813_v32  ;;  %v984_v0 = vadd.f32 %v966_v14, %v900_v9 }
 0x183   : > { %v981_v10 = vadd.f32 %v957_v25, %v897_v1  ;;  %v4846_v25 = vld [vmem:[#allocation4_spill] sm:$0xff] }
 0x184   : > { %v1045_v33 = vpop.f32.mrf.mxu2 }
 0x185   : > { %v1126_v34 = vpop.f32.mrf.mxu3  ;;  %v1213_v35 = vpop.f32.mrf.mxu0  ;;  %v1066_v17 = vadd.f32 %v1042_v30, %v981_v10  ;;  %v4847_v30 = vld [vmem:[#allocation5_spill] sm:$0xff]  ;;  %v4850_v14 = vld [vmem:[#allocation7_spill] sm:$0xff] }
 0x187   : > { %v1150_v24 = vadd.f32 %v1126_v34, %v1066_v17  ;;  %v3244_v34 = vld [vmem:[%s4831_s2] ss:$0 sm:$0xff] }
 0x18c   : > { %v1048_v37 = vpop.f32.mrf.mxu2 }
 0x18d   : > { %v1129_v38 = vpop.f32.mrf.mxu3  ;;  %v3670_v39 = vpop.f32.mrf.mxu0  ;;  %v1068_v7 = vadd.f32 %v1048_v37, %v983_v21 }
 0x18e   : > { %4844 = vst [vmem:[#allocation9_spill] sm:$0xff] %v3670_v39  ;;  %v642_v39 = vadd.f32 %v3639_v51, %v3628_v48  ;;  %v648_v48 = vadd.f32 %v3654_v58, %v3645_v53  ;;  %v651_v53 = vadd.f32 %v3658_v63, %v3652_v57 }
 0x190   : > { %v733_v49 = vadd.f32 %v717_v16, %v642_v39  ;;  %v735_v54 = vadd.f32 %v723_v22, %v648_v48  ;;  %v902_v16 = vadd.f32 %v888_v20, %v818_v5  ;;  %v736_v32 = vadd.f32 %v4847_v30, %v651_v53 }
 0x192   : > { %v817_v19 = vadd.f32 %v801_v13, %v733_v49  ;;  %v819_v12 = vadd.f32 %v807_v27, %v735_v54  ;;  %v986_v58 = vadd.f32 %v972_v59, %v902_v16  ;;  %v975_v27 = vpop.f32.mrf.mxu1  ;;  %v3251_v16 = vpop.eup %3250 }
 0x193   : > { %vm1283_vm4 = vweird.f32 %v3251_v16 }
 0x194   : > { %v1051_v15 = vpop.f32.mrf.mxu2  ;;  %v901_v50 = vadd.f32 %v885_v18, %v817_v19  ;;  %v903_v18 = vadd.f32 %v4846_v25, %v819_v12 }
 0x195   : > { %v1132_v40 = vpop.f32.mrf.mxu3  ;;  %v3672_v41 = vpop.f32.mrf.mxu0  ;;  %v1069_v28 = vadd.f32 %v1051_v15, %v984_v0  ;;  %v820_v15 = vadd.f32 %v4850_v14, %v736_v32 }
 0x196   : > { %4845 = vst [vmem:[#allocation10_spill] sm:$0xff] %v3672_v41  ;;  %v898_v41 = vadd.f32 %v876_v3, %v814_v31  ;;  %v985_v26 = vadd.f32 %v969_v43, %v901_v50  ;;  %v1152_v31 = vadd.f32 %v1132_v40, %v1068_v7  ;;  %v987_v40 = vadd.f32 %v975_v27, %v903_v18 }
 0x198   : > { %v982_v51 = vadd.f32 %v960_v29, %v898_v41 }
 0x19a   : > { %v1067_v3 = vadd.f32 %v1045_v33, %v982_v51  ;;  %v4848_v33 = vld [vmem:[#allocation8_spill] sm:$0xff] }
 0x19b   : > { %v1234_v36 = vadd.f32 %v4848_v33, %v1150_v24 }
 0x19c   : > { %v1054_v47 = vpop.f32.mrf.mxu2  ;;  %v1151_v13 = vadd.f32 %v1129_v38, %v1067_v3  ;;  %v4849_v38 = vld [vmem:[#allocation9_spill] sm:$0xff] }
 0x19d   : > { %v1135_v60 = vpop.f32.mrf.mxu3  ;;  %v1222_v8 = vpop.f32.mrf.mxu0  ;;  %v1070_v29 = vadd.f32 %v1054_v47, %v985_v26  ;;  %v1236_v39 = vadd.f32 %v4849_v38, %v1152_v31  ;;  %v4851_v41 = vld [vmem:[#allocation10_spill] sm:$0xff]  ;;  %v1246_v44 = vadd.f32 %v3244_v34, %v1234_v36 }
 0x19e   : > { %v1235_v22 = vadd.f32 %v1213_v35, %v1151_v13  ;;  %v1153_v20 = vadd.f32 %v1135_v60, %v1069_v28  ;;  %v904_v60 = vadd.f32 %v4852_v56, %v820_v15  ;;  %v1279_v28 = vmul.f32 64.0, %v3251_v16 }
 0x19f   : > { %v1248_v45 = vadd.f32 %v3244_v34, %v1236_v39  ;;  %v1257_v19 = vsel %vm1256_vm3, %v1246_v44, 0.0 }
 0x1a0   : > { %v1247_v35 = vadd.f32 %v3244_v34, %v1235_v22  ;;  %v1237_v42 = vadd.f32 %v4851_v41, %v1153_v20  ;;  %v1280_v25 = vsub.f32 1.0, %v1279_v28 }
 0x1a1   : > { %v1260_v59 = vsel %vm1256_vm3, %v1248_v45, 0.0 }
 0x1a2   : > { %v1258_v49 = vsel %vm1256_vm3, %v1247_v35, 0.0  ;;  %v1249_v55 = vadd.f32 %v3244_v34, %v1237_v42 }
 0x1a4   : > { %v1057_v6 = vpop.f32.mrf.mxu2  ;;  %v1262_v9 = vsel %vm1256_vm3, %v1249_v55, 0.0 }
 0x1a5   : > { %v1138_v2 = vpop.f32.mrf.mxu3  ;;  %v1225_v23 = vpop.f32.mrf.mxu0  ;;  %v1071_v57 = vadd.f32 %v1057_v6, %v986_v58 }
 0x1a6   : > { %v1154_v63 = vadd.f32 %v1138_v2, %v1070_v29  ;;  %v1259_v2 = vadd.f32 %v1258_v49, %v1257_v19  ;;  %v1281_v29 = vmul.f32 %v3251_v16, %v1280_v25 }
 0x1a8   : > { %v1238_v46 = vadd.f32 %v1222_v8, %v1154_v63  ;;  %v978_v8 = vpop.f32.mrf.mxu1  ;;  %v1261_v21 = vadd.f32 %v1260_v59, %v1259_v2  ;;  %v1282_v32 = vadd.f32 %v3251_v16, %v1281_v29 }
 0x1a9   : > { %v988_v51 = vadd.f32 %v978_v8, %v904_v60 }
 0x1aa   : > { %v1250_v5 = vadd.f32 %v3244_v34, %v1238_v46  ;;  %v1263_v17 = vadd.f32 %v1262_v9, %v1261_v21  ;;  %v3701_v36 = vsel %vm1283_vm4, %v3251_v16, %v1282_v32 }
 0x1ac   : > { %v1060_v37 = vpop.f32.mrf.mxu2  ;;  %v1264_v50 = vsel %vm1256_vm3, %v1250_v5, 0.0 }
 0x1ad   : > { %v1141_v11 = vpop.f32.mrf.mxu3  ;;  %v1072_v47 = vadd.f32 %v1060_v37, %v987_v40  ;;  %v1228_v61 = vpop.f32.mrf.mxu0  ;;  %v1265_v13 = vadd.f32 %v1264_v50, %v1263_v17 }
 0x1ae   : > { %v1155_v43 = vadd.f32 %v1141_v11, %v1071_v57 }
 0x1b0   : > { %v1239_v1 = vadd.f32 %v1225_v23, %v1155_v43 }
 0x1b2   : > { %v1251_v10 = vadd.f32 %v3244_v34, %v1239_v1 }
 0x1b4   : > { %v1063_v48 = vpop.f32.mrf.mxu2  ;;  %v1266_v12 = vsel %vm1256_vm3, %v1251_v10, 0.0 }
 0x1b5   : > { %v1144_v52 = vpop.f32.mrf.mxu3  ;;  %v1073_v54 = vadd.f32 %v1063_v48, %v988_v51  ;;  %v1231_v24 = vpop.f32.mrf.mxu0  ;;  %v1267_v31 = vadd.f32 %v1266_v12, %v1265_v13 }
 0x1b6   : > { %v1156_v4 = vadd.f32 %v1144_v52, %v1072_v47 }
 0x1b8   : > { %v1240_v6 = vadd.f32 %v1228_v61, %v1156_v4 }
 0x1ba   : > { %v1252_v3 = vadd.f32 %v3244_v34, %v1240_v6 }
 0x1bc   : > { %v1268_v23 = vsel %vm1256_vm3, %v1252_v3, 0.0 }
 0x1bd   : > { %v1147_v0 = vpop.f32.mrf.mxu3  ;;  %v1269_v58 = vadd.f32 %v1268_v23, %v1267_v31  ;;  %v3728_v23 = vld [vmem:[%s4832_s3] ss:$0 sm:$0xff] }
 0x1be   : > { %v1157_v7 = vadd.f32 %v1147_v0, %v1073_v54 }
 0x1c0   : > { %v1241_v26 = vadd.f32 %v1231_v24, %v1157_v7 }
 0x1c2   : > { %v1253_v53 = vadd.f32 %v3244_v34, %v1241_v26 }
 0x1c4   : > { %v1270_v11 = vsel %vm1256_vm3, %v1253_v53, 0.0 }
 0x1c5   : > { %v1271_v18 = vadd.f32 %v1270_v11, %v1269_v58  ;;  %v3733_v11 = vld [vmem:[%s4833_s4] ss:$0 sm:$0xff] }
 0x1c7   : > { %v1272_v22 = vrot.slane %v1271_v18, 4 }
 0x1c9   : > { %v1273_v20 = vadd.f32 %v1272_v22, %v1271_v18 }
 0x1cb   : > { %v1274_v30 = vrot.slane %v1273_v20, 2 }
 0x1cd   : > { %v1275_v27 = vadd.f32 %v1274_v30, %v1273_v20 }
 0x1cf   : > { %v1276_v33 = vrot.slane %v1275_v27, 1 }
 0x1d1   : > { %v1277_v37 = vadd.f32 %v1276_v33, %v1275_v27 }
 0x1d3   : > { %v1285_v38 = vmul.f32 %v3701_v36, %v1277_v37 }
 0x1d5   : > { %v1286_v39 = vsub.f32 %v1246_v44, %v1285_v38  ;;  %v1287_v34 = vsub.f32 %v1247_v35, %v1285_v38  ;;  %v1288_v57 = vsub.f32 %v1248_v45, %v1285_v38  ;;  %v1289_v63 = vsub.f32 %v1249_v55, %v1285_v38 }
 0x1d6   : > { %v1290_v14 = vsub.f32 %v1250_v5, %v1285_v38  ;;  %v3704_v42 = vsub.f32 %v1251_v10, %v1285_v38  ;;  %v3708_v60 = vsub.f32 %v1252_v3, %v1285_v38  ;;  %v3711_v45 = vsub.f32 %v1253_v53, %v1285_v38 }
 0x1d7   : > { %v1294_v15 = vmul.f32 %v1286_v39, %v1286_v39  ;;  %v1295_v40 = vmul.f32 %v1287_v34, %v1287_v34  ;;  %v1296_v41 = vmul.f32 %v1288_v57, %v1288_v57  ;;  %v1297_v43 = vmul.f32 %v1289_v63, %v1289_v63 }
 0x1d8   : > { %v1298_v61 = vmul.f32 %v1290_v14, %v1290_v14  ;;  %v1299_v52 = vmul.f32 %v3704_v42, %v3704_v42  ;;  %v1300_v1 = vmul.f32 %v3708_v60, %v3708_v60  ;;  %v1301_v19 = vmul.f32 %v3711_v45, %v3711_v45 }
 0x1d9   : > { %v1302_v46 = vsel %vm1256_vm3, %v1294_v15, 0.0  ;;  %v1303_v47 = vsel %vm1256_vm3, %v1295_v40, 0.0  ;;  %v1305_v44 = vsel %vm1256_vm3, %v1296_v41, 0.0  ;;  %v1307_v49 = vsel %vm1256_vm3, %v1297_v43, 0.0 }
 0x1da   : > { %v1304_v56 = vadd.f32 %v1303_v47, %v1302_v46  ;;  %v1309_v4 = vsel %vm1256_vm3, %v1298_v61, 0.0  ;;  %v1311_v59 = vsel %vm1256_vm3, %v1299_v52, 0.0  ;;  %v1313_v6 = vsel %vm1256_vm3, %v1300_v1, 0.0 }
 0x1db   : > { %v1315_v2 = vsel %vm1256_vm3, %v1301_v19, 0.0 }
 0x1dc   : > { %v1306_v35 = vadd.f32 %v1305_v44, %v1304_v56 }
 0x1de   : > { %v1308_v55 = vadd.f32 %v1307_v49, %v1306_v35 }
 0x1e0   : > { %v1310_v62 = vadd.f32 %v1309_v4, %v1308_v55 }
 0x1e2   : > { %v1312_v5 = vadd.f32 %v1311_v59, %v1310_v62 }
 0x1e4   : > { %v1314_v8 = vadd.f32 %v1313_v6, %v1312_v5 }
 0x1e6   : > { %v1316_v48 = vadd.f32 %v1315_v2, %v1314_v8 }
 0x1e8   : > { %v1317_v51 = vrot.slane %v1316_v48, 4 }
 0x1ea   : > { %v1318_v9 = vadd.f32 %v1317_v51, %v1316_v48 }
 0x1ec   : > { %v1319_v10 = vrot.slane %v1318_v9, 2 }
 0x1ee   : > { %v1320_v21 = vadd.f32 %v1319_v10, %v1318_v9 }
 0x1f0   : > { %v1321_v50 = vrot.slane %v1320_v21, 1 }
 0x1f2   : > { %v1322_v54 = vadd.f32 %v1321_v50, %v1320_v21 }
 0x1f4   : > { %v1323_v3 = vmul.f32 %v1322_v54, %v3701_v36 }
 0x1f6   : > { %v1324_v16 = vadd.f32 1e-05, %v1323_v3 }
 0x1f8   : > { %3252 = vrsqrt.f32 %v1324_v16  ;;  %vm1331_vm6 = vweird.f32 %v1324_v16 }
 0x1fe   : > { %v3253_v17 = vpop.eup %3252 }
 0x1ff   : > { %v1326_v0 = vmul.f32 %v3253_v17, %v1324_v16  ;;  %vm1332_vm5 = vweird.f32 %v3253_v17 }
 0x200   : > { %vm1333_vm7 = vmor %vm1331_vm6, %vm1332_vm5 }
 0x201   : > { %v1327_v12 = vmul.f32 %v3253_v17, %v1326_v0 }
 0x203   : > { %v1328_v7 = vmul.f32 0.5, %v1327_v12 }
 0x205   : > { %v1329_v13 = vsub.f32 1.5, %v1328_v7 }
 0x207   : > { %v1330_v24 = vmul.f32 %v3253_v17, %v1329_v13 }
 0x209   : > { %v1334_v26 = vsel %vm1333_vm7, %v3253_v17, %v1330_v24 }
 0x20a   : > { %v1335_v28 = vmul.f32 %v1334_v26, %v1286_v39  ;;  %v1336_v31 = vmul.f32 %v1334_v26, %v1287_v34  ;;  %v1337_v53 = vmul.f32 %v1334_v26, %v1288_v57  ;;  %v1338_v58 = vmul.f32 %v1334_v26, %v1289_v63 }
 0x20b   : > { %v1339_v25 = vmul.f32 %v1334_v26, %v1290_v14  ;;  %v1340_v56 = vmul.f32 %v1334_v26, %v3704_v42  ;;  %v1341_v42 = vmul.f32 %v1334_v26, %v3708_v60  ;;  %v1342_v3 = vmul.f32 %v1334_v26, %v3711_v45 }
 0x20c   : > { %v1346_v18 = vmul.f32 %v3728_v23, %v1335_v28  ;;  %v1347_v22 = vmul.f32 %v3728_v23, %v1336_v31  ;;  %v1348_v29 = vmul.f32 %v3728_v23, %v1337_v53  ;;  %v1349_v20 = vmul.f32 %v3728_v23, %v1338_v58 }
 0x20d   : > { %v1350_v30 = vmul.f32 %v3728_v23, %v1339_v25  ;;  %v1351_v5 = vmul.f32 %v3728_v23, %v1340_v56  ;;  %v1352_v16 = vmul.f32 %v3728_v23, %v1341_v42 }
 0x20e   : > { %v3741_v32 = vadd.f32 %v3733_v11, %v1346_v18  ;;  %v3744_v27 = vadd.f32 %v3733_v11, %v1347_v22  ;;  %v3747_v33 = vadd.f32 %v3733_v11, %v1348_v29  ;;  %v3750_v37 = vadd.f32 %v3733_v11, %v1349_v20 }
 0x20f   : > { %v3753_v38 = vadd.f32 %v3733_v11, %v1350_v30  ;;  %v3809_v12 = vadd.f32 %v3733_v11, %v1351_v5  ;;  %v1353_v22 = vmul.f32 %v3728_v23, %v1342_v3  ;;  %v3830_v5 = vadd.f32 %v3733_v11, %v1352_v16 }
 0x210   : > { %v3756_v39 = vmul.f32 0.70710677, %v3741_v32  ;;  %v3759_v34 = vmul.f32 0.70710677, %v3744_v27  ;;  %v3762_v57 = vmul.f32 0.70710677, %v3747_v33 }
 0x211   : > { %v3765_v63 = vmul.f32 0.70710677, %v3750_v37  ;;  %v3768_v14 = vmul.f32 0.70710677, %v3753_v38 }
 0x212   : > { %v1381_v15 = vmul.f32 %v3756_v39, %v3756_v39  ;;  %v1421_v40 = vmul.f32 %v3759_v34, %v3759_v34  ;;  %v1461_v41 = vmul.f32 %v3762_v57, %v3762_v57 }
 0x213   : > { %v1501_v43 = vmul.f32 %v3765_v63, %v3765_v63  ;;  %v1541_v46 = vmul.f32 %v3768_v14, %v3768_v14 }
 0x214   : > { %v3780_v47 = vmin.f32 %v1421_v40, 16.0  ;;  %v3783_v61 = vmin.f32 %v1461_v41, 16.0  ;;  %v3787_v35 = vmin.f32 %v1381_v15, 16.0 }
 0x215   : > { %v3785_v44 = vmin.f32 %v1501_v43, 16.0  ;;  %v3791_v55 = vmin.f32 %v1541_v46, 16.0  ;;  %v3820_v46 = vmul.f32 0.70710677, %v3809_v12 }
 0x216   : > { %v1423_v52 = vmul.f32 2.1237322e-06, %v3780_v47  ;;  %v1434_v49 = vmul.f32 3.8918573e-05, %v3780_v47  ;;  %v1463_v1 = vmul.f32 2.1237322e-06, %v3783_v61 }
 0x217   : > { %v1474_v4 = vmul.f32 3.8918573e-05, %v3783_v61  ;;  %v1503_v62 = vmul.f32 2.1237322e-06, %v3785_v44  ;;  %v1383_v48 = vmul.f32 2.1237322e-06, %v3787_v35 }
 0x218   : > { %v1424_v19 = vadd.f32 0.00028619796, %v1423_v52  ;;  %v1435_v59 = vadd.f32 0.001143296, %v1434_v49  ;;  %v1464_v6 = vadd.f32 0.00028619796, %v1463_v1 }
 0x219   : > { %v1475_v8 = vadd.f32 0.001143296, %v1474_v4  ;;  %v1504_v2 = vadd.f32 0.00028619796, %v1503_v62  ;;  %v1514_v10 = vmul.f32 3.8918573e-05, %v3785_v44 }
 0x21a   : > { %v1425_v51 = vmul.f32 %v1424_v19, %v3780_v47  ;;  %v1436_v9 = vmul.f32 %v1435_v59, %v3780_v47  ;;  %v1465_v21 = vmul.f32 %v1464_v6, %v3783_v61  ;;  %v1543_v54 = vmul.f32 2.1237322e-06, %v3791_v55 }
 0x21b   : > { %v1476_v50 = vmul.f32 %v1475_v8, %v3783_v61  ;;  %v1505_v60 = vmul.f32 %v1504_v2, %v3785_v44  ;;  %v1384_v28 = vadd.f32 0.00028619796, %v1383_v48  ;;  %v1515_v58 = vadd.f32 0.001143296, %v1514_v10 }
 0x21c   : > { %v1426_v17 = vadd.f32 0.0036580483, %v1425_v51  ;;  %v1437_v0 = vadd.f32 0.014752088, %v1436_v9  ;;  %v1466_v7 = vadd.f32 0.0036580483, %v1465_v21  ;;  %v3833_v2 = vadd.f32 %v3733_v11, %v1353_v22 }
 0x21d   : > { %v1477_v13 = vadd.f32 0.014752088, %v1476_v50  ;;  %v1506_v24 = vadd.f32 0.0036580483, %v1505_v60  ;;  %v1544_v18 = vadd.f32 0.00028619796, %v1543_v54  ;;  %v1516_v30 = vmul.f32 %v1515_v58, %v3785_v44 }
 0x21e   : > { %v1427_v31 = vmul.f32 %v1426_v17, %v3780_v47  ;;  %v1438_v53 = vmul.f32 %v1437_v0, %v3780_v47  ;;  %v1467_v25 = vmul.f32 %v1466_v7, %v3783_v61  ;;  %v1385_v1 = vmul.f32 %v1384_v28, %v3787_v35 }
 0x21f   : > { %v1478_v45 = vmul.f32 %v1477_v13, %v3783_v61  ;;  %v1507_v26 = vmul.f32 %v1506_v24, %v3785_v44  ;;  %v1545_v43 = vmul.f32 %v1544_v18, %v3791_v55  ;;  %v1517_v49 = vadd.f32 0.014752088, %v1516_v30 }
 0x220   : > { %v1428_v29 = vadd.f32 0.05243302, %v1427_v31  ;;  %v1439_v20 = vadd.f32 0.112945676, %v1438_v53  ;;  %v1468_v15 = vadd.f32 0.05243302, %v1467_v25  ;;  %v1581_v9 = vmul.f32 %v3820_v46, %v3820_v46 }
 0x221   : > { %v1479_v40 = vadd.f32 0.112945676, %v1478_v45  ;;  %v1508_v41 = vadd.f32 0.05243302, %v1507_v26  ;;  %v1518_v19 = vmul.f32 %v1517_v49, %v3785_v44  ;;  %v1546_v59 = vadd.f32 0.0036580483, %v1545_v43 }
 0x222   : > { %v1429_v56 = vmul.f32 %v1428_v29, %v3780_v47  ;;  %v1440_v52 = vmul.f32 %v1439_v20, %v3780_v47  ;;  %v1469_v23 = vmul.f32 %v1468_v15, %v3783_v61  ;;  %v1386_v10 = vadd.f32 0.0036580483, %v1385_v1 }
 0x223   : > { %v1480_v4 = vmul.f32 %v1479_v40, %v3783_v61  ;;  %v1509_v62 = vmul.f32 %v1508_v41, %v3785_v44  ;;  %v1519_v51 = vadd.f32 0.112945676, %v1518_v19  ;;  %v1547_v3 = vmul.f32 %v1546_v59, %v3791_v55 }
 0x224   : > { %v1441_v42 = vadd.f32 0.4994258, %v1440_v52  ;;  %v1430_v6 = vadd.f32 0.18741608, %v1429_v56  ;;  %v1470_v21 = vadd.f32 0.18741608, %v1469_v23  ;;  %v1387_v24 = vmul.f32 %v1386_v10, %v3787_v35 }
 0x225   : > { %v1481_v8 = vadd.f32 0.4994258, %v1480_v4  ;;  %v1510_v60 = vadd.f32 0.18741608, %v1509_v62  ;;  %v1520_v11 = vmul.f32 %v1519_v51, %v3785_v44  ;;  %v3847_v0 = vmul.f32 0.70710677, %v3830_v5 }
 0x226   : > { %v1442_v48 = vmul.f32 %v1441_v42, %v3780_v47  ;;  %v1431_v16 = vmul.f32 %v1430_v6, %v3780_v47  ;;  %v3850_v7 = vmul.f32 0.70710677, %v3833_v2  ;;  %v3853_v13 = vmin.f32 %v1581_v9, 16.0 }
 0x227   : > { %v1482_v50 = vmul.f32 %v1481_v8, %v3783_v61  ;;  %v1471_v28 = vmul.f32 %v1470_v21, %v3783_v61  ;;  %v1511_v47 = vmul.f32 %v1510_v60, %v3785_v44  ;;  %v3860_v31 = vmul.f32 0.5, %v3744_v27 }
 0x228   : > { %v3839_v54 = vadd.f32 1.0, %v1442_v48  ;;  %v3863_v53 = vmul.f32 0.5, %v3747_v33  ;;  %v1548_v58 = vadd.f32 0.05243302, %v1547_v3  ;;  %v3866_v25 = vmul.f32 0.5, %v3750_v37 }
 0x229   : > { %v3843_v17 = vadd.f32 1.0, %v1482_v50  ;;  %v3869_v45 = vmul.f32 0.5, %v3753_v38  ;;  %v1432_v26 = vadd.f32 1.1283791, %v1431_v16  ;;  %v1521_v18 = vadd.f32 0.4994258, %v1520_v11 }
 0x22a   : > { %3254 = vrcp.f32 %v3839_v54  ;;  %v1554_v61 = vmul.f32 3.8918573e-05, %v3791_v55  ;;  %v1583_v22 = vmul.f32 2.1237322e-06, %v3853_v13  ;;  %v1621_v27 = vmul.f32 %v3847_v0, %v3847_v0 }
 0x22b   : > { %3256 = vrcp.f32 %v3843_v17  ;;  %v1661_v33 = vmul.f32 %v3850_v7, %v3850_v7  ;;  %v3877_v29 = vadd.f32 0.05243302, %v1387_v24  ;;  %v3879_v20 = vadd.f32 1.1283791, %v1471_v28 }
 0x22c   : > { %v1512_v37 = vadd.f32 1.1283791, %v1511_v47  ;;  %v1522_v38 = vmul.f32 %v1521_v18, %v3785_v44  ;;  %v1455_v15 = vand.u32 2147483648, %v3839_v54  ;;  %v1549_v40 = vmul.f32 %v1548_v58, %v3791_v55 }
 0x22d   : > { %v1555_v41 = vadd.f32 0.001143296, %v1554_v61  ;;  %v1584_v43 = vadd.f32 0.00028619796, %v1583_v22  ;;  %v3889_v52 = vmul.f32 %v1432_v26, %v3759_v34  ;;  %v1594_v44 = vmul.f32 3.8918573e-05, %v3853_v13 }
 0x22e   : > { %v3893_v1 = vadd.f32 1.0, %v1522_v38  ;;  %vm1449_vm8 = vweird.f32 %v3839_v54  ;;  %v1453_v23 = vand.u32 2147483647, %v3839_v54  ;;  %v3900_v42 = vmin.f32 %v1621_v27, 16.0 }
 0x22f   : > { %v1556_v4 = vmul.f32 %v1555_v41, %v3791_v55  ;;  %v1585_v62 = vmul.f32 %v1584_v43, %v3853_v13  ;;  %v1493_v59 = vand.u32 2147483647, %v3843_v17  ;;  %v1456_v6 = vor.u32 1.1754944e-38, %v1455_v15 }
 0x230   : > { %v3882_v30 = vpop.eup %3254  ;;  %3258 = vrcp.f32 %v3893_v1  ;;  %v1495_v8 = vand.u32 2147483648, %v3843_v17  ;;  %v3908_v48 = vmul.f32 %v1512_v37, %v3765_v63  ;;  %v1550_v10 = vadd.f32 0.18741608, %v1549_v40 }
 0x231   : > { %v3886_v56 = vpop.eup %3256  ;;  %v1445_v49 = vmul.f32 %v3882_v30, %v3839_v54  ;;  %v1557_v51 = vadd.f32 0.014752088, %v1556_v4  ;;  %v1586_v21 = vadd.f32 0.0036580483, %v1585_v62  ;;  %v1595_v50 = vadd.f32 0.001143296, %v1594_v44 }
 0x232   : > { %v1485_v34 = vmul.f32 %v3886_v56, %v3843_v17  ;;  %v1533_v60 = vand.u32 2147483647, %v3893_v1  ;;  %v1623_v16 = vmul.f32 2.1237322e-06, %v3900_v42  ;;  %v3914_v11 = vmin.f32 %v1661_v33, 16.0 }
 0x233   : > { %v1446_v19 = vsub.f32 1.0, %v1445_v49  ;;  %v1558_v3 = vmul.f32 %v1557_v51, %v3791_v55  ;;  %v1587_v28 = vmul.f32 %v1586_v21, %v3853_v13  ;;  %v1596_v63 = vmul.f32 %v1595_v50, %v3853_v13 }
 0x234   : > { %v1486_v24 = vsub.f32 1.0, %v1485_v34  ;;  %v1634_v47 = vmul.f32 3.8918573e-05, %v3900_v42  ;;  %vm1450_vm9 = vweird.f32 %v3882_v30  ;;  %vm3921_vm10 = vcmp.eq.f32.partialorder %v1453_v23, 8.507059e+37 }
 0x235   : > { %v1447_v9 = vmul.f32 %v3882_v30, %v1446_v19  ;;  %v1559_v18 = vadd.f32 0.112945676, %v1558_v3  ;;  %v1624_v61 = vadd.f32 0.00028619796, %v1623_v16  ;;  %v1551_v27 = vmul.f32 %v1550_v10, %v3791_v55  ;;  %vm3933_vm14 = vmor %vm1449_vm8, %vm1450_vm9 }
 0x236   : > { %v3259_v22 = vpop.eup %3258  ;;  %v1588_v33 = vadd.f32 0.05243302, %v1587_v28  ;;  %v1597_v37 = vadd.f32 0.014752088, %v1596_v63  ;;  %v1635_v38 = vadd.f32 0.001143296, %v1634_v47  ;;  %vm1489_vm11 = vweird.f32 %v3843_v17 }
 0x237   : > { %v1448_v58 = vadd.f32 %v3882_v30, %v1447_v9  ;;  %vm1490_vm12 = vweird.f32 %v3886_v56  ;;  %v1525_v15 = vmul.f32 %v3259_v22, %v3893_v1  ;;  %vm1529_vm13 = vweird.f32 %v3893_v1 }
 0x238   : > { %v1663_v40 = vmul.f32 2.1237322e-06, %v3914_v11  ;;  %v1487_v43 = vmul.f32 %v3886_v56, %v1486_v24  ;;  %vm3938_vm15 = vcmp.eq.f32.partialorder %v1533_v60, 8.507059e+37  ;;  %v1535_v44 = vand.u32 2147483648, %v3893_v1  ;;  %vm3969_vm2 = vmor %vm1489_vm11, %vm1490_vm12 }
 0x239   : > { %v1560_v23 = vmul.f32 %v1559_v18, %v3791_v55  ;;  %v1452_v4 = vsel %vm3933_vm14, %v3882_v30, %v1448_v58  ;;  %v1526_v62 = vsub.f32 1.0, %v1525_v15  ;;  %v1598_v54 = vmul.f32 %v1597_v37, %v3853_v13 }
 0x23a   : > { %v1625_v19 = vmul.f32 %v1624_v61, %v3900_v42  ;;  %vm1530_vm0 = vweird.f32 %v3259_v22  ;;  %v1589_v51 = vmul.f32 %v1588_v33, %v3853_v13  ;;  %v1636_v9 = vmul.f32 %v1635_v38, %v3900_v42 }
 0x23b   : > { %v1561_v34 = vadd.f32 0.4994258, %v1560_v23  ;;  %v1527_v10 = vmul.f32 %v3259_v22, %v1526_v62  ;;  %v1599_v21 = vadd.f32 0.112945676, %v1598_v54  ;;  %v1664_v60 = vadd.f32 0.00028619796, %v1663_v40  ;;  %vm1531_vm1 = vmor %vm1529_vm13, %vm1530_vm0 }
 0x23c   : > { %v1626_v50 = vadd.f32 0.0036580483, %v1625_v19  ;;  %v1536_v3 = vor.u32 1.1754944e-38, %v1535_v44  ;;  %v1637_v24 = vadd.f32 0.014752088, %v1636_v9  ;;  %v1488_v28 = vadd.f32 %v3886_v56, %v1487_v43 }
 0x23d   : > { %v1562_v16 = vmul.f32 %v1561_v34, %v3791_v55  ;;  %v1674_v30 = vmul.f32 3.8918573e-05, %v3914_v11  ;;  %v1528_v63 = vadd.f32 %v3259_v22, %v1527_v10  ;;  %v1600_v47 = vmul.f32 %v1599_v21, %v3853_v13 }
 0x23e   : > { %v1627_v58 = vmul.f32 %v1626_v50, %v3900_v42  ;;  %v1457_v18 = vsel %vm3921_vm10, %v1456_v6, %v1452_v4  ;;  %v1638_v55 = vmul.f32 %v1637_v24, %v3900_v42  ;;  %v1665_v33 = vmul.f32 %v1664_v60, %v3914_v11 }
 0x23f   : > { %v3961_v61 = vadd.f32 1.0, %v1562_v16  ;;  %v1532_v37 = vsel %vm1531_vm1, %v3259_v22, %v1528_v63  ;;  %v1590_v38 = vadd.f32 0.18741608, %v1589_v51  ;;  %v1601_v15 = vadd.f32 0.4994258, %v1600_v47 }
 0x240   : > { %v1675_v40 = vadd.f32 0.001143296, %v1674_v30  ;;  %v1496_v1 = vor.u32 1.1754944e-38, %v1495_v8  ;;  %v1537_v26 = vsel %vm3938_vm15, %v1536_v3, %v1532_v37  ;;  %v1628_v22 = vadd.f32 0.05243302, %v1627_v58 }
 0x241   : > { %3260 = vrcp.f32 %v3961_v61  ;;  %v1458_v41 = vmul.f32 %v1457_v18, %v3889_v52  ;;  %v1492_v43 = vsel %vm3969_vm2, %v3886_v56, %v1488_v28  ;;  %v1538_v44 = vmul.f32 %v1537_v26, %v3908_v48 }
 0x242   : > { %v1602_v23 = vmul.f32 %v1601_v15, %v3853_v13  ;;  %v1552_v4 = vadd.f32 1.1283791, %v1551_v27  ;;  %v1639_v62 = vadd.f32 0.112945676, %v1638_v55  ;;  %v1666_v54 = vadd.f32 0.0036580483, %v1665_v33 }
 0x243   : > { %vm1494_vm4 = vcmp.eq.f32.partialorder %v1493_v59, 8.507059e+37  ;;  %v1591_v8 = vmul.f32 %v1590_v38, %v3853_v13  ;;  %v1676_v52 = vmul.f32 %v1675_v40, %v3914_v11  ;;  %v1473_v19 = vmul.f32 %v3879_v20, %v3762_v57 }
 0x244   : > { %v3987_v49 = vadd.f32 1.0, %v1602_v23  ;;  %v1497_v56 = vsel %vm1494_vm4, %v1496_v1, %v1492_v43  ;;  %v1629_v48 = vmul.f32 %v1628_v22, %v3900_v42  ;;  %v1640_v34 = vmul.f32 %v1639_v62, %v3900_v42  ;;  %v1776_v62 = vld [vmem:[%s4834_s5 + $0x30] sm:$0xff] }
 0x245   : > { %v3141_v27 = vclamps-f32 %v1458_v41, 1.0  ;;  %v3143_v51 = vclamps-f32 %v1538_v44, 1.0  ;;  %v1394_v17 = vmul.f32 3.8918573e-05, %v3787_v35  ;;  %v1553_v13 = vmul.f32 %v1552_v4, %v3768_v14 }
 0x246   : > { %3262 = vrcp.f32 %v3987_v49  ;;  %v1641_v9 = vadd.f32 0.4994258, %v1640_v34  ;;  %v1667_v10 = vmul.f32 %v1666_v54, %v3914_v11  ;;  %v1677_v21 = vadd.f32 0.014752088, %v1676_v52 }
 0x247   : > { %v3261_v59 = vpop.eup %3260  ;;  %v3998_v50 = vmul.f32 %v1497_v56, %v1473_v19  ;;  %v1573_v20 = vand.u32 2147483647, %v3961_v61  ;;  %v1592_v60 = vadd.f32 1.1283791, %v1591_v8  ;;  %v1575_v3 = vand.u32 2147483648, %v3961_v61  ;;  %v1773_v19 = vld [vmem:[%s4834_s5 + $0x18] sm:$0xff] }
 0x248   : > { %v1565_v57 = vmul.f32 %v3261_v59, %v3961_v61  ;;  %v1630_v16 = vadd.f32 0.18741608, %v1629_v48  ;;  %v1642_v24 = vmul.f32 %v1641_v9, %v3900_v42  ;;  %v1678_v30 = vmul.f32 %v1677_v21, %v3914_v11  ;;  %v1781_v56 = vld [vmem:[%s4834_s5 + $0x58] sm:$0xff]  ;;  %1923 = vmatpush.msrb.mxu2 %v1773_v19  ;;  %v1772_v9 = vld [vmem:[%s4834_s5 + $0x10] sm:$0xff] }
 0x249   : > { %v1702_v14 = vadd.f32 1.0, %v3141_v27  ;;  %v1704_v63 = vadd.f32 1.0, %v3143_v51  ;;  %v1395_v47 = vadd.f32 0.001143296, %v1394_v17  ;;  %vm1570_vm5 = vweird.f32 %v3261_v59  ;;  %v1775_v17 = vld [vmem:[%s4834_s5 + $0x28] sm:$0xff]  ;;  %1996 = vmatpush.msrb.mxu3 %v1781_v56 }
 0x24a   : > { %v1566_v28 = vsub.f32 1.0, %v1565_v57  ;;  %v4005_v58 = vadd.f32 1.0, %v1642_v24  ;;  %v1668_v18 = vadd.f32 0.05243302, %v1667_v10  ;;  %v1679_v55 = vadd.f32 0.112945676, %v1678_v30  ;;  %1924 = vmatpush.msrb.mxu2 %v1772_v9 }
 0x24b   : > { %v1710_v38 = vmul.f32 %v1702_v14, %v3860_v31  ;;  %v1712_v15 = vmul.f32 %v1704_v63, %v3866_v25  ;;  %v1396_v40 = vmul.f32 %v1395_v47, %v3787_v35  ;;  %vm1569_vm6 = vweird.f32 %v3961_v61  ;;  %v1779_v14 = vld [vmem:[%s4834_s5 + $0x48] sm:$0xff] }
 0x24c   : > { %v4007_v33 = vpop.eup %3262  ;;  %v1567_v37 = vmul.f32 %v3261_v59, %v1566_v28  ;;  %vm4013_vm7 = vcmp.eq.f32.partialorder %v1573_v20, 8.507059e+37  ;;  %3264 = vrcp.f32 %v4005_v58  ;;  %v1576_v22 = vor.u32 1.1754944e-38, %v1575_v3  ;;  %vm1571_vm9 = vmor %vm1569_vm6, %vm1570_vm5  ;;  %v1780_v20 = vld [vmem:[%s4834_s5 + $0x50] sm:$0xff]  ;;  %v1774_v28 = vld [vmem:[%s4834_s5 + $0x20] sm:$0xff] }
 0x24d   : > { %v1605_v1 = vmul.f32 %v4007_v33, %v3987_v49  ;;  %vm1610_vm8 = vweird.f32 %v4007_v33  ;;  %v1631_v31 = vmul.f32 %v1630_v16, %v3900_v42  ;;  %1719 = vst.msk [vmem:[#allocation3 + $0x21] sm:$0xff] %vm1256_vm3, %v1710_v38  ;;  %v1613_v61 = vand.u32 2147483647, %v3987_v49  ;;  %v1777_v42 = vld [vmem:[%s4834_s5 + $0x38] sm:$0xff]  ;;  %1997 = vmatpush.msrb.mxu3 %v1780_v20  ;;  %v1783_v63 = vld [vmem:[%s4834_s5 + $0x68] sm:$0xff] }
 0x24e   : > { %v1568_v26 = vadd.f32 %v3261_v59, %v1567_v37  ;;  %v1680_v41 = vmul.f32 %v1679_v55, %v3914_v11  ;;  %1721 = vst.msk [vmem:[#allocation3 + $0x41] sm:$0xff] %vm1256_vm3, %v1712_v15  ;;  %v1397_v43 = vadd.f32 0.014752088, %v1396_v40  ;;  %vm1609_vm10 = vweird.f32 %v3987_v49  ;;  %1858 = vmatpush.msra.mxu1 %v1777_v42 }
 0x24f   : > { %v1606_v25 = vsub.f32 1.0, %v1605_v1  ;;  %v1615_v23 = vand.u32 2147483648, %v3987_v49  ;;  %v1669_v4 = vmul.f32 %v1668_v18, %v3914_v11  ;;  %1726 = vst.msk [vmem:[#allocation3 + $0x1] sm:$0xff] %vm1256_vm3, %v1710_v38  ;;  %vm4042_vm11 = vmor %vm1609_vm10, %vm1610_vm8  ;;  %v1593_v27 = vmul.f32 %v1592_v60, %v3820_v46  ;;  %v1771_v60 = vld [vmem:[%s4834_s5 + $0x8] sm:$0xff]  ;;  %v1770_v38 = vld [vmem:[%s4834_s5] sm:$0xff]  ;;  %1998 = vmatpush.msrb.mxu3 %v1779_v14 }
 0x250   : > { %v1572_v44 = vsel %vm1571_vm9, %v3261_v59, %v1568_v26  ;;  %v1681_v52 = vadd.f32 0.4994258, %v1680_v41  ;;  %v1398_v48 = vmul.f32 %v1397_v43, %v3787_v35  ;;  %v4054_v51 = vadd.f32 1.1283791, %v1631_v31  ;;  %v1785_v59 = vld [vmem:[%s4834_s5 + $0x78] sm:$0xff]  ;;  %1859 = vmatpush.msra.mxu1 %v1776_v62  ;;  %1925 = vmatpush.msrb.mxu2 %v1771_v60  ;;  %v1778_v26 = vld [vmem:[%s4834_s5 + $0x40] sm:$0xff] }
 0x251   : > { %v1577_v54 = vsel %vm4013_vm7, %v1576_v22, %v1572_v44  ;;  %v1607_v8 = vmul.f32 %v4007_v33, %v1606_v25  ;;  %vm4069_vm12 = vcmp.eq.f32.partialorder %v1613_v61, 8.507059e+37  ;;  %2077 = vmatpush.msrb.mxu0 %v1785_v59  ;;  %v1616_v24 = vor.u32 1.1754944e-38, %v1615_v23  ;;  %v1782_v43 = vld [vmem:[%s4834_s5 + $0x60] sm:$0xff]  ;;  %1999 = vmatpush.msrb.mxu3 %v1778_v26 }
 0x252   : > { %v1578_v34 = vmul.f32 %v1577_v54, %v1553_v13  ;;  %v3142_v13 = vclamps-f32 %v3998_v50, 1.0  ;;  %v4066_v10 = vpop.eup %3264  ;;  %v1682_v57 = vmul.f32 %v1681_v52, %v3914_v11  ;;  %v1784_v50 = vld [vmem:[%s4834_s5 + $0x70] sm:$0xff]  ;;  %v1399_v3 = vadd.f32 0.112945676, %v1398_v48  ;;  %1860 = vmatpush.msra.mxu1 %v1775_v17  ;;  %1926 = vmatpush.msrb.mxu2 %v1770_v38 }
 0x253   : > { %v1608_v46 = vadd.f32 %v4007_v33, %v1607_v8  ;;  %v1645_v30 = vmul.f32 %v4066_v10, %v4005_v58  ;;  %v1670_v55 = vadd.f32 0.18741608, %v1669_v4  ;;  %2078 = vmatpush.msrb.mxu0 %v1784_v50  ;;  %v1653_v25 = vand.u32 2147483647, %v4005_v58 }
 0x254   : > { %v3144_v16 = vclamps-f32 %v1578_v34, 1.0  ;;  %v1703_v47 = vadd.f32 1.0, %v3142_v13  ;;  %v4097_v37 = vadd.f32 1.0, %v1682_v57  ;;  %v1400_v15 = vmul.f32 %v1399_v3, %v3787_v35  ;;  %1861 = vmatpush.msra.mxu1 %v1774_v28  ;;  %v1731_v21 = vld [vmem:[#allocation3 + $0x22] sm:$0x1] }
 0x255   : > { %v1612_v18 = vsel %vm4042_vm11, %v4007_v33, %v1608_v46  ;;  %v1646_v6 = vsub.f32 1.0, %v1645_v30  ;;  %v1789_v33 = vld [vmem:[%s4834_s5 + $0x98] sm:$0xff]  ;;  %v1655_v61 = vand.u32 2147483648, %v4005_v58  ;;  %2079 = vmatpush.msrb.mxu0 %v1783_v63  ;;  %vm1650_vm13 = vweird.f32 %v4066_v10  ;;  %v1752_v60 = vld [vmem:[#allocation3 + $0x27] sm:$0x1] }
 0x256   : > { %v1617_v40 = vsel %vm4069_vm12, %v1616_v24, %v1612_v18  ;;  %v1705_v1 = vadd.f32 1.0, %v3144_v16  ;;  %v1711_v22 = vmul.f32 %v1703_v47, %v3863_v53  ;;  %3266 = vrcp.f32 %v4097_v37  ;;  %v1814_v41 = vld [vmem:[#allocation3 + $0x1] sm:$0xff]  ;;  %2158 = vmatpush.msrb.mxu1 %v1789_v33 }
 0x257   : > { %v1618_v31 = vmul.f32 %v1617_v40, %v1593_v27  ;;  %v1647_v44 = vmul.f32 %v4066_v10, %v1646_v6  ;;  %3148 = vmatmul.msk.f32.vlgmr.msra.gmra.mxu1 %vm1256_vm3, %v1814_v41  ;;  %v1401_v23 = vadd.f32 0.4994258, %v1400_v15  ;;  %v1389_v4 = vmul.f32 %v3877_v29, %v3787_v35  ;;  %2080 = vmatpush.msrb.mxu0 %v1782_v43  ;;  %v1750_v13 = vld [vmem:[#allocation3 + $0x7] sm:$0x1]  ;;  %v1733_v18 = vld [vmem:[#allocation3 + $0x42] sm:$0x1] }
 0x258   : > { %v1713_v53 = vmul.f32 %v1705_v1, %v3869_v45  ;;  %1720 = vst.msk [vmem:[#allocation3 + $0x31] sm:$0xff] %vm1256_vm3, %v1711_v22  ;;  %vm1649_vm14 = vweird.f32 %v4005_v58  ;;  %v1671_v54 = vmul.f32 %v1670_v55, %v3914_v11  ;;  %v1370_v8 = vmul.f32 0.5, %v3809_v12  ;;  %v1754_v15 = vld [vmem:[#allocation3 + $0x47] sm:$0x1] }
 0x259   : > { %v3145_v42 = vclamps-f32 %v1618_v31, 1.0  ;;  %v1648_v62 = vadd.f32 %v4066_v10, %v1647_v44  ;;  %v1402_v45 = vmul.f32 %v1401_v23, %v3787_v35  ;;  %vm1651_vm15 = vmor %vm1649_vm14, %vm1650_vm13  ;;  %v1656_v29 = vor.u32 1.1754944e-38, %v1655_v61 }
 0x25a   : > { %1722 = vst.msk [vmem:[#allocation3 + $0x51] sm:$0xff] %vm1256_vm3, %v1713_v53  ;;  %v1633_v52 = vmul.f32 %v4054_v51, %v3847_v0  ;;  %vm1654_vm0 = vcmp.eq.f32.partialorder %v1653_v25, 8.507059e+37  ;;  %v1390_v56 = vadd.f32 0.18741608, %v1389_v4  ;;  %v1672_v17 = vadd.f32 1.1283791, %v1671_v54 }
 0x25b   : > { %v1706_v49 = vadd.f32 1.0, %v3145_v42  ;;  %v1652_v19 = vsel %vm1651_vm15, %v4066_v10, %v1648_v62  ;;  %v4136_v58 = vadd.f32 1.0, %v1402_v45  ;;  %v1693_v59 = vand.u32 2147483647, %v4097_v37  ;;  %v1729_v0 = vld [vmem:[#allocation3 + $0x2] sm:$0x1] }
 0x25c   : > { %v3267_v11 = vpop.eup %3266  ;;  %v1657_v48 = vsel %vm1654_vm0, %v1656_v29, %v1652_v19  ;;  %vm1739_vm1 = vcmask 253952   ;;  %v1371_v10 = vmul.f32 0.5, %v3830_v5  ;;  %v1695_v46 = vand.u32 2147483648, %v4097_v37 }
 0x25d   : > { %v1714_v34 = vmul.f32 %v1706_v49, %v1370_v8  ;;  %v1658_v27 = vmul.f32 %v1657_v48, %v1633_v52  ;;  %v1685_v12 = vmul.f32 %v3267_v11, %v4097_v37  ;;  %3268 = vrcp.f32 %v4136_v58  ;;  %1740 = vst.msk [vmem:[#allocation3] sm:$0x1] %vm1739_vm1, %v1729_v0 }
 0x25e   : > { %v1391_v57 = vmul.f32 %v1390_v56, %v3787_v35  ;;  %vm1690_vm2 = vweird.f32 %v3267_v11  ;;  %1760 = vst.msk [vmem:[#allocation3 + $0x9] sm:$0x1] %vm1739_vm1, %v1750_v13  ;;  %vm1689_vm4 = vweird.f32 %v4097_v37  ;;  %v1696_v30 = vor.u32 1.1754944e-38, %v1695_v46  ;;  %v1786_v13 = vld [vmem:[%s4834_s5 + $0x80] sm:$0xff]  ;;  %v1797_v46 = vld [vmem:[%s4834_s5 + $0xd8] sm:$0xff] }
 0x25f   : > { %1723 = vst.msk [vmem:[#allocation3 + $0x61] sm:$0xff] %vm1256_vm3, %v1714_v34  ;;  %v3146_v51 = vclamps-f32 %v1658_v27, 1.0  ;;  %v1686_v9 = vsub.f32 1.0, %v1685_v12  ;;  %v1732_v3 = vld [vmem:[#allocation3 + $0x32] sm:$0x1]  ;;  %vm1691_vm5 = vmor %vm1689_vm4, %vm1690_vm2  ;;  %v1673_v63 = vmul.f32 %v1672_v17, %v3850_v7  ;;  %vm1694_vm6 = vcmp.eq.f32.partialorder %v1693_v59, 8.507059e+37  ;;  %2321 = vmatpush.msra.mxu3 %v1797_v46 }
 0x260   : > { %1742 = vst.msk [vmem:[#allocation3 + $0x20] sm:$0x1] %vm1739_vm1, %v1731_v21  ;;  %v1753_v28 = vld [vmem:[#allocation3 + $0x37] sm:$0x1]  ;;  %v1392_v14 = vadd.f32 1.1283791, %v1391_v57  ;;  %vm1409_vm8 = vweird.f32 %v4136_v58 }
 0x261   : > { %v1687_v20 = vmul.f32 %v3267_v11, %v1686_v9  ;;  %v1707_v50 = vadd.f32 1.0, %v3146_v51  ;;  %1762 = vst.msk [vmem:[#allocation3 + $0x29] sm:$0x1] %vm1739_vm1, %v1752_v60  ;;  %v1413_v38 = vand.u32 2147483647, %v4136_v58  ;;  %v1415_v6 = vand.u32 2147483648, %v4136_v58 }
 0x262   : > { %1743 = vst.msk [vmem:[#allocation3 + $0x30] sm:$0x1] %vm1739_vm1, %v1732_v3  ;;  %v1734_v33 = vld [vmem:[#allocation3 + $0x52] sm:$0x1]  ;;  %v1755_v22 = vld [vmem:[#allocation3 + $0x57] sm:$0x1]  ;;  %v1393_v23 = vmul.f32 %v1392_v14, %v3756_v39 }
 0x263   : > { %v3269_v16 = vpop.eup %3268  ;;  %v1688_v24 = vadd.f32 %v3267_v11, %v1687_v20  ;;  %v1715_v5 = vmul.f32 %v1707_v50, %v1371_v10  ;;  %1763 = vst.msk [vmem:[#allocation3 + $0x39] sm:$0x1] %vm1739_vm1, %v1753_v28  ;;  %v1372_v43 = vmul.f32 0.5, %v3833_v2  ;;  %v1416_v53 = vor.u32 1.1754944e-38, %v1415_v6  ;;  %v1788_v2 = vld [vmem:[%s4834_s5 + $0x90] sm:$0xff]  ;;  %v4191_v12 = vld [vmem:[#allocation3 + $0x21] sm:$0xff] }
 0x264   : > { %v1405_v35 = vmul.f32 %v3269_v16, %v4136_v58  ;;  %v1806_v1 = vld [vmem:[#allocation3] sm:$0xff]  ;;  %vm1410_vm7 = vweird.f32 %v3269_v16  ;;  %1744 = vst.msk [vmem:[#allocation3 + $0x40] sm:$0x1] %vm1739_vm1, %v1733_v18  ;;  %vm1414_vm10 = vcmp.eq.f32.partialorder %v1413_v38, 8.507059e+37  ;;  %2159 = vmatpush.msrb.mxu1 %v1788_v2  ;;  %v1365_v52 = vmul.f32 0.5, %v3741_v32  ;;  %v1787_v32 = vld [vmem:[%s4834_s5 + $0x88] sm:$0xff] }
 0x265   : > { %v1692_v47 = vsel %vm1691_vm5, %v3267_v11, %v1688_v24  ;;  %1724 = vst.msk [vmem:[#allocation3 + $0x71] sm:$0xff] %vm1256_vm3, %v1715_v5  ;;  %3156 = vmatmul.msk.f32.vlgmr.msrb.gmra.mxu2 %vm1256_vm3, %v1806_v1  ;;  %v1952_v26 = vld [vmem:[#allocation3 + $0x2] sm:$0xff]  ;;  %vm1411_vm9 = vmor %vm1409_vm8, %vm1410_vm7  ;;  %v4203_v51 = vld [vmem:[#allocation3 + $0x31] sm:$0xff] }
 0x266   : > { %v1697_v55 = vsel %vm1694_vm6, %v1696_v30, %v1692_v47  ;;  %1728 = vst.msk [vmem:[#allocation3 + $0x91] sm:$0xff] %vm1256_vm3, %v1715_v5  ;;  %v1406_v37 = vsub.f32 1.0, %v1405_v35  ;;  %3164 = vmatmul.msk.f32.vlgmr.msrb.gmra.mxu3 %vm1256_vm3, %v1952_v26  ;;  %v1735_v25 = vld [vmem:[#allocation3 + $0x62] sm:$0x1]  ;;  %v1756_v41 = vld [vmem:[#allocation3 + $0x67] sm:$0x1]  ;;  %2160 = vmatpush.msrb.mxu1 %v1787_v32 }
 0x267   : > { %v1698_v40 = vmul.f32 %v1697_v55, %v1673_v63  ;;  %1764 = vst.msk [vmem:[#allocation3 + $0x49] sm:$0x1] %vm1739_vm1, %v1754_v15  ;;  %v4201_v0 = vld [vmem:[#allocation3 + $0x20] sm:$0xff]  ;;  %v1793_v10 = vld [vmem:[%s4834_s5 + $0xb8] sm:$0xff]  ;;  %v1792_v5 = vld [vmem:[%s4834_s5 + $0xb0] sm:$0xff] }
 0x268   : > { %v1407_v7 = vmul.f32 %v3269_v16, %v1406_v37  ;;  %1745 = vst.msk [vmem:[#allocation3 + $0x50] sm:$0x1] %vm1739_vm1, %v1734_v33  ;;  %v4205_v9 = vld [vmem:[#allocation3 + $0x22] sm:$0xff]  ;;  %2161 = vmatpush.msrb.mxu1 %v1786_v13  ;;  %2239 = vmatpush.msra.mxu2 %v1793_v10  ;;  %v1801_v50 = vld [vmem:[%s4834_s5 + $0xf8] sm:$0xff]  ;;  %v1796_v30 = vld [vmem:[%s4834_s5 + $0xd0] sm:$0xff] }
 0x269   : > { %v3147_v31 = vclamps-f32 %v1698_v40, 1.0  ;;  %1765 = vst.msk [vmem:[#allocation3 + $0x59] sm:$0x1] %vm1739_vm1, %v1755_v22  ;;  %v4224_v21 = vld [vmem:[#allocation3 + $0x30] sm:$0xff]  ;;  %v4226_v57 = vld [vmem:[#allocation3 + $0x41] sm:$0xff]  ;;  %2402 = vmatpush.msra.mxu0 %v1801_v50  ;;  %v1805_v24 = vld [vmem:[%s4834_s5 + $0x118] sm:$0xff]  ;;  %2322 = vmatpush.msra.mxu3 %v1796_v30 }
 0x26a   : > { %v1408_v61 = vadd.f32 %v3269_v16, %v1407_v7  ;;  %1746 = vst.msk [vmem:[#allocation3 + $0x60] sm:$0x1] %vm1739_vm1, %v1735_v25  ;;  %v4232_v20 = vld [vmem:[#allocation3 + $0x32] sm:$0xff]  ;;  %v1791_v28 = vld [vmem:[%s4834_s5 + $0xa8] sm:$0xff]  ;;  %2483 = vmatpush.msra.mxu1 %v1805_v24  ;;  %2240 = vmatpush.msra.mxu2 %v1792_v5  ;;  %v1790_v47 = vld [vmem:[%s4834_s5 + $0xa0] sm:$0xff] }
 0x26b   : > { %v1708_v44 = vadd.f32 1.0, %v3147_v31  ;;  %1766 = vst.msk [vmem:[#allocation3 + $0x69] sm:$0x1] %vm1739_vm1, %v1756_v41  ;;  %v4241_v60 = vld [vmem:[#allocation3 + $0x40] sm:$0xff]  ;;  %v4243_v3 = vld [vmem:[#allocation3 + $0x51] sm:$0xff]  ;;  %v1795_v14 = vld [vmem:[%s4834_s5 + $0xc8] sm:$0xff] }
 0x26c   : > { %v1412_v4 = vsel %vm1411_vm9, %v3269_v16, %v1408_v61  ;;  %v1736_v42 = vld [vmem:[#allocation3 + $0x72] sm:$0x1]  ;;  %v1757_v45 = vld [vmem:[#allocation3 + $0x77] sm:$0x1]  ;;  %v1799_v63 = vld [vmem:[%s4834_s5 + $0xe8] sm:$0xff]  ;;  %2241 = vmatpush.msra.mxu2 %v1791_v28  ;;  %2323 = vmatpush.msra.mxu3 %v1795_v14 }
 0x26d   : > { %v1716_v62 = vmul.f32 %v1708_v44, %v1372_v43  ;;  %v1417_v54 = vsel %vm1414_vm10, %v1416_v53, %v1412_v4  ;;  %1747 = vst.msk [vmem:[#allocation3 + $0x70] sm:$0x1] %vm1739_vm1, %v1736_v42  ;;  %v1738_v29 = vld [vmem:[#allocation3 + $0x92] sm:$0x1]  ;;  %v1759_v39 = vld [vmem:[#allocation3 + $0x97] sm:$0x1] }
 0x26e   : > { %v1418_v8 = vmul.f32 %v1417_v54, %v1393_v23  ;;  %1767 = vst.msk [vmem:[#allocation3 + $0x79] sm:$0x1] %vm1739_vm1, %v1757_v45  ;;  %v4245_v16 = vld [vmem:[#allocation3 + $0x42] sm:$0xff]  ;;  %v1800_v35 = vld [vmem:[%s4834_s5 + $0xf0] sm:$0xff]  ;;  %2242 = vmatpush.msra.mxu2 %v1790_v47 }
 0x26f   : > { %1725 = vst.msk [vmem:[#allocation3 + $0x81] sm:$0xff] %vm1256_vm3, %v1716_v62  ;;  %2403 = vmatpush.msra.mxu0 %v1800_v35  ;;  %v1794_v18 = vld [vmem:[%s4834_s5 + $0xc0] sm:$0xff]  ;;  %v2037_v37 = vld [vmem:[#allocation3 + $0x50] sm:$0xff]  ;;  %v1803_v31 = vld [vmem:[%s4834_s5 + $0x108] sm:$0xff] }
 0x270   : > { %v3140_v49 = vclamps-f32 %v1418_v8, 1.0  ;;  %1749 = vst.msk [vmem:[#allocation3 + $0x90] sm:$0x1] %vm1739_vm1, %v1738_v29  ;;  %v1798_v55 = vld [vmem:[%s4834_s5 + $0xe0] sm:$0xff]  ;;  %2324 = vmatpush.msra.mxu3 %v1794_v18  ;;  %v4287_v15 = vld [vmem:[#allocation3 + $0x52] sm:$0xff] }
 0x271   : > { %1769 = vst.msk [vmem:[#allocation3 + $0x99] sm:$0x1] %vm1739_vm1, %v1759_v39  ;;  %2404 = vmatpush.msra.mxu0 %v1799_v63  ;;  %v1820_v38 = vld [vmem:[#allocation3 + $0x61] sm:$0xff]  ;;  %v1821_v6 = vld [vmem:[#allocation3 + $0x71] sm:$0xff] }
 0x272   : > { %v1701_v19 = vadd.f32 1.0, %v3140_v49  ;;  %v2038_v40 = vld [vmem:[#allocation3 + $0x60] sm:$0xff]  ;;  %v1804_v33 = vld [vmem:[%s4834_s5 + $0x110] sm:$0xff] }
 0x273   : > { %2405 = vmatpush.msra.mxu0 %v1798_v55  ;;  %v4294_v1 = vld [vmem:[#allocation3 + $0x62] sm:$0xff]  ;;  %2484 = vmatpush.msra.mxu1 %v1804_v33  ;;  %v2365_v54 = vld [vmem:[#allocation3 + $0x91] sm:$0xff] }
 0x274   : > { %v1709_v58 = vmul.f32 %v1701_v19, %v1365_v52  ;;  %v2039_v7 = vld [vmem:[#allocation3 + $0x70] sm:$0xff]  ;;  %v1802_v25 = vld [vmem:[%s4834_s5 + $0x100] sm:$0xff] }
 0x275   : > { %v4303_v26 = vld [vmem:[#allocation3 + $0x72] sm:$0xff]  ;;  %2485 = vmatpush.msra.mxu1 %v1803_v31 }
 0x276   : > { %1718 = vst.msk [vmem:[#allocation3 + $0x11] sm:$0xff] %vm1256_vm3, %v1709_v58  ;;  %v1737_v11 = vld [vmem:[#allocation3 + $0x82] sm:$0x1]  ;;  %v1758_v56 = vld [vmem:[#allocation3 + $0x87] sm:$0x1] }
 0x277   : > { %1748 = vst.msk [vmem:[#allocation3 + $0x80] sm:$0x1] %vm1739_vm1, %v1737_v11  ;;  %2486 = vmatpush.msra.mxu1 %v1802_v25  ;;  %v2121_v44 = vld [vmem:[#allocation3 + $0x81] sm:$0xff]  ;;  %v2284_v42 = vld [vmem:[#allocation3 + $0x90] sm:$0xff] }
 0x278   : > { %1768 = vst.msk [vmem:[#allocation3 + $0x89] sm:$0x1] %vm1739_vm1, %v1758_v56  ;;  %v2446_v14 = vld [vmem:[#allocation3 + $0x92] sm:$0xff] }
 0x27d   : > { %v4182_v48 = vld [vmem:[#allocation3 + $0x11] sm:$0xff] }
 0x27e   : > { %v1730_v34 = vld [vmem:[#allocation3 + $0x12] sm:$0x1]  ;;  %v1751_v27 = vld [vmem:[#allocation3 + $0x17] sm:$0x1]  ;;  %3149 = vmatmul.msk.f32.gmra.mxu1 %vm1256_vm3, %v4182_v48  ;;  %v2040_v22 = vld [vmem:[#allocation3 + $0x80] sm:$0xff] }
 0x27f   : > { %1741 = vst.msk [vmem:[#allocation3 + $0x10] sm:$0x1] %vm1739_vm1, %v1730_v34  ;;  %v2202_v4 = vld [vmem:[#allocation3 + $0x82] sm:$0xff] }
 0x280   : > { %1761 = vst.msk [vmem:[#allocation3 + $0x19] sm:$0x1] %vm1739_vm1, %v1751_v27 }
 0x286   : > { %v2033_v17 = vld [vmem:[#allocation3 + $0x10] sm:$0xff]  ;;  %3150 = vmatmul.msk.f32.gmra.mxu1 %vm1256_vm3, %v4191_v12 }
 0x287   : > { %3172 = vmatmul.msk.f32.vlgmr.msrb.gmra.mxu0 %vm1256_vm3, %v2033_v17  ;;  %v4196_v59 = vld [vmem:[#allocation3 + $0x12] sm:$0xff]  ;;  %3157 = vmatmul.msk.f32.gmra.mxu2 %vm1256_vm3, %v2033_v17 }
 0x288   : > { %3165 = vmatmul.msk.f32.gmra.mxu3 %vm1256_vm3, %v4196_v59 }
 0x28e   : > { %3151 = vmatmul.msk.f32.gmra.mxu1 %vm1256_vm3, %v4203_v51 }
 0x28f   : > { %3173 = vmatmul.msk.f32.gmra.mxu0 %vm1256_vm3, %v4201_v0  ;;  %3158 = vmatmul.msk.f32.gmra.mxu2 %vm1256_vm3, %v4201_v0 }
 0x290   : > { %3166 = vmatmul.msk.f32.gmra.mxu3 %vm1256_vm3, %v4205_v9 }
 0x296   : > { %3152 = vmatmul.msk.f32.gmra.mxu1 %vm1256_vm3, %v4226_v57 }
 0x297   : > { %3174 = vmatmul.msk.f32.gmra.mxu0 %vm1256_vm3, %v4224_v21  ;;  %3159 = vmatmul.msk.f32.gmra.mxu2 %vm1256_vm3, %v4224_v21 }
 0x298   : > { %3167 = vmatmul.msk.f32.gmra.mxu3 %vm1256_vm3, %v4232_v20 }
 0x29e   : > { %3153 = vmatmul.msk.f32.gmra.mxu1 %vm1256_vm3, %v4243_v3 }
 0x29f   : > { %3175 = vmatmul.msk.f32.gmra.mxu0 %vm1256_vm3, %v4241_v60  ;;  %3160 = vmatmul.msk.f32.gmra.mxu2 %vm1256_vm3, %v4241_v60 }
 0x2a0   : > { %3168 = vmatmul.msk.f32.gmra.mxu3 %vm1256_vm3, %v4245_v16 }
 0x2a6   : > { %3154 = vmatmul.msk.f32.gmra.mxu1 %vm1256_vm3, %v1820_v38 }
 0x2a7   : > { %3176 = vmatmul.msk.f32.gmra.mxu0 %vm1256_vm3, %v2037_v37  ;;  %3161 = vmatmul.msk.f32.gmra.mxu2 %vm1256_vm3, %v2037_v37 }
 0x2a8   : > { %3169 = vmatmul.msk.f32.gmra.mxu3 %vm1256_vm3, %v4287_v15 }
 0x2ae   : > { %3155 = vmatmul.msk.f32.gmra.mxu1 %vm1256_vm3, %v1821_v6 }
 0x2af   : > { %3177 = vmatmul.msk.f32.gmra.mxu0 %vm1256_vm3, %v2038_v40  ;;  %3162 = vmatmul.msk.f32.gmra.mxu2 %vm1256_vm3, %v2038_v40 }
 0x2b0   : > { %3170 = vmatmul.msk.f32.gmra.mxu3 %vm1256_vm3, %v4294_v1 }
 0x2b6   : > { %3180 = vmatmul.msk.f32.vlgmr.msrb.gmra.mxu1 %vm1256_vm3, %v4182_v48 }
 0x2b7   : > { %3178 = vmatmul.msk.f32.gmra.mxu0 %vm1256_vm3, %v2039_v7  ;;  %3163 = vmatmul.msk.f32.gmra.mxu2 %vm1256_vm3, %v2039_v7 }
 0x2b8   : > { %3171 = vmatmul.msk.f32.gmra.mxu3 %vm1256_vm3, %v4303_v26 }
 0x2be   : > { %3181 = vmatmul.msk.f32.gmra.mxu1 %vm1256_vm3, %v4191_v12 }
 0x2bf   : > { %3179 = vmatmul.msk.f32.gmra.mxu0 %vm1256_vm3, %v2040_v22  ;;  %3188 = vmatmul.msk.f32.vlgmr.msra.gmra.mxu2 %vm1256_vm3, %v4196_v59 }
 0x2c0   : > { %3196 = vmatmul.msk.f32.vlgmr.msra.gmra.mxu3 %vm1256_vm3, %v4201_v0 }
 0x2c6   : > { %3182 = vmatmul.msk.f32.gmra.mxu1 %vm1256_vm3, %v4203_v51 }
 0x2c7   : > { %3204 = vmatmul.msk.f32.vlgmr.msra.gmra.mxu0 %vm1256_vm3, %v4191_v12  ;;  %3189 = vmatmul.msk.f32.gmra.mxu2 %vm1256_vm3, %v4205_v9 }
 0x2c8   : > { %3197 = vmatmul.msk.f32.gmra.mxu3 %vm1256_vm3, %v4224_v21 }
 0x2ce   : > { %3183 = vmatmul.msk.f32.gmra.mxu1 %vm1256_vm3, %v4226_v57 }
 0x2cf   : > { %3205 = vmatmul.msk.f32.gmra.mxu0 %vm1256_vm3, %v4203_v51  ;;  %3190 = vmatmul.msk.f32.gmra.mxu2 %vm1256_vm3, %v4232_v20 }
 0x2d0   : > { %3198 = vmatmul.msk.f32.gmra.mxu3 %vm1256_vm3, %v4241_v60 }
 0x2d4   : > { %v1863_v61 = vpop.f32.mrf.mxu1 }
 0x2d6   : > { %3184 = vmatmul.msk.f32.gmra.mxu1 %vm1256_vm3, %v4243_v3 }
 0x2d7   : > { %3206 = vmatmul.msk.f32.gmra.mxu0 %vm1256_vm3, %v4226_v57  ;;  %3191 = vmatmul.msk.f32.gmra.mxu2 %vm1256_vm3, %v4245_v16 }
 0x2d8   : > { %3199 = vmatmul.msk.f32.gmra.mxu3 %vm1256_vm3, %v2037_v37 }
 0x2de   : > { %3185 = vmatmul.msk.f32.gmra.mxu1 %vm1256_vm3, %v1820_v38 }
 0x2df   : > { %3207 = vmatmul.msk.f32.gmra.mxu0 %vm1256_vm3, %v4243_v3  ;;  %3192 = vmatmul.msk.f32.gmra.mxu2 %vm1256_vm3, %v4287_v15 }
 0x2e0   : > { %3200 = vmatmul.msk.f32.gmra.mxu3 %vm1256_vm3, %v2038_v40 }
 0x2e6   : > { %3186 = vmatmul.msk.f32.gmra.mxu1 %vm1256_vm3, %v1821_v6 }
 0x2e7   : > { %3208 = vmatmul.msk.f32.gmra.mxu0 %vm1256_vm3, %v1820_v38  ;;  %3193 = vmatmul.msk.f32.gmra.mxu2 %vm1256_vm3, %v4294_v1 }
 0x2e8   : > { %3201 = vmatmul.msk.f32.gmra.mxu3 %vm1256_vm3, %v2039_v7  ;;  %v1928_v41 = vpop.f32.mrf.mxu2 }
 0x2e9   : > { %v1929_v43 = vadd.f32 %v1928_v41, %v1863_v61  ;;  %v2001_v53 = vpop.f32.mrf.mxu3 }
 0x2eb   : > { %v2025_v23 = vadd.f32 %v2001_v53, %v1929_v43 }
 0x2ee   : > { %3187 = vmatmul.msk.f32.gmra.mxu1 %vm1256_vm3, %v2121_v44 }
 0x2ef   : > { %3209 = vmatmul.msk.f32.gmra.mxu0 %vm1256_vm3, %v1821_v6  ;;  %3194 = vmatmul.msk.f32.gmra.mxu2 %vm1256_vm3, %v4303_v26 }
 0x2f0   : > { %3202 = vmatmul.msk.f32.gmra.mxu3 %vm1256_vm3, %v2040_v22 }
 0x2f6   : > { %3212 = vmatmul.msk.f32.vlgmr.msra.gmra.mxu1 %vm1256_vm3, %v4205_v9 }
 0x2f7   : > { %3210 = vmatmul.msk.f32.gmra.mxu0 %vm1256_vm3, %v2121_v44  ;;  %3195 = vmatmul.msk.f32.gmra.mxu2 %vm1256_vm3, %v2202_v4 }
 0x2f8   : > { %3203 = vmatmul.msk.f32.gmra.mxu3 %vm1256_vm3, %v2284_v42 }
 0x2fb   : > { %v1866_v62 = vpop.f32.mrf.mxu1 }
 0x2fe   : > { %3213 = vmatmul.msk.f32.gmra.mxu1 %vm1256_vm3, %v4232_v20 }
 0x2ff   : > { %3211 = vmatmul.msk.f32.gmra.mxu0 %vm1256_vm3, %v2365_v54 }
 0x303   : > { %v1869_v8 = vpop.f32.mrf.mxu1 }
 0x304   : > { %v2082_v45 = vpop.f32.mrf.mxu0 }
 0x305   : > { %v2106_v2 = vadd.f32 %v2082_v45, %v2025_v23 }
 0x306   : > { %3214 = vmatmul.msk.f32.gmra.mxu1 %vm1256_vm3, %v4245_v16 }
 0x30a   : > { %v1931_v29 = vpop.f32.mrf.mxu2 }
 0x30b   : > { %v2004_v39 = vpop.f32.mrf.mxu3  ;;  %v1932_v52 = vadd.f32 %v1931_v29, %v1866_v62  ;;  %v1872_v19 = vpop.f32.mrf.mxu1 }
 0x30c   : > { %v2085_v49 = vpop.f32.mrf.mxu0 }
 0x30d   : > { %v2026_v58 = vadd.f32 %v2004_v39, %v1932_v52 }
 0x30e   : > { %3215 = vmatmul.msk.f32.gmra.mxu1 %vm1256_vm3, %v4287_v15 }
 0x30f   : > { %v2107_v11 = vadd.f32 %v2085_v49, %v2026_v58 }
 0x312   : > { %v1934_v56 = vpop.f32.mrf.mxu2 }
 0x313   : > { %v2007_v48 = vpop.f32.mrf.mxu3  ;;  %v1935_v27 = vadd.f32 %v1934_v56, %v1869_v8  ;;  %v1875_v32 = vpop.f32.mrf.mxu1 }
 0x314   : > { %v2088_v34 = vpop.f32.mrf.mxu0 }
 0x315   : > { %v2027_v17 = vadd.f32 %v2007_v48, %v1935_v27  ;;  %v4399_v27 = vld [vmem:[%s4835_s6] ss:$0 sm:$0xff] }
 0x316   : > { %3216 = vmatmul.msk.f32.gmra.mxu1 %vm1256_vm3, %v4294_v1 }
 0x317   : > { %v2108_v12 = vadd.f32 %v2088_v34, %v2027_v17 }
 0x31a   : > { %v1937_v59 = vpop.f32.mrf.mxu2 }
 0x31b   : > { %v2010_v0 = vpop.f32.mrf.mxu3  ;;  %v1938_v9 = vadd.f32 %v1937_v59, %v1872_v19  ;;  %v1878_v13 = vpop.f32.mrf.mxu1 }
 0x31c   : > { %v2091_v51 = vpop.f32.mrf.mxu0 }
 0x31d   : > { %v2028_v10 = vadd.f32 %v2010_v0, %v1938_v9 }
 0x31e   : > { %3217 = vmatmul.msk.f32.gmra.mxu1 %vm1256_vm3, %v4303_v26 }
 0x31f   : > { %v2109_v46 = vadd.f32 %v2091_v51, %v2028_v10 }
 0x322   : > { %v1940_v21 = vpop.f32.mrf.mxu2 }
 0x323   : > { %v2013_v57 = vpop.f32.mrf.mxu3  ;;  %v1941_v20 = vadd.f32 %v1940_v21, %v1875_v32  ;;  %v4378_v50 = vpop.f32.mrf.mxu1 }
 0x324   : > { %v2094_v60 = vpop.f32.mrf.mxu0 }
 0x325   : > { %v2029_v3 = vadd.f32 %v2013_v57, %v1941_v20 }
 0x326   : > { %3218 = vmatmul.msk.f32.gmra.mxu1 %vm1256_vm3, %v2202_v4 }
 0x327   : > { %v2110_v16 = vadd.f32 %v2094_v60, %v2029_v3 }
 0x32a   : > { %v1943_v24 = vpop.f32.mrf.mxu2 }
 0x32b   : > { %v1944_v5 = vadd.f32 %v1943_v24, %v1878_v13  ;;  %v4381_v30 = vpop.f32.mrf.mxu1  ;;  %v2016_v35 = vpop.f32.mrf.mxu3 }
 0x32c   : > { %v2097_v63 = vpop.f32.mrf.mxu0 }
 0x32d   : > { %v2030_v28 = vadd.f32 %v2016_v35, %v1944_v5 }
 0x32e   : > { %3219 = vmatmul.msk.f32.gmra.mxu1 %vm1256_vm3, %v2446_v14 }
 0x32f   : > { %v2111_v47 = vadd.f32 %v2097_v63, %v2030_v28 }
 0x332   : > { %v1946_v6 = vpop.f32.mrf.mxu2 }
 0x333   : > { %v2163_v18 = vpop.f32.mrf.mxu1  ;;  %v4384_v1 = vpop.f32.mrf.mxu3 }
 0x334   : > { %v2187_v55 = vadd.f32 %v2163_v18, %v2106_v2  ;;  %v4386_v26 = vpop.f32.mrf.mxu0 }
 0x33a   : > { %v4388_v22 = vpop.f32.mrf.mxu2 }
 0x33b   : > { %v2166_v37 = vpop.f32.mrf.mxu1  ;;  %v4390_v61 = vpop.f32.mrf.mxu3 }
 0x33c   : > { %v2188_v38 = vadd.f32 %v2166_v37, %v2107_v11  ;;  %v4392_v41 = vpop.f32.mrf.mxu0 }
 0x342   : > { %v2244_v43 = vpop.f32.mrf.mxu2 }
 0x343   : > { %v2169_v15 = vpop.f32.mrf.mxu1  ;;  %v2326_v23 = vpop.f32.mrf.mxu3  ;;  %v2268_v29 = vadd.f32 %v2244_v43, %v2187_v55 }
 0x344   : > { %v2189_v40 = vadd.f32 %v2169_v15, %v2108_v12  ;;  %v2407_v4 = vpop.f32.mrf.mxu0 }
 0x345   : > { %v2350_v39 = vadd.f32 %v2326_v23, %v2268_v29  ;;  %v1950_v29 = vadd.f32 %v4388_v22, %v4381_v30 }
 0x347   : > { %v2431_v56 = vadd.f32 %v2407_v4, %v2350_v39 }
 0x34a   : > { %v2247_v42 = vpop.f32.mrf.mxu2 }
 0x34b   : > { %v2172_v33 = vpop.f32.mrf.mxu1  ;;  %v2329_v54 = vpop.f32.mrf.mxu3  ;;  %v2269_v49 = vadd.f32 %v2247_v42, %v2188_v38 }
 0x34c   : > { %v2190_v7 = vadd.f32 %v2172_v33, %v2109_v46  ;;  %v2410_v8 = vpop.f32.mrf.mxu0 }
 0x34d   : > { %v2351_v58 = vadd.f32 %v2329_v54, %v2269_v49 }
 0x34f   : > { %v2432_v17 = vadd.f32 %v2410_v8, %v2351_v58 }
 0x352   : > { %v2250_v2 = vpop.f32.mrf.mxu2 }
 0x353   : > { %v2175_v31 = vpop.f32.mrf.mxu1  ;;  %v2332_v52 = vpop.f32.mrf.mxu3  ;;  %v2270_v32 = vadd.f32 %v2250_v2, %v2189_v40  ;;  %v1947_v40 = vadd.f32 %v1946_v6, %v4378_v50 }
 0x354   : > { %v2191_v25 = vadd.f32 %v2175_v31, %v2110_v16  ;;  %v2413_v11 = vpop.f32.mrf.mxu0 }
 0x355   : > { %v2352_v9 = vadd.f32 %v2332_v52, %v2270_v32  ;;  %v2031_v23 = vadd.f32 %v4384_v1, %v1947_v40  ;;  %v2032_v1 = vadd.f32 %v4390_v61, %v1950_v29 }
 0x357   : > { %v2433_v3 = vadd.f32 %v2413_v11, %v2352_v9  ;;  %v2112_v50 = vadd.f32 %v4386_v26, %v2031_v23 }
 0x35a   : > { %v2253_v48 = vpop.f32.mrf.mxu2 }
 0x35b   : > { %v2178_v44 = vpop.f32.mrf.mxu1  ;;  %v2335_v51 = vpop.f32.mrf.mxu3  ;;  %v2271_v60 = vadd.f32 %v2253_v48, %v2190_v7 }
 0x35c   : > { %v2192_v53 = vadd.f32 %v2178_v44, %v2111_v47  ;;  %v2416_v10 = vpop.f32.mrf.mxu0 }
 0x35d   : > { %v2353_v5 = vadd.f32 %v2335_v51, %v2271_v60 }
 0x35f   : > { %v2434_v55 = vadd.f32 %v2416_v10, %v2353_v5 }
 0x362   : > { %v2256_v57 = vpop.f32.mrf.mxu2 }
 0x363   : > { %v2181_v62 = vpop.f32.mrf.mxu1  ;;  %v2338_v28 = vpop.f32.mrf.mxu3  ;;  %v2272_v18 = vadd.f32 %v2256_v57, %v2191_v25 }
 0x364   : > { %v2419_v47 = vpop.f32.mrf.mxu0  ;;  %v2193_v49 = vadd.f32 %v2181_v62, %v2112_v50 }
 0x365   : > { %v2354_v33 = vadd.f32 %v2338_v28, %v2272_v18 }
 0x367   : > { %v2435_v42 = vadd.f32 %v2419_v47, %v2354_v33 }
 0x36a   : > { %v2259_v37 = vpop.f32.mrf.mxu2 }
 0x36b   : > { %v4394_v45 = vpop.f32.mrf.mxu1  ;;  %v2341_v43 = vpop.f32.mrf.mxu3  ;;  %v2273_v4 = vadd.f32 %v2259_v37, %v2192_v53 }
 0x36c   : > { %v2422_v25 = vpop.f32.mrf.mxu0 }
 0x36d   : > { %v2355_v6 = vadd.f32 %v2341_v43, %v2273_v4 }
 0x36f   : > { %v2436_v58 = vadd.f32 %v2422_v25, %v2355_v6 }
 0x372   : > { %v2262_v2 = vpop.f32.mrf.mxu2 }
 0x373   : > { %v2488_v19 = vpop.f32.mrf.mxu1  ;;  %v2274_v53 = vadd.f32 %v2262_v2, %v2193_v49  ;;  %v2344_v11 = vpop.f32.mrf.mxu3 }
 0x374   : > { %v2512_v34 = vadd.f32 %v2488_v19, %v2431_v56  ;;  %v2425_v26 = vpop.f32.mrf.mxu0 }
 0x375   : > { %v2356_v32 = vadd.f32 %v2344_v11, %v2274_v53 }
 0x376   : > { %v4402_v59 = vadd.f32 %v4399_v27, %v2512_v34  ;;  %v2113_v34 = vadd.f32 %v4392_v41, %v2032_v1 }
 0x377   : > { %v2437_v51 = vadd.f32 %v2425_v26, %v2356_v32 }
 0x378   : > { %v2534_v46 = vsel %vm1256_vm3, %v4402_v59, 0.0 }
 0x37a   : > { %v2265_v22 = vpop.f32.mrf.mxu2 }
 0x37b   : > { %v2491_v12 = vpop.f32.mrf.mxu1  ;;  %v2347_v10 = vpop.f32.mrf.mxu3 }
 0x37c   : > { %v2513_v0 = vadd.f32 %v2491_v12, %v2432_v17  ;;  %v2194_v17 = vadd.f32 %v4394_v45, %v2113_v34  ;;  %v2428_v57 = vpop.f32.mrf.mxu0 }
 0x37e   : > { %v4405_v13 = vadd.f32 %v4399_v27, %v2513_v0  ;;  %v2275_v0 = vadd.f32 %v2265_v22, %v2194_v17 }
 0x380   : > { %v2535_v21 = vsel %vm1256_vm3, %v4405_v13, 0.0 }
 0x381   : > { %v2536_v20 = vadd.f32 %v2535_v21, %v2534_v46  ;;  %v2357_v46 = vadd.f32 %v2347_v10, %v2275_v0 }
 0x383   : > { %v2494_v16 = vpop.f32.mrf.mxu1  ;;  %v2438_v60 = vadd.f32 %v2428_v57, %v2357_v46  ;;  %v4450_v46 = vld [vmem:[%s4836_s7] ss:$0 sm:$0xff] }
 0x384   : > { %v2514_v24 = vadd.f32 %v2494_v16, %v2433_v3 }
 0x386   : > { %v4412_v35 = vadd.f32 %v4399_v27, %v2514_v24 }
 0x388   : > { %v2537_v14 = vsel %vm1256_vm3, %v4412_v35, 0.0 }
 0x389   : > { %v2538_v63 = vadd.f32 %v2537_v14, %v2536_v20 }
 0x38b   : > { %v2497_v38 = vpop.f32.mrf.mxu1 }
 0x38c   : > { %v2515_v15 = vadd.f32 %v2497_v38, %v2434_v55 }
 0x38e   : > { %v2527_v7 = vadd.f32 %v4399_v27, %v2515_v15 }
 0x390   : > { %v2539_v31 = vsel %vm1256_vm3, %v2527_v7, 0.0 }
 0x391   : > { %v2540_v44 = vadd.f32 %v2539_v31, %v2538_v63 }
 0x393   : > { %v2500_v54 = vpop.f32.mrf.mxu1 }
 0x394   : > { %v2516_v8 = vadd.f32 %v2500_v54, %v2435_v42 }
 0x396   : > { %v2528_v39 = vadd.f32 %v4399_v27, %v2516_v8 }
 0x398   : > { %v2541_v52 = vsel %vm1256_vm3, %v2528_v39, 0.0 }
 0x399   : > { %v2542_v19 = vadd.f32 %v2541_v52, %v2540_v44 }
 0x39b   : > { %v2503_v56 = vpop.f32.mrf.mxu1 }
 0x39c   : > { %v2517_v48 = vadd.f32 %v2503_v56, %v2436_v58 }
 0x39e   : > { %v2529_v30 = vadd.f32 %v4399_v27, %v2517_v48 }
 0x3a0   : > { %v2543_v62 = vsel %vm1256_vm3, %v2529_v30, 0.0 }
 0x3a1   : > { %v2544_v12 = vadd.f32 %v2543_v62, %v2542_v19 }
 0x3a3   : > { %v2506_v61 = vpop.f32.mrf.mxu1 }
 0x3a4   : > { %v2518_v9 = vadd.f32 %v2506_v61, %v2437_v51 }
 0x3a6   : > { %v2530_v21 = vadd.f32 %v4399_v27, %v2518_v9 }
 0x3a8   : > { %v2545_v41 = vsel %vm1256_vm3, %v2530_v21, 0.0 }
 0x3a9   : > { %v2546_v20 = vadd.f32 %v2545_v41, %v2544_v12 }
 0x3ab   : > { %v2509_v3 = vpop.f32.mrf.mxu1 }
 0x3ac   : > { %v2519_v16 = vadd.f32 %v2509_v3, %v2438_v60  ;;  %v4455_v60 = vld [vmem:[%s4837_s8] ss:$0 sm:$0xff] }
 0x3ae   : > { %v2531_v45 = vadd.f32 %v4399_v27, %v2519_v16 }
 0x3b0   : > { %v2547_v24 = vsel %vm1256_vm3, %v2531_v45, 0.0 }
 0x3b1   : > { %v2548_v5 = vadd.f32 %v2547_v24, %v2546_v20 }
 0x3b3   : > { %v2549_v28 = vrot.slane %v2548_v5, 4 }
 0x3b5   : > { %v2550_v14 = vadd.f32 %v2549_v28, %v2548_v5 }
 0x3b7   : > { %v2551_v63 = vrot.slane %v2550_v14, 2 }
 0x3b9   : > { %v2552_v47 = vadd.f32 %v2551_v63, %v2550_v14 }
 0x3bb   : > { %v2553_v18 = vrot.slane %v2552_v47, 1 }
 0x3bd   : > { %v2554_v55 = vadd.f32 %v2553_v18, %v2552_v47 }
 0x3bf   : > { %v2555_v37 = vmul.f32 %v2554_v55, %v3701_v36 }
 0x3c1   : > { %v2556_v38 = vsub.f32 %v4402_v59, %v2555_v37  ;;  %v2557_v15 = vsub.f32 %v4405_v13, %v2555_v37  ;;  %v2558_v40 = vsub.f32 %v4412_v35, %v2555_v37  ;;  %v2559_v33 = vsub.f32 %v2527_v7, %v2555_v37 }
 0x3c2   : > { %v2560_v31 = vsub.f32 %v2528_v39, %v2555_v37  ;;  %v2561_v27 = vsub.f32 %v2529_v30, %v2555_v37  ;;  %v2562_v43 = vsub.f32 %v2530_v21, %v2555_v37  ;;  %v2563_v44 = vsub.f32 %v2531_v45, %v2555_v37 }
 0x3c3   : > { %v2564_v23 = vmul.f32 %v2556_v38, %v2556_v38  ;;  %v2565_v4 = vmul.f32 %v2557_v15, %v2557_v15  ;;  %v2566_v42 = vmul.f32 %v2558_v40, %v2558_v40  ;;  %v2567_v54 = vmul.f32 %v2559_v33, %v2559_v33 }
 0x3c4   : > { %v2568_v29 = vmul.f32 %v2560_v31, %v2560_v31  ;;  %v2569_v50 = vmul.f32 %v2561_v27, %v2561_v27  ;;  %v2570_v6 = vmul.f32 %v2562_v43, %v2562_v43  ;;  %v2571_v52 = vmul.f32 %v2563_v44, %v2563_v44 }
 0x3c5   : > { %v2572_v8 = vsel %vm1256_vm3, %v2564_v23, 0.0  ;;  %v2573_v25 = vsel %vm1256_vm3, %v2565_v4, 0.0  ;;  %v2575_v59 = vsel %vm1256_vm3, %v2566_v42, 0.0  ;;  %v2577_v35 = vsel %vm1256_vm3, %v2567_v54, 0.0 }
 0x3c6   : > { %v2574_v2 = vadd.f32 %v2573_v25, %v2572_v8  ;;  %v2579_v39 = vsel %vm1256_vm3, %v2568_v29, 0.0  ;;  %v2581_v19 = vsel %vm1256_vm3, %v2569_v50, 0.0  ;;  %v2583_v53 = vsel %vm1256_vm3, %v2570_v6, 0.0 }
 0x3c7   : > { %v2585_v11 = vsel %vm1256_vm3, %v2571_v52, 0.0 }
 0x3c8   : > { %v2576_v13 = vadd.f32 %v2575_v59, %v2574_v2 }
 0x3ca   : > { %v2578_v7 = vadd.f32 %v2577_v35, %v2576_v13 }
 0x3cc   : > { %v2580_v49 = vadd.f32 %v2579_v39, %v2578_v7 }
 0x3ce   : > { %v2582_v1 = vadd.f32 %v2581_v19, %v2580_v49 }
 0x3d0   : > { %v2584_v58 = vadd.f32 %v2583_v53, %v2582_v1 }
 0x3d2   : > { %v2586_v56 = vadd.f32 %v2585_v11, %v2584_v58 }
 0x3d4   : > { %v2587_v48 = vrot.slane %v2586_v56, 4 }
 0x3d6   : > { %v2588_v34 = vadd.f32 %v2587_v48, %v2586_v56 }
 0x3d8   : > { %v2589_v32 = vrot.slane %v2588_v34, 2 }
 0x3da   : > { %v2590_v30 = vadd.f32 %v2589_v32, %v2588_v34 }
 0x3dc   : > { %v2591_v26 = vrot.slane %v2590_v30, 1 }
 0x3de   : > { %v2592_v22 = vadd.f32 %v2591_v26, %v2590_v30 }
 0x3e0   : > { %v2593_v17 = vmul.f32 %v2592_v22, %v3701_v36 }
 0x3e2   : > { %v2594_v62 = vadd.f32 1e-05, %v2593_v17 }
 0x3e4   : > { %3270 = vrsqrt.f32 %v2594_v62  ;;  %vm2601_vm12 = vweird.f32 %v2594_v62 }
 0x3ea   : > { %v3271_v12 = vpop.eup %3270 }
 0x3eb   : > { %v2596_v0 = vmul.f32 %v3271_v12, %v2594_v62  ;;  %vm2602_vm11 = vweird.f32 %v3271_v12 }
 0x3ec   : > { %vm2603_vm13 = vmor %vm2601_vm12, %vm2602_vm11 }
 0x3ed   : > { %v2597_v51 = vmul.f32 %v3271_v12, %v2596_v0 }
 0x3ef   : > { %v2598_v61 = vmul.f32 0.5, %v2597_v51 }
 0x3f1   : > { %v2599_v9 = vsub.f32 1.5, %v2598_v61 }
 0x3f3   : > { %v2600_v10 = vmul.f32 %v3271_v12, %v2599_v9 }
 0x3f5   : > { %v2604_v21 = vsel %vm2603_vm13, %v3271_v12, %v2600_v10 }
 0x3f6   : > { %v2605_v41 = vmul.f32 %v2604_v21, %v2556_v38  ;;  %v2606_v57 = vmul.f32 %v2604_v21, %v2557_v15  ;;  %v2607_v36 = vmul.f32 %v2604_v21, %v2558_v40  ;;  %v2608_v20 = vmul.f32 %v2604_v21, %v2559_v33 }
 0x3f7   : > { %v2609_v3 = vmul.f32 %v2604_v21, %v2560_v31  ;;  %v2610_v16 = vmul.f32 %v2604_v21, %v2561_v27  ;;  %v4457_v45 = vmul.f32 %v2604_v21, %v2562_v43  ;;  %v4459_v24 = vmul.f32 %v2604_v21, %v2563_v44 }
 0x3f8   : > { %v2616_v5 = vmul.f32 %v4450_v46, %v2605_v41  ;;  %v2617_v28 = vmul.f32 %v4450_v46, %v2606_v57  ;;  %v2618_v14 = vmul.f32 %v4450_v46, %v2607_v36  ;;  %v2619_v63 = vmul.f32 %v4450_v46, %v2608_v20 }
 0x3f9   : > { %v2620_v6 = vmul.f32 %v4450_v46, %v2609_v3  ;;  %v2621_v57 = vmul.f32 %v4450_v46, %v2610_v16 }
 0x3fa   : > { %v4466_v47 = vadd.f32 %v4455_v60, %v2616_v5  ;;  %v4469_v18 = vadd.f32 %v4455_v60, %v2617_v28  ;;  %v4472_v55 = vadd.f32 %v4455_v60, %v2618_v14  ;;  %v4475_v37 = vadd.f32 %v4455_v60, %v2619_v63 }
 0x3fb   : > { %v4521_v12 = vadd.f32 %v4455_v60, %v2620_v6  ;;  %v2622_v6 = vmul.f32 %v4450_v46, %v4457_v45 }
 0x3fc   : > { %v4478_v38 = vmul.f32 0.70710677, %v4466_v47  ;;  %v4481_v15 = vmul.f32 0.70710677, %v4469_v18  ;;  %v4484_v40 = vmul.f32 0.70710677, %v4472_v55 }
 0x3fd   : > { %v4487_v33 = vmul.f32 0.70710677, %v4475_v37 }
 0x3fe   : > { %v2651_v31 = vmul.f32 %v4478_v38, %v4478_v38  ;;  %v2691_v27 = vmul.f32 %v4481_v15, %v4481_v15  ;;  %v2731_v43 = vmul.f32 %v4484_v40, %v4484_v40 }
 0x3ff   : > { %v2771_v44 = vmul.f32 %v4487_v33, %v4487_v33 }
 0x400   : > { %v4497_v23 = vmin.f32 %v2651_v31, 16.0  ;;  %v4499_v4 = vmin.f32 %v2691_v27, 16.0  ;;  %v4501_v42 = vmin.f32 %v2731_v43, 16.0  ;;  %v4533_v31 = vmul.f32 0.70710677, %v4521_v12 }
 0x401   : > { %v4503_v54 = vmin.f32 %v2771_v44, 16.0 }
 0x402   : > { %v2653_v8 = vmul.f32 2.1237322e-06, %v4497_v23  ;;  %v2664_v25 = vmul.f32 3.8918573e-05, %v4497_v23  ;;  %v2693_v2 = vmul.f32 2.1237322e-06, %v4499_v4 }
 0x403   : > { %v2704_v29 = vmul.f32 3.8918573e-05, %v4499_v4  ;;  %v2733_v59 = vmul.f32 2.1237322e-06, %v4501_v42  ;;  %v2744_v13 = vmul.f32 3.8918573e-05, %v4501_v42 }
 0x404   : > { %v2654_v50 = vadd.f32 0.00028619796, %v2653_v8  ;;  %v2665_v35 = vadd.f32 0.001143296, %v2664_v25  ;;  %v2694_v7 = vadd.f32 0.00028619796, %v2693_v2  ;;  %v4539_v25 = vadd.f32 %v4455_v60, %v2621_v57 }
 0x405   : > { %v2705_v39 = vadd.f32 0.001143296, %v2704_v29  ;;  %v2734_v49 = vadd.f32 0.00028619796, %v2733_v59  ;;  %v2745_v52 = vadd.f32 0.001143296, %v2744_v13 }
 0x406   : > { %v2655_v19 = vmul.f32 %v2654_v50, %v4497_v23  ;;  %v2666_v1 = vmul.f32 %v2665_v35, %v4497_v23  ;;  %v2695_v53 = vmul.f32 %v2694_v7, %v4499_v4  ;;  %v2773_v58 = vmul.f32 2.1237322e-06, %v4503_v54 }
 0x407   : > { %v2706_v11 = vmul.f32 %v2705_v39, %v4499_v4  ;;  %v2735_v56 = vmul.f32 %v2734_v49, %v4501_v42  ;;  %v2746_v48 = vmul.f32 %v2745_v52, %v4501_v42  ;;  %v2784_v34 = vmul.f32 3.8918573e-05, %v4503_v54 }
 0x408   : > { %v2656_v32 = vadd.f32 0.0036580483, %v2655_v19  ;;  %v2667_v30 = vadd.f32 0.014752088, %v2666_v1  ;;  %v2696_v26 = vadd.f32 0.0036580483, %v2695_v53  ;;  %v2811_v49 = vmul.f32 %v4533_v31, %v4533_v31 }
 0x409   : > { %v2707_v22 = vadd.f32 0.014752088, %v2706_v11  ;;  %v2736_v17 = vadd.f32 0.0036580483, %v2735_v56  ;;  %v2747_v62 = vadd.f32 0.014752088, %v2746_v48 }
 0x40a   : > { %v2657_v0 = vmul.f32 %v2656_v32, %v4497_v23  ;;  %v2668_v51 = vmul.f32 %v2667_v30, %v4497_v23  ;;  %v2774_v61 = vadd.f32 0.00028619796, %v2773_v58  ;;  %v2697_v9 = vmul.f32 %v2696_v26, %v4499_v4 }
 0x40b   : > { %v2708_v10 = vmul.f32 %v2707_v22, %v4499_v4  ;;  %v2748_v21 = vmul.f32 %v2747_v62, %v4501_v42  ;;  %v2785_v41 = vadd.f32 0.001143296, %v2784_v34  ;;  %v2737_v20 = vmul.f32 %v2736_v17, %v4501_v42 }
 0x40c   : > { %v2669_v36 = vadd.f32 0.112945676, %v2668_v51  ;;  %v2775_v3 = vmul.f32 %v2774_v61, %v4503_v54  ;;  %v2658_v5 = vadd.f32 0.05243302, %v2657_v0  ;;  %v2698_v43 = vadd.f32 0.05243302, %v2697_v9 }
 0x40d   : > { %v2709_v28 = vadd.f32 0.112945676, %v2708_v10  ;;  %v2749_v14 = vadd.f32 0.112945676, %v2748_v21  ;;  %v2786_v63 = vmul.f32 %v2785_v41, %v4503_v54  ;;  %v2738_v29 = vadd.f32 0.05243302, %v2737_v20 }
 0x40e   : > { %v2670_v27 = vmul.f32 %v2669_v36, %v4497_v23  ;;  %v2776_v59 = vadd.f32 0.0036580483, %v2775_v3  ;;  %v2659_v13 = vmul.f32 %v2658_v5, %v4497_v23  ;;  %v2699_v52 = vmul.f32 %v2698_v43, %v4499_v4 }
 0x40f   : > { %v2710_v44 = vmul.f32 %v2709_v28, %v4499_v4  ;;  %v2750_v16 = vmul.f32 %v2749_v14, %v4501_v42  ;;  %v2787_v8 = vadd.f32 0.014752088, %v2786_v63  ;;  %v4552_v58 = vmul.f32 0.70710677, %v4539_v25 }
 0x410   : > { %v2671_v2 = vadd.f32 0.4994258, %v2670_v27  ;;  %v2739_v56 = vmul.f32 %v2738_v29, %v4501_v42  ;;  %v2777_v45 = vmul.f32 %v2776_v59, %v4503_v54  ;;  %v2660_v48 = vadd.f32 0.18741608, %v2659_v13 }
 0x411   : > { %v2711_v50 = vadd.f32 0.4994258, %v2710_v44  ;;  %v2751_v35 = vadd.f32 0.4994258, %v2750_v16  ;;  %v2788_v7 = vmul.f32 %v2787_v8, %v4503_v54  ;;  %v2623_v30 = vmul.f32 %v4450_v46, %v4459_v24 }
 0x412   : > { %v2672_v39 = vmul.f32 %v2671_v2, %v4497_v23  ;;  %v4565_v26 = vadd.f32 %v4455_v60, %v2622_v6  ;;  %v2700_v22 = vadd.f32 0.18741608, %v2699_v52  ;;  %v4570_v62 = vmin.f32 %v2811_v49, 16.0 }
 0x413   : > { %v2712_v19 = vmul.f32 %v2711_v50, %v4499_v4  ;;  %v2752_v1 = vmul.f32 %v2751_v35, %v4501_v42  ;;  %v2789_v53 = vadd.f32 0.112945676, %v2788_v7  ;;  %v2740_v0 = vadd.f32 0.18741608, %v2739_v56 }
 0x414   : > { %v4554_v11 = vadd.f32 1.0, %v2672_v39  ;;  %v2778_v51 = vadd.f32 0.05243302, %v2777_v45  ;;  %v2851_v61 = vmul.f32 %v4552_v58, %v4552_v58  ;;  %v2661_v9 = vmul.f32 %v2660_v48, %v4497_v23 }
 0x415   : > { %v4558_v34 = vadd.f32 1.0, %v2712_v19  ;;  %v4560_v32 = vadd.f32 1.0, %v2752_v1  ;;  %v2790_v17 = vmul.f32 %v2789_v53, %v4503_v54  ;;  %v4577_v46 = vadd.f32 %v4455_v60, %v2623_v30 }
 0x416   : > { %3272 = vrcp.f32 %v4554_v11  ;;  %v4580_v24 = vmul.f32 0.70710677, %v4565_v26  ;;  %v2701_v10 = vmul.f32 %v2700_v22, %v4499_v4  ;;  %v2813_v41 = vmul.f32 2.1237322e-06, %v4570_v62 }
 0x417   : > { %3274 = vrcp.f32 %v4558_v34  ;;  %v2791_v21 = vadd.f32 0.4994258, %v2790_v17  ;;  %v2741_v36 = vmul.f32 %v2740_v0, %v4501_v42  ;;  %v2779_v20 = vmul.f32 %v2778_v51, %v4503_v54 }
 0x418   : > { %3276 = vrcp.f32 %v4560_v32  ;;  %v2824_v23 = vmul.f32 3.8918573e-05, %v4570_v62  ;;  %v4589_v3 = vmin.f32 %v2851_v61, 16.0  ;;  %v2662_v5 = vadd.f32 1.1283791, %v2661_v9 }
 0x419   : > { %v2792_v4 = vmul.f32 %v2791_v21, %v4503_v54  ;;  %v2814_v14 = vadd.f32 0.00028619796, %v2813_v41  ;;  %v4597_v63 = vmul.f32 0.5, %v4466_v47  ;;  %v4600_v42 = vmul.f32 0.5, %v4469_v18 }
 0x41a   : > { %v4603_v27 = vmul.f32 0.5, %v4472_v55  ;;  %v4606_v43 = vmul.f32 0.70710677, %v4577_v46  ;;  %v2702_v16 = vadd.f32 1.1283791, %v2701_v10  ;;  %v2891_v55 = vmul.f32 %v4580_v24, %v4580_v24 }
 0x41b   : > { %v4610_v8 = vadd.f32 1.0, %v2792_v4  ;;  %v2815_v2 = vmul.f32 %v2814_v14, %v4570_v62  ;;  %v2825_v29 = vadd.f32 0.001143296, %v2824_v23  ;;  %v2780_v18 = vadd.f32 0.18741608, %v2779_v20 }
 0x41c   : > { %v4584_v57 = vpop.eup %3272  ;;  %v4618_v13 = vmul.f32 %v2662_v5, %v4478_v38  ;;  %v2742_v50 = vadd.f32 1.1283791, %v2741_v36  ;;  %v2853_v35 = vmul.f32 2.1237322e-06, %v4589_v3  ;;  %vm2679_vm14 = vweird.f32 %v4554_v11 }
 0x41d   : > { %v4591_v60 = vpop.eup %3274  ;;  %v2675_v28 = vmul.f32 %v4584_v57, %v4554_v11  ;;  %3278 = vrcp.f32 %v4610_v8  ;;  %v2683_v7 = vand.u32 2147483647, %v4554_v11  ;;  %v2685_v6 = vand.u32 2147483648, %v4554_v11 }
 0x41e   : > { %v4608_v44 = vpop.eup %3276  ;;  %v2715_v47 = vmul.f32 %v4591_v60, %v4558_v34  ;;  %v4628_v49 = vmul.f32 %v2702_v16, %v4481_v15  ;;  %v2723_v38 = vand.u32 2147483647, %v4558_v34  ;;  %v2816_v52 = vadd.f32 0.0036580483, %v2815_v2 }
 0x41f   : > { %v2676_v59 = vsub.f32 1.0, %v2675_v28  ;;  %v2755_v39 = vmul.f32 %v4608_v44, %v4560_v32  ;;  %v2826_v19 = vmul.f32 %v2825_v29, %v4570_v62  ;;  %v2725_v56 = vand.u32 2147483648, %v4558_v34 }
 0x420   : > { %v2716_v53 = vsub.f32 1.0, %v2715_v47  ;;  %v2781_v45 = vmul.f32 %v2780_v18, %v4503_v54  ;;  %v4636_v48 = vmul.f32 %v2742_v50, %v4484_v40  ;;  %v2765_v30 = vand.u32 2147483648, %v4560_v32 }
 0x421   : > { %v2677_v1 = vmul.f32 %v4584_v57, %v2676_v59  ;;  %v2827_v22 = vadd.f32 0.014752088, %v2826_v19  ;;  %v2854_v15 = vadd.f32 0.00028619796, %v2853_v35  ;;  %v2686_v17 = vor.u32 1.1754944e-38, %v2685_v6 }
 0x422   : > { %v2756_v0 = vsub.f32 1.0, %v2755_v39  ;;  %v2763_v51 = vand.u32 2147483647, %v4560_v32  ;;  %v4640_v61 = vmin.f32 %v2891_v55, 16.0  ;;  %vm2680_vm15 = vweird.f32 %v4584_v57 }
 0x423   : > { %v4642_v9 = vpop.eup %3278  ;;  %vm4645_vm0 = vcmp.eq.f32.partialorder %v2683_v7, 8.507059e+37  ;;  %vm2719_vm1 = vweird.f32 %v4558_v34  ;;  %v2817_v40 = vmul.f32 %v2816_v52, %v4570_v62  ;;  %v2828_v54 = vmul.f32 %v2827_v22, %v4570_v62  ;;  %vm4666_vm6 = vmor %vm2679_vm14, %vm2680_vm15 }
 0x424   : > { %v2864_v21 = vmul.f32 3.8918573e-05, %v4589_v3  ;;  %v2678_v41 = vadd.f32 %v4584_v57, %v2677_v1  ;;  %v2717_v36 = vmul.f32 %v4591_v60, %v2716_v53  ;;  %v2782_v20 = vadd.f32 1.1283791, %v2781_v45 }
 0x425   : > { %v2795_v23 = vmul.f32 %v4642_v9, %v4610_v8  ;;  %v2726_v5 = vor.u32 1.1754944e-38, %v2725_v56  ;;  %vm2759_vm2 = vweird.f32 %v4560_v32  ;;  %v2766_v28 = vor.u32 1.1754944e-38, %v2765_v30 }
 0x426   : > { %v2829_v4 = vadd.f32 0.112945676, %v2828_v54  ;;  %v2855_v14 = vmul.f32 %v2854_v15, %v4589_v3  ;;  %vm2720_vm4 = vweird.f32 %v4591_v60  ;;  %v2757_v16 = vmul.f32 %v4608_v44, %v2756_v0 }
 0x427   : > { %vm2760_vm5 = vweird.f32 %v4608_v44  ;;  %v2796_v2 = vsub.f32 1.0, %v2795_v23  ;;  %v2818_v59 = vadd.f32 0.05243302, %v2817_v40  ;;  %v2865_v18 = vadd.f32 0.001143296, %v2864_v21  ;;  %vm4702_vm9 = vmor %vm2719_vm1, %vm2720_vm4 }
 0x428   : > { %v2830_v47 = vmul.f32 %v2829_v4, %v4570_v62  ;;  %v2893_v55 = vmul.f32 2.1237322e-06, %v4640_v61  ;;  %v2682_v50 = vsel %vm4666_vm6, %v4584_v57, %v2678_v41  ;;  %v2718_v35 = vadd.f32 %v4591_v60, %v2717_v36  ;;  %vm4721_vm11 = vmor %vm2759_vm2, %vm2760_vm5 }
 0x429   : > { %vm4676_vm7 = vcmp.eq.f32.partialorder %v2723_v38, 8.507059e+37  ;;  %v4681_v11 = vmul.f32 %v2782_v20, %v4487_v33  ;;  %v2904_v6 = vmul.f32 3.8918573e-05, %v4640_v61  ;;  %vm4684_vm8 = vcmp.eq.f32.partialorder %v2763_v51, 8.507059e+37 }
 0x42a   : > { %v2831_v52 = vadd.f32 0.4994258, %v2830_v47  ;;  %v2856_v19 = vadd.f32 0.0036580483, %v2855_v14  ;;  %v2866_v1 = vmul.f32 %v2865_v18, %v4589_v3  ;;  %v2894_v57 = vadd.f32 0.00028619796, %v2893_v55 }
 0x42b   : > { %v2758_v53 = vadd.f32 %v4608_v44, %v2757_v16  ;;  %v2797_v38 = vmul.f32 %v4642_v9, %v2796_v2  ;;  %v2905_v56 = vadd.f32 0.001143296, %v2904_v6  ;;  %v2931_v33 = vmul.f32 %v4606_v43, %v4606_v43 }
 0x42c   : > { %v2819_v45 = vmul.f32 %v2818_v59, %v4570_v62  ;;  %v2832_v30 = vmul.f32 %v2831_v52, %v4570_v62  ;;  %v2867_v22 = vadd.f32 0.014752088, %v2866_v1  ;;  %v2895_v15 = vmul.f32 %v2894_v57, %v4640_v61 }
 0x42d   : > { %v2687_v0 = vsel %vm4645_vm0, %v2686_v17, %v2682_v50  ;;  %vm2799_vm10 = vweird.f32 %v4610_v8  ;;  %v2805_v40 = vand.u32 2147483648, %v4610_v8  ;;  %v2906_v54 = vmul.f32 %v2905_v56, %v4640_v61 }
 0x42e   : > { %v2722_v21 = vsel %vm4702_vm9, %v4591_v60, %v2718_v35  ;;  %v4712_v10 = vadd.f32 1.0, %v2832_v30  ;;  %v2868_v17 = vmul.f32 %v2867_v22, %v4589_v3  ;;  %v4715_v41 = vmin.f32 %v2931_v33, 16.0 }
 0x42f   : > { %v2798_v36 = vadd.f32 %v4642_v9, %v2797_v38  ;;  %vm2800_vm12 = vweird.f32 %v4642_v9  ;;  %v2896_v20 = vadd.f32 0.0036580483, %v2895_v15  ;;  %v2907_v60 = vadd.f32 0.014752088, %v2906_v54 }
 0x430   : > { %v2762_v23 = vsel %vm4721_vm11, %v4608_v44, %v2758_v53  ;;  %v2820_v4 = vadd.f32 0.18741608, %v2819_v45  ;;  %3280 = vrcp.f32 %v4712_v10  ;;  %v2857_v14 = vmul.f32 %v2856_v19, %v4589_v3  ;;  %vm4740_vm13 = vmor %vm2799_vm10, %vm2800_vm12 }
 0x431   : > { %v4733_v32 = vmul.f32 %v2687_v0, %v4618_v13  ;;  %v2803_v16 = vand.u32 2147483647, %v4610_v8  ;;  %v2806_v2 = vor.u32 1.1754944e-38, %v2805_v40  ;;  %v2869_v29 = vadd.f32 0.112945676, %v2868_v17 }
 0x432   : > { %v2727_v59 = vsel %vm4676_vm7, %v2726_v5, %v2722_v21  ;;  %v2897_v44 = vmul.f32 %v2896_v20, %v4640_v61  ;;  %v2908_v18 = vmul.f32 %v2907_v60, %v4640_v61  ;;  %v2933_v13 = vmul.f32 2.1237322e-06, %v4715_v41 }
 0x433   : > { %v2767_v55 = vsel %vm4684_vm8, %v2766_v28, %v2762_v23  ;;  %v2802_v50 = vsel %vm4740_vm13, %v4642_v9, %v2798_v36  ;;  %v2870_v5 = vmul.f32 %v2869_v29, %v4589_v3  ;;  %v2944_v8 = vmul.f32 3.8918573e-05, %v4715_v41 }
 0x434   : > { %v2821_v35 = vmul.f32 %v2820_v4, %v4570_v62  ;;  %v2858_v7 = vadd.f32 0.05243302, %v2857_v14  ;;  %v2909_v6 = vadd.f32 0.112945676, %v2908_v18  ;;  %v2934_v52 = vadd.f32 0.00028619796, %v2933_v13 }
 0x435   : > { %v2728_v19 = vmul.f32 %v2727_v59, %v4628_v49  ;;  %vm2804_vm14 = vcmp.eq.f32.partialorder %v2803_v16, 8.507059e+37  ;;  %v2871_v1 = vadd.f32 0.4994258, %v2870_v5  ;;  %v2945_v57 = vadd.f32 0.001143296, %v2944_v8 }
 0x436   : > { %v3281_v39 = vpop.eup %3280  ;;  %v3220_v28 = vclamps-f32 %v4733_v32, 1.0  ;;  %v2807_v53 = vsel %vm2804_vm14, %v2806_v2, %v2802_v50  ;;  %v2898_v38 = vadd.f32 0.05243302, %v2897_v44  ;;  %v2910_v9 = vmul.f32 %v2909_v6, %v4640_v61 }
 0x437   : > { %v2768_v56 = vmul.f32 %v2767_v55, %v4636_v48  ;;  %v2835_v33 = vmul.f32 %v3281_v39, %v4712_v10  ;;  %v2872_v62 = vmul.f32 %v2871_v1, %v4589_v3  ;;  %v2935_v45 = vmul.f32 %v2934_v52, %v4715_v41 }
 0x438   : > { %v2822_v30 = vadd.f32 1.1283791, %v2821_v35  ;;  %v2859_v49 = vmul.f32 %v2858_v7, %v4589_v3  ;;  %v2911_v22 = vadd.f32 0.4994258, %v2910_v9  ;;  %v2946_v15 = vmul.f32 %v2945_v57, %v4715_v41 }
 0x439   : > { %v2808_v0 = vmul.f32 %v2807_v53, %v4681_v11  ;;  %v2836_v51 = vsub.f32 1.0, %v2835_v33  ;;  %v2843_v40 = vand.u32 2147483647, %v4712_v10  ;;  %v4766_v54 = vadd.f32 1.0, %v2872_v62 }
 0x43a   : > { %v2845_v48 = vand.u32 2147483648, %v4712_v10  ;;  %v2899_v21 = vmul.f32 %v2898_v38, %v4640_v61  ;;  %v2912_v17 = vmul.f32 %v2911_v22, %v4640_v61  ;;  %v2947_v34 = vadd.f32 0.014752088, %v2946_v15 }
 0x43b   : > { %v2837_v36 = vmul.f32 %v3281_v39, %v2836_v51  ;;  %vm2840_vm15 = vweird.f32 %v3281_v39  ;;  %3282 = vrcp.f32 %v4766_v54  ;;  %v2936_v20 = vadd.f32 0.0036580483, %v2935_v45 }
 0x43c   : > { %v3221_v60 = vclamps-f32 %v2728_v19, 1.0  ;;  %v3222_v11 = vclamps-f32 %v2768_v56, 1.0  ;;  %v2860_v23 = vadd.f32 0.18741608, %v2859_v49  ;;  %v4772_v4 = vadd.f32 1.0, %v2912_v17 }
 0x43d   : > { %v2823_v14 = vmul.f32 %v2822_v30, %v4533_v31  ;;  %v2838_v32 = vadd.f32 %v3281_v39, %v2837_v36  ;;  %vm2839_vm0 = vweird.f32 %v4712_v10  ;;  %v2948_v16 = vmul.f32 %v2947_v34, %v4715_v41 }
 0x43e   : > { %v3223_v2 = vclamps-f32 %v2808_v0, 1.0  ;;  %vm2841_vm1 = vmor %vm2839_vm0, %vm2840_vm15  ;;  %v2846_v29 = vor.u32 1.1754944e-38, %v2845_v48  ;;  %v2900_v59 = vadd.f32 0.18741608, %v2899_v21  ;;  %3284 = vrcp.f32 %v4772_v4 }
 0x43f   : > { %v2842_v47 = vsel %vm2841_vm1, %v3281_v39, %v2838_v32  ;;  %vm2844_vm2 = vcmp.eq.f32.partialorder %v2843_v40, 8.507059e+37  ;;  %v2937_v44 = vmul.f32 %v2936_v20, %v4715_v41  ;;  %v2971_v18 = vadd.f32 1.0, %v3220_v28 }
 0x440   : > { %v2847_v13 = vsel %vm2844_vm2, %v2846_v29, %v2842_v47  ;;  %v2949_v55 = vadd.f32 0.112945676, %v2948_v16  ;;  %v2972_v31 = vadd.f32 1.0, %v3221_v60  ;;  %v2973_v50 = vadd.f32 1.0, %v3222_v11 }
 0x441   : > { %v3283_v5 = vpop.eup %3282  ;;  %v2638_v10 = vmul.f32 0.5, %v4475_v37  ;;  %v2639_v8 = vmul.f32 0.5, %v4521_v12  ;;  %v2848_v35 = vmul.f32 %v2847_v13, %v2823_v14  ;;  %v2861_v7 = vmul.f32 %v2860_v23, %v4589_v3 }
 0x442   : > { %v2875_v6 = vmul.f32 %v3283_v5, %v4766_v54  ;;  %v2901_v52 = vmul.f32 %v2900_v59, %v4640_v61  ;;  %v2950_v19 = vmul.f32 %v2949_v55, %v4715_v41  ;;  %v2974_v1 = vadd.f32 1.0, %v3223_v2 }
 0x443   : > { %v3224_v57 = vclamps-f32 %v2848_v35, 1.0  ;;  %v2938_v37 = vadd.f32 0.05243302, %v2937_v44  ;;  %v2979_v12 = vmul.f32 %v2971_v18, %v4597_v63  ;;  %v2980_v3 = vmul.f32 %v2972_v31, %v4600_v42 }
 0x444   : > { %v3285_v39 = vpop.eup %3284  ;;  %v2876_v28 = vsub.f32 1.0, %v2875_v6  ;;  %v2951_v53 = vadd.f32 0.4994258, %v2950_v19  ;;  %v2981_v38 = vmul.f32 %v2973_v50, %v4603_v27  ;;  %v2982_v9 = vmul.f32 %v2974_v1, %v2638_v10 }
 0x445   : > { %v2862_v56 = vadd.f32 1.1283791, %v2861_v7  ;;  %v2885_v61 = vand.u32 2147483648, %v4766_v54  ;;  %v2915_v33 = vmul.f32 %v3285_v39, %v4772_v4  ;;  %v2975_v62 = vadd.f32 1.0, %v3224_v57  ;;  %2987 = vst.msk [vmem:[%s4786_s10] sm:$0xff] %vm1256_vm3, %v2979_v12 }
 0x446   : > { %v2877_v63 = vmul.f32 %v3283_v5, %v2876_v28  ;;  %vm2880_vm4 = vweird.f32 %v3283_v5  ;;  %v2883_v42 = vand.u32 2147483647, %v4766_v54  ;;  %v2952_v45 = vmul.f32 %v2951_v53, %v4715_v41  ;;  %2988 = vst.msk [vmem:[%s4786_s10 + $0x8] sm:$0xff] %vm1256_vm3, %v2980_v3 }
 0x447   : > { %vm2879_vm5 = vweird.f32 %v4766_v54  ;;  %v2902_v27 = vadd.f32 1.1283791, %v2901_v52  ;;  %v2916_v30 = vsub.f32 1.0, %v2915_v33  ;;  %v2983_v49 = vmul.f32 %v2975_v62, %v2639_v8  ;;  %2989 = vst.msk [vmem:[%s4786_s10 + $0x10] sm:$0xff] %vm1256_vm3, %v2981_v38 }
 0x448   : > { %v2878_v22 = vadd.f32 %v3283_v5, %v2877_v63  ;;  %v2925_v15 = vand.u32 2147483648, %v4772_v4  ;;  %v2939_v0 = vmul.f32 %v2938_v37, %v4715_v41  ;;  %v2953_v51 = vadd.f32 1.0, %v2952_v45  ;;  %2990 = vst.msk [vmem:[%s4786_s10 + $0x18] sm:$0xff] %vm1256_vm3, %v2982_v9  ;;  %vm2881_vm6 = vmor %vm2879_vm5, %vm2880_vm4 }
 0x449   : > { %v2886_v40 = vor.u32 1.1754944e-38, %v2885_v61  ;;  %v2917_v48 = vmul.f32 %v3285_v39, %v2916_v30  ;;  %vm2920_vm7 = vweird.f32 %v3285_v39  ;;  %v2923_v21 = vand.u32 2147483647, %v4772_v4  ;;  %2991 = vst.msk [vmem:[%s4786_s10 + $0x20] sm:$0xff] %vm1256_vm3, %v2983_v49 }
 0x44a   : > { %v2863_v54 = vmul.f32 %v2862_v56, %v4552_v58  ;;  %v2882_v17 = vsel %vm2881_vm6, %v3283_v5, %v2878_v22  ;;  %vm2884_vm8 = vcmp.eq.f32.partialorder %v2883_v42, 8.507059e+37  ;;  %3286 = vrcp.f32 %v2953_v51 }
 0x44b   : > { %v2887_v34 = vsel %vm2884_vm8, %v2886_v40, %v2882_v17  ;;  %v2918_v36 = vadd.f32 %v3285_v39, %v2917_v48  ;;  %vm2919_vm9 = vweird.f32 %v4772_v4  ;;  %v2926_v60 = vor.u32 1.1754944e-38, %v2925_v15 }
 0x44c   : > { %v2888_v20 = vmul.f32 %v2887_v34, %v2863_v54  ;;  %vm2921_vm10 = vmor %vm2919_vm9, %vm2920_vm7  ;;  %v2940_v11 = vadd.f32 0.18741608, %v2939_v0  ;;  %v2903_v23 = vmul.f32 %v2902_v27, %v4580_v24  ;;  %vm2924_vm11 = vcmp.eq.f32.partialorder %v2923_v21, 8.507059e+37 }
 0x44d   : > { %v2922_v14 = vsel %vm2921_vm10, %v3285_v39, %v2918_v36  ;;  %v2640_v29 = vmul.f32 0.5, %v4539_v25  ;;  %v2641_v13 = vmul.f32 0.5, %v4565_v26  ;;  %v2965_v50 = vand.u32 2147483648, %v2953_v51 }
 0x44e   : > { %v3225_v32 = vclamps-f32 %v2888_v20, 1.0  ;;  %v2927_v16 = vsel %vm2924_vm11, %v2926_v60, %v2922_v14  ;;  %v2941_v59 = vmul.f32 %v2940_v11, %v4715_v41  ;;  %v2963_v10 = vand.u32 2147483647, %v2953_v51 }
 0x44f   : > { %v2928_v2 = vmul.f32 %v2927_v16, %v2903_v23  ;;  %vm2959_vm13 = vweird.f32 %v2953_v51  ;;  %v2966_v41 = vor.u32 1.1754944e-38, %v2965_v50  ;;  %v2642_v19 = vmul.f32 0.5, %v4577_v46 }
 0x450   : > { %v3287_v58 = vpop.eup %3286  ;;  %v2976_v47 = vadd.f32 1.0, %v3225_v32  ;;  %v2942_v31 = vadd.f32 1.1283791, %v2941_v59  ;;  %vm2964_vm15 = vcmp.eq.f32.partialorder %v2963_v10, 8.507059e+37 }
 0x451   : > { %v3226_v4 = vclamps-f32 %v2928_v2, 1.0  ;;  %v2955_v44 = vmul.f32 %v3287_v58, %v2953_v51  ;;  %vm2960_vm12 = vweird.f32 %v3287_v58 }
 0x452   : > { %v2984_v18 = vmul.f32 %v2976_v47, %v2640_v29  ;;  %vm2961_vm14 = vmor %vm2959_vm13, %vm2960_vm12  ;;  %v2943_v35 = vmul.f32 %v2942_v31, %v4606_v43 }
 0x453   : > { %v2956_v55 = vsub.f32 1.0, %v2955_v44  ;;  %v2977_v24 = vadd.f32 1.0, %v3226_v4 }
 0x454   : > { %2992 = vst.msk [vmem:[%s4786_s10 + $0x28] sm:$0xff] %vm1256_vm3, %v2984_v18 }
 0x455   : > { %v2957_v5 = vmul.f32 %v3287_v58, %v2956_v55  ;;  %v2985_v25 = vmul.f32 %v2977_v24, %v2641_v13 }
 0x457   : > { %v2958_v8 = vadd.f32 %v3287_v58, %v2957_v5  ;;  %2993 = vst.msk [vmem:[%s4786_s10 + $0x30] sm:$0xff] %vm1256_vm3, %v2985_v25 }
 0x459   : > { %v2962_v26 = vsel %vm2961_vm14, %v3287_v58, %v2958_v8 }
 0x45a   : > { %v2967_v7 = vsel %vm2964_vm15, %v2966_v41, %v2962_v26 }
 0x45b   : > { %v2968_v6 = vmul.f32 %v2967_v7, %v2943_v35 }
 0x45d   : > { %v3227_v52 = vclamps-f32 %v2968_v6, 1.0 }
 0x45f   : > { %v2978_v1 = vadd.f32 1.0, %v3227_v52 }
 0x461   : > { %v2986_v57 = vmul.f32 %v2978_v1, %v2642_v19 }
 0x463   : > { %2994 = vst.msk [vmem:[%s4786_s10 + $0x38] sm:$0xff] %vm1256_vm3, %v2986_v57 }
 0x464 PF: > { %s19_s30 = sadd.s32 1, %s3294_s30  }
 0x465   : > { %p16_p4 = scmp.ge.s32.totalorder %s19_s30, 4  }
 0x467   :  { %18 = sbr.rel (!%p16_p4) target bundleno = 1 (0x1), region = 92 }

</bundles_post_ra>
